<compile_context>
chip_gen: v6e
topology: v6e:2x2x1
jax: 0.10.0
libtpu: 0.0.40
codegen_flags: <defaults>
</compile_context>

<pallas_src>
import jax
import jax.numpy as jnp
from jax.experimental import pallas as pl
from jax.experimental.pallas import tpu as pltpu


# ----------------------------------------------------------------------------
# Fused Pallas kernel (factory over the static layer count / shapes)
# ----------------------------------------------------------------------------
def make_fused_kernel(n_layers, T, B, H, VP):
    H2, H4, H6, H8 = 2 * H, 4 * H, 6 * H, 8 * H
    TB = T * B

    def kernel(*refs):
        it = iter(refs)
        ids_ref = next(it)            # (T*B, 1)  i32  token ids, time-major flattened
        len_ref = next(it)            # (B, 1)    i32  valid lengths
        emb_proj_ref = next(it)       # (VP, 8H)  emb_table @ W_ih(l0) + bias, gate-major
        w_hh = [next(it)]             # per layer: (2H, 8H) block-diag recurrent weight
        w_in_f = [None]               # per layer>0: (H, 8H) rows for prev fwd half
        w_in_b = [None]               # per layer>0: (H, 8H) rows for prev bwd half
        b_in = [None]                 # per layer>0: (1, 8H) fused bias
        for _ in range(1, n_layers):
            w_in_f.append(next(it))
            w_in_b.append(next(it))
            w_hh.append(next(it))
            b_in.append(next(it))
        fcw_ref = next(it)            # (2H, C)
        fcb_ref = next(it)            # (1, C)
        out_ref = next(it)            # (B, C)
        scr_f = next(it)              # (T*B, H) VMEM scratch: fwd outputs per time t
        scr_b = next(it)              # (T*B, H) VMEM scratch: bwd outputs per time t

        lengths = len_ref[...]                                     # (B, 1) int32

        # ---- hoisted constants & per-step masks (outside the recurrence) ----
        col8 = jax.lax.broadcasted_iota(jnp.int32, (1, H8), 1)
        fwd_cols = jnp.broadcast_to((col8 % H2) < H, (B, H8))       # fwd-gate lanes
        col2 = jax.lax.broadcasted_iota(jnp.int32, (1, H2), 1)
        is_fwd_half = col2 < H                                      # (1, 2H) bool
        step_mask = []
        for i in range(T):
            thr = jnp.where(is_fwd_half, i, T - 1 - i)              # (1, 2H) int32
            step_mask.append(lengths > thr)                         # (B, 2H) bool
        zero2 = jnp.zeros((B, H2), jnp.float32)

        # ---- layer-0 hoisted projection: one-hot(ids) @ (VP, 8H) fused table ----
        iota_v = jax.lax.broadcasted_iota(jnp.int32, (TB, VP), 1)
        onehot = jnp.where(ids_ref[...] == iota_v, 1.0, 0.0)        # (T*B, VP) f32
        z_flat = jnp.dot(onehot, emb_proj_ref[...],
                         preferred_element_type=jnp.float32)        # (T*B, 8H)

        sum2 = zero2
        for l in range(n_layers):
            last = (l == n_layers - 1)
            if l > 0:
                # Hoisted input projection straight from scratch refs (no concat).
                z_flat = (jnp.dot(scr_f[...], w_in_f[l][...],
                                  preferred_element_type=jnp.float32)
                          + jnp.dot(scr_b[...], w_in_b[l][...],
                                    preferred_element_type=jnp.float32)
                          + b_in[l][...])                           # (T*B, 8H)
            whh_l = w_hh[l][...]                                    # (2H, 8H)

            h2 = zero2                                              # (B, 2H) [hf|hb]
            c2 = zero2
            # Fully unrolled; fwd step i and bwd step T-1-i share one fused data path.
            for i in range(T):
                tf, tb = i, T - 1 - i
                # Merge fwd-gate cols of row-block tf with bwd-gate cols of row-block tb.
                z_in = jnp.where(fwd_cols,
                                 z_flat[tf * B:(tf + 1) * B, :],
                                 z_flat[tb * B:(tb + 1) * B, :])    # (B, 8H)
                z = z_in + jnp.dot(h2, whh_l,
                                   preferred_element_type=jnp.float32)
                sig = jax.nn.sigmoid(z[:, 0:H6])                    # i|f|o, both dirs
                g = jnp.tanh(z[:, H6:H8])                           # g, both dirs
                c_new = sig[:, H2:H4] * c2 + sig[:, 0:H2] * g
                h_new = sig[:, H4:H6] * jnp.tanh(c_new)
                m = step_mask[i]
                o2 = jnp.where(m, h_new, zero2)
                h2 = jnp.where(m, h_new, h2)
                c2 = jnp.where(m, c_new, c2)
                if last:
                    sum2 = sum2 + o2       # on-the-fly time sum for the mean
                else:
                    scr_f[pl.ds(tf * B, B), :] = o2[:, 0:H]
                    scr_b[pl.ds(tb * B, B), :] = o2[:, H:H2]

        # ---- mean over padded length T + final Linear ----
        logits = (jnp.dot(sum2, fcw_ref[...],
                          preferred_element_type=jnp.float32) * (1.0 / T)
                  + fcb_ref[...])
        out_ref[...] = logits

    return kernel


# ----------------------------------------------------------------------------
# Host-side parameter packing (gate-major fused layouts, block-diag W_hh)
# ----------------------------------------------------------------------------
def _scatter_gates(w4, d, H):
    """Map a (rows, 4H) [i|f|g|o] matrix of direction d (0=fwd, 1=bwd) into the
    fused gate-major (rows, 8H) layout [i_f i_b | f_f f_b | o_f o_b | g_f g_b],
    filling only direction d's columns (zeros elsewhere)."""
    rows = w4.shape[0]
    out = jnp.zeros((rows, 8 * H), w4.dtype)
    src = ((0, w4[:, 0:H]),          # i
           (2, w4[:, H:2 * H]),      # f
           (4, w4[:, 3 * H:4 * H]),  # o
           (6, w4[:, 2 * H:3 * H]))  # g
    for grp, block in src:
        out = out.at[:, (grp + d) * H:(grp + d + 1) * H].set(block)
    return out


def pack_params(emb_table, lstm_params, fc_w, fc_b, H):
    HI = jax.lax.Precision.HIGHEST
    packed = []
    for l, (fwd, bwd) in enumerate(lstm_params):
        wih_f, whh_f, b_f = fwd
        wih_b, whh_b, b_b = bwd
        wih = _scatter_gates(wih_f, 0, H) + _scatter_gates(wih_b, 1, H)   # (Din, 8H)
        b = _scatter_gates(b_f, 0, H) + _scatter_gates(b_b, 1, H)         # (1, 8H)
        whh2 = jnp.concatenate([_scatter_gates(whh_f, 0, H),
                                _scatter_gates(whh_b, 1, H)], axis=0)     # (2H, 8H)
        if l == 0:
            # Fold embedding + layer-0 input projection + bias into one table.
            emb_proj = jnp.dot(emb_table, wih, precision=HI) + b          # (V, 8H)
            V = emb_proj.shape[0]
            VP = max(128, ((V + 127) // 128) * 128)
            emb_proj = jnp.pad(emb_proj, ((0, VP - V), (0, 0)))
            packed.append((emb_proj, whh2))
        else:
            packed.append((wih[:H], wih[H:], whh2, b))
    return tuple(packed), (fc_w, fc_b)


# ----------------------------------------------------------------------------
# Wrapper
# ----------------------------------------------------------------------------
@jax.jit
def text_bilstm_forward(x_ids, x_len, packed_lstm, packed_fc):
    B, T = x_ids.shape
    H = packed_lstm[0][1].shape[0] // 2        # whh2 of layer 0: (2H, 8H)
    VP = packed_lstm[0][0].shape[0]
    n_classes = packed_fc[0].shape[1]

    # nn.Dropout is identity at inference.  Token ids go in time-major order;
    # the embedding lookup itself happens inside the kernel (one-hot @ emb_proj).
    ids_tm = x_ids.astype(jnp.int32).T.reshape(T * B, 1)        # (T*B, 1)
    lengths = x_len.reshape(B, 1).astype(jnp.int32)             # (B, 1)

    inputs = [ids_tm, lengths]
    for p in packed_lstm:
        inputs.extend(p)
    inputs.extend(packed_fc)

    in_bytes = sum(int(a.size) * a.dtype.itemsize for a in inputs)
    scratch_bytes = 2 * T * B * H * 4
    vmem_limit = min(int(2 * in_bytes + scratch_bytes + (8 << 20)), 64 << 20)

    vmem = pl.BlockSpec(memory_space=pltpu.MemorySpace.VMEM)
    kernel = make_fused_kernel(len(packed_lstm), T, B, H, VP)
    return pl.pallas_call(
        kernel,
        out_shape=jax.ShapeDtypeStruct((B, n_classes), jnp.float32),
        in_specs=[vmem] * len(inputs),
        out_specs=vmem,
        scratch_shapes=[pltpu.VMEM((T * B, H), jnp.float32),
                        pltpu.VMEM((T * B, H), jnp.float32)],
        compiler_params=pltpu.CompilerParams(vmem_limit_bytes=vmem_limit),
    )(*inputs)


# ----------------------------------------------------------------------------
# Pure-JAX reference (same math, for a sanity check)
# ----------------------------------------------------------------------------
def reference_forward(x_ids, x_len, emb_table, lstm_params, fc_w, fc_b):
    HI = jax.lax.Precision.HIGHEST
    emb = emb_table[x_ids]                         # (B, T, E)
    B, T, _ = emb.shape
    h = emb
    for (fwd, bwd) in lstm_params:
        H = fwd[1].shape[0]
        dir_outs = []
        for d, (wih, whh, b) in enumerate((fwd, bwd)):
            trange = range(T) if d == 0 else range(T - 1, -1, -1)
            hs = jnp.zeros((B, H), jnp.float32)
            cs = jnp.zeros((B, H), jnp.float32)
            outs = [None] * T
            for t in trange:
                z = (jnp.dot(h[:, t, :], wih, precision=HI)
                     + jnp.dot(hs, whh, precision=HI) + b)
                i_g = jax.nn.sigmoid(z[:, :H])
                f_g = jax.nn.sigmoid(z[:, H:2 * H])
                g_g = jnp.tanh(z[:, 2 * H:3 * H])
                o_g = jax.nn.sigmoid(z[:, 3 * H:])
                c_new = f_g * cs + i_g * g_g
                h_new = o_g * jnp.tanh(c_new)
                valid = (x_len[:, None] > t)
                cs = jnp.where(valid, c_new, cs)
                hs = jnp.where(valid, h_new, hs)
                outs[t] = jnp.where(valid, h_new, 0.0)
            dir_outs.append(jnp.stack(outs, axis=1))
        h = jnp.concatenate(dir_outs, axis=-1)     # (B, T, 2H)
    mean = jnp.sum(h, axis=1) / T
    return jnp.dot(mean, fc_w, precision=HI) + fc_b


# ----------------------------------------------------------------------------
# Main
# ----------------------------------------------------------------------------
if __name__ == "__main__":
    VOCAB, EMBED, HIDDEN, N_LAYERS, N_CLASSES = 50, 32, 32, 2, 4
    B, T = 2, 8

    key = jax.random.PRNGKey(0)
    key, k_emb = jax.random.split(key)
    emb_table = jax.random.normal(k_emb, (VOCAB, EMBED), jnp.float32) * 0.1
    emb_table = emb_table.at[0].set(0.0)  # padding_idx=0

    bound = 1.0 / (HIDDEN ** 0.5)
    lstm_params = []
    for layer in range(N_LAYERS):
        din = EMBED if layer == 0 else 2 * HIDDEN
        dirs = []
        for _d in range(2):
            key, k1, k2, k3, k4 = jax.random.split(key, 5)
            wih = jax.random.uniform(k1, (din, 4 * HIDDEN), jnp.float32, -bound, bound)
            whh = jax.random.uniform(k2, (HIDDEN, 4 * HIDDEN), jnp.float32, -bound, bound)
            bih = jax.random.uniform(k3, (4 * HIDDEN,), jnp.float32, -bound, bound)
            bhh = jax.random.uniform(k4, (4 * HIDDEN,), jnp.float32, -bound, bound)
            dirs.append((wih, whh, (bih + bhh).reshape(1, 4 * HIDDEN)))
        lstm_params.append(tuple(dirs))
    lstm_params = tuple(lstm_params)

    fb = 1.0 / ((2 * HIDDEN) ** 0.5)
    key, kw, kb, kx = jax.random.split(key, 4)
    fc_w = jax.random.uniform(kw, (2 * HIDDEN, N_CLASSES), jnp.float32, -fb, fb)
    fc_b = jax.random.uniform(kb, (1, N_CLASSES), jnp.float32, -fb, fb)

    x_ids = jax.random.randint(kx, (B, T), 1, VOCAB)
    x_len = jnp.array([T, T - 2], dtype=jnp.int32)  # sorted descending (pack_padded)
    time_mask = jnp.arange(T)[None, :] < x_len[:, None]
    x_ids = jnp.where(time_mask, x_ids, 0)          # padded positions use padding_idx

    packed_lstm, packed_fc = pack_params(emb_table, lstm_params, fc_w, fc_b, HIDDEN)

    logits = text_bilstm_forward(x_ids, x_len, packed_lstm, packed_fc)
    logits = jax.block_until_ready(logits)

    ref = reference_forward(x_ids, x_len, emb_table, lstm_params, fc_w, fc_b)
    max_diff = float(jnp.max(jnp.abs(logits - ref)))
    if max_diff > 1e-3:
        raise AssertionError(f"Pallas kernel mismatch vs reference: {max_diff}")

    print("KERNEL_OK")
</pallas_src>

<mosaic_0001>
module attributes {stable_mosaic.version = 11 : i64} {
  func.func @kernel(%arg0: memref<16x1xi32, #tpu.memory_space<vmem>>, %arg1: memref<2x1xi32, #tpu.memory_space<vmem>>, %arg2: memref<128x256xf32, #tpu.memory_space<vmem>>, %arg3: memref<64x256xf32, #tpu.memory_space<vmem>>, %arg4: memref<32x256xf32, #tpu.memory_space<vmem>>, %arg5: memref<32x256xf32, #tpu.memory_space<vmem>>, %arg6: memref<64x256xf32, #tpu.memory_space<vmem>>, %arg7: memref<1x256xf32, #tpu.memory_space<vmem>>, %arg8: memref<64x4xf32, #tpu.memory_space<vmem>>, %arg9: memref<1x4xf32, #tpu.memory_space<vmem>>, %arg10: memref<2x4xf32, #tpu.memory_space<vmem>>, %arg11: memref<16x32xf32, #tpu.memory_space<vmem>>, %arg12: memref<16x32xf32, #tpu.memory_space<vmem>>) attributes {dimension_semantics = [], scalar_prefetch = 0 : i64, scratch_operands = 2 : i64, tpu.core_type = #tpu.core_type<tc>} {
    %c0 = arith.constant 0 : index
    %c0_0 = arith.constant 0 : index
    %0 = vector.load %arg1[%c0, %c0_0] : memref<2x1xi32, #tpu.memory_space<vmem>>, vector<2x1xi32>
    %1 = tpu.iota {dimensions = array<i32: 1>} : vector<1x256xi32>
    %c64_i32 = arith.constant 64 : i32
    %c0_i32 = arith.constant 0 : i32
    %2 = arith.cmpi eq, %c64_i32, %c0_i32 : i32
    %c1_i32 = arith.constant 1 : i32
    %3 = arith.select %2, %c1_i32, %c64_i32 : i32
    %4 = vector.broadcast %3 : i32 to vector<1x256xi32>
    %5 = arith.remsi %1, %4 : vector<1x256xi32>
    %c0_i32_1 = arith.constant 0 : i32
    %6 = vector.broadcast %c0_i32_1 : i32 to vector<1x256xi32>
    %7 = arith.cmpi ne, %5, %6 : vector<1x256xi32>
    %c0_i32_2 = arith.constant 0 : i32
    %8 = vector.broadcast %c0_i32_2 : i32 to vector<1x256xi32>
    %9 = arith.cmpi slt, %5, %8 : vector<1x256xi32>
    %c0_i32_3 = arith.constant 0 : i32
    %10 = arith.cmpi slt, %3, %c0_i32_3 : i32
    %11 = vector.broadcast %10 : i1 to vector<1x256xi1>
    %12 = vector.broadcast %11 : vector<1x256xi1> to vector<1x256xi1>
    %13 = arith.xori %9, %12 : vector<1x256xi1>
    %14 = arith.andi %13, %7 : vector<1x256xi1>
    %15 = vector.broadcast %3 : i32 to vector<1x256xi32>
    %16 = arith.addi %5, %15 : vector<1x256xi32>
    %17 = arith.select %14, %16, %5 : vector<1x256xi1>, vector<1x256xi32>
    %c32_i32 = arith.constant 32 : i32
    %18 = vector.broadcast %c32_i32 : i32 to vector<1x256xi32>
    %19 = arith.cmpi slt, %17, %18 : vector<1x256xi32>
    %20 = vector.shape_cast %19 : vector<1x256xi1> to vector<1x256xi1>
    %21 = vector.broadcast %20 : vector<1x256xi1> to vector<2x256xi1>
    %22 = tpu.iota {dimensions = array<i32: 1>} : vector<1x64xi32>
    %c32_i32_4 = arith.constant 32 : i32
    %23 = vector.broadcast %c32_i32_4 : i32 to vector<1x64xi32>
    %24 = arith.cmpi slt, %22, %23 : vector<1x64xi32>
    %c0_i32_5 = arith.constant 0 : i32
    %c7_i32 = arith.constant 7 : i32
    %25 = vector.broadcast %c0_i32_5 : i32 to vector<1x64xi32>
    %26 = vector.broadcast %c7_i32 : i32 to vector<1x64xi32>
    %27 = arith.select %24, %25, %26 : vector<1x64xi1>, vector<1x64xi32>
    %28 = vector.broadcast %0 : vector<2x1xi32> to vector<2x64xi32>
    %29 = vector.broadcast %27 : vector<1x64xi32> to vector<2x64xi32>
    %30 = arith.cmpi sgt, %28, %29 : vector<2x64xi32>
    %c1_i32_6 = arith.constant 1 : i32
    %c6_i32 = arith.constant 6 : i32
    %31 = vector.broadcast %c1_i32_6 : i32 to vector<1x64xi32>
    %32 = vector.broadcast %c6_i32 : i32 to vector<1x64xi32>
    %33 = arith.select %24, %31, %32 : vector<1x64xi1>, vector<1x64xi32>
    %34 = vector.broadcast %0 : vector<2x1xi32> to vector<2x64xi32>
    %35 = vector.broadcast %33 : vector<1x64xi32> to vector<2x64xi32>
    %36 = arith.cmpi sgt, %34, %35 : vector<2x64xi32>
    %c2_i32 = arith.constant 2 : i32
    %c5_i32 = arith.constant 5 : i32
    %37 = vector.broadcast %c2_i32 : i32 to vector<1x64xi32>
    %38 = vector.broadcast %c5_i32 : i32 to vector<1x64xi32>
    %39 = arith.select %24, %37, %38 : vector<1x64xi1>, vector<1x64xi32>
    %40 = vector.broadcast %0 : vector<2x1xi32> to vector<2x64xi32>
    %41 = vector.broadcast %39 : vector<1x64xi32> to vector<2x64xi32>
    %42 = arith.cmpi sgt, %40, %41 : vector<2x64xi32>
    %c3_i32 = arith.constant 3 : i32
    %c4_i32 = arith.constant 4 : i32
    %43 = vector.broadcast %c3_i32 : i32 to vector<1x64xi32>
    %44 = vector.broadcast %c4_i32 : i32 to vector<1x64xi32>
    %45 = arith.select %24, %43, %44 : vector<1x64xi1>, vector<1x64xi32>
    %46 = vector.broadcast %0 : vector<2x1xi32> to vector<2x64xi32>
    %47 = vector.broadcast %45 : vector<1x64xi32> to vector<2x64xi32>
    %48 = arith.cmpi sgt, %46, %47 : vector<2x64xi32>
    %c4_i32_7 = arith.constant 4 : i32
    %c3_i32_8 = arith.constant 3 : i32
    %49 = vector.broadcast %c4_i32_7 : i32 to vector<1x64xi32>
    %50 = vector.broadcast %c3_i32_8 : i32 to vector<1x64xi32>
    %51 = arith.select %24, %49, %50 : vector<1x64xi1>, vector<1x64xi32>
    %52 = vector.broadcast %0 : vector<2x1xi32> to vector<2x64xi32>
    %53 = vector.broadcast %51 : vector<1x64xi32> to vector<2x64xi32>
    %54 = arith.cmpi sgt, %52, %53 : vector<2x64xi32>
    %c5_i32_9 = arith.constant 5 : i32
    %c2_i32_10 = arith.constant 2 : i32
    %55 = vector.broadcast %c5_i32_9 : i32 to vector<1x64xi32>
    %56 = vector.broadcast %c2_i32_10 : i32 to vector<1x64xi32>
    %57 = arith.select %24, %55, %56 : vector<1x64xi1>, vector<1x64xi32>
    %58 = vector.broadcast %0 : vector<2x1xi32> to vector<2x64xi32>
    %59 = vector.broadcast %57 : vector<1x64xi32> to vector<2x64xi32>
    %60 = arith.cmpi sgt, %58, %59 : vector<2x64xi32>
    %c6_i32_11 = arith.constant 6 : i32
    %c1_i32_12 = arith.constant 1 : i32
    %61 = vector.broadcast %c6_i32_11 : i32 to vector<1x64xi32>
    %62 = vector.broadcast %c1_i32_12 : i32 to vector<1x64xi32>
    %63 = arith.select %24, %61, %62 : vector<1x64xi1>, vector<1x64xi32>
    %64 = vector.broadcast %0 : vector<2x1xi32> to vector<2x64xi32>
    %65 = vector.broadcast %63 : vector<1x64xi32> to vector<2x64xi32>
    %66 = arith.cmpi sgt, %64, %65 : vector<2x64xi32>
    %c7_i32_13 = arith.constant 7 : i32
    %c0_i32_14 = arith.constant 0 : i32
    %67 = vector.broadcast %c7_i32_13 : i32 to vector<1x64xi32>
    %68 = vector.broadcast %c0_i32_14 : i32 to vector<1x64xi32>
    %69 = arith.select %24, %67, %68 : vector<1x64xi1>, vector<1x64xi32>
    %70 = vector.broadcast %0 : vector<2x1xi32> to vector<2x64xi32>
    %71 = vector.broadcast %69 : vector<1x64xi32> to vector<2x64xi32>
    %72 = arith.cmpi sgt, %70, %71 : vector<2x64xi32>
    %cst = arith.constant 0.000000e+00 : f32
    %73 = vector.broadcast %cst : f32 to vector<2x64xf32>
    %74 = tpu.iota {dimensions = array<i32: 1>} : vector<16x128xi32>
    %c0_15 = arith.constant 0 : index
    %c0_16 = arith.constant 0 : index
    %75 = vector.load %arg0[%c0_15, %c0_16] : memref<16x1xi32, #tpu.memory_space<vmem>>, vector<16x1xi32>
    %76 = vector.broadcast %75 : vector<16x1xi32> to vector<16x128xi32>
    %77 = arith.cmpi eq, %76, %74 : vector<16x128xi32>
    %cst_17 = arith.constant 1.000000e+00 : f32
    %cst_18 = arith.constant 0.000000e+00 : f32
    %78 = vector.broadcast %cst_17 : f32 to vector<16x128xf32>
    %79 = vector.broadcast %cst_18 : f32 to vector<16x128xf32>
    %80 = arith.select %77, %78, %79 : vector<16x128xi1>, vector<16x128xf32>
    %c0_19 = arith.constant 0 : index
    %c0_20 = arith.constant 0 : index
    %81 = vector.load %arg2[%c0_19, %c0_20] : memref<128x256xf32, #tpu.memory_space<vmem>>, vector<128x256xf32>
    %cst_21 = arith.constant dense<0.000000e+00> : vector<16x256xf32>
    %82 = tpu.matmul %80, %81, %cst_21 {dimension_numbers = #tpu.dot_dimension_numbers<[1], [0], [0], [1], [0, 0, 1, 1], [], []>} : vector<16x128xf32>, vector<128x256xf32>, vector<16x256xf32> -> vector<16x256xf32>
    %c0_22 = arith.constant 0 : index
    %c0_23 = arith.constant 0 : index
    %83 = vector.load %arg3[%c0_22, %c0_23] : memref<64x256xf32, #tpu.memory_space<vmem>>, vector<64x256xf32>
    %84 = vector.extract_strided_slice %82 {offsets = [0, 0], sizes = [2, 256], strides = [1, 1]} : vector<16x256xf32> to vector<2x256xf32>
    %85 = vector.extract_strided_slice %82 {offsets = [14, 0], sizes = [2, 256], strides = [1, 1]} : vector<16x256xf32> to vector<2x256xf32>
    %86 = arith.select %21, %84, %85 : vector<2x256xi1>, vector<2x256xf32>
    %cst_24 = arith.constant dense<0.000000e+00> : vector<2x256xf32>
    %87 = tpu.matmul %73, %83, %cst_24 {dimension_numbers = #tpu.dot_dimension_numbers<[1], [0], [0], [1], [0, 0, 1, 1], [], []>} : vector<2x64xf32>, vector<64x256xf32>, vector<2x256xf32> -> vector<2x256xf32>
    %88 = arith.addf %86, %87 : vector<2x256xf32>
    %89 = vector.extract_strided_slice %88 {offsets = [0, 0], sizes = [2, 192], strides = [1, 1]} : vector<2x256xf32> to vector<2x192xf32>
    %90 = arith.negf %89 : vector<2x192xf32>
    %91 = math.exp %90 : vector<2x192xf32>
    %cst_25 = arith.constant 1.000000e+00 : f32
    %92 = vector.broadcast %cst_25 : f32 to vector<2x192xf32>
    %93 = arith.addf %92, %91 : vector<2x192xf32>
    %94 = arith.divf %92, %93 : vector<2x192xf32>
    %95 = vector.extract_strided_slice %88 {offsets = [0, 192], sizes = [2, 64], strides = [1, 1]} : vector<2x256xf32> to vector<2x64xf32>
    %96 = math.tanh %95 : vector<2x64xf32>
    %97 = vector.extract_strided_slice %94 {offsets = [0, 64], sizes = [2, 64], strides = [1, 1]} : vector<2x192xf32> to vector<2x64xf32>
    %98 = arith.mulf %97, %73 : vector<2x64xf32>
    %99 = vector.extract_strided_slice %94 {offsets = [0, 0], sizes = [2, 64], strides = [1, 1]} : vector<2x192xf32> to vector<2x64xf32>
    %100 = arith.mulf %99, %96 : vector<2x64xf32>
    %101 = arith.addf %98, %100 : vector<2x64xf32>
    %102 = vector.extract_strided_slice %94 {offsets = [0, 128], sizes = [2, 64], strides = [1, 1]} : vector<2x192xf32> to vector<2x64xf32>
    %103 = math.tanh %101 : vector<2x64xf32>
    %104 = arith.mulf %102, %103 : vector<2x64xf32>
    %105 = arith.select %30, %104, %73 : vector<2x64xi1>, vector<2x64xf32>
    %106 = arith.select %30, %104, %73 : vector<2x64xi1>, vector<2x64xf32>
    %107 = arith.select %30, %101, %73 : vector<2x64xi1>, vector<2x64xf32>
    %108 = vector.extract_strided_slice %105 {offsets = [0, 0], sizes = [2, 32], strides = [1, 1]} : vector<2x64xf32> to vector<2x32xf32>
    %c0_26 = arith.constant 0 : index
    %c0_27 = arith.constant 0 : index
    %109 = vector.load %arg11[%c0_26, %c0_27] : memref<16x32xf32, #tpu.memory_space<vmem>>, vector<2x32xf32>
    tpu.vector_store %arg11[%c0_26, %c0_27], %108 {strides = array<i32>} : memref<16x32xf32, #tpu.memory_space<vmem>>, vector<2x32xf32>,
    %110 = vector.extract_strided_slice %105 {offsets = [0, 32], sizes = [2, 32], strides = [1, 1]} : vector<2x64xf32> to vector<2x32xf32>
    %c14 = arith.constant 14 : index
    %c0_28 = arith.constant 0 : index
    %111 = vector.load %arg12[%c14, %c0_28] : memref<16x32xf32, #tpu.memory_space<vmem>>, vector<2x32xf32>
    tpu.vector_store %arg12[%c14, %c0_28], %110 {strides = array<i32>} : memref<16x32xf32, #tpu.memory_space<vmem>>, vector<2x32xf32>,
    %112 = vector.extract_strided_slice %82 {offsets = [2, 0], sizes = [2, 256], strides = [1, 1]} : vector<16x256xf32> to vector<2x256xf32>
    %113 = vector.extract_strided_slice %82 {offsets = [12, 0], sizes = [2, 256], strides = [1, 1]} : vector<16x256xf32> to vector<2x256xf32>
    %114 = arith.select %21, %112, %113 : vector<2x256xi1>, vector<2x256xf32>
    %cst_29 = arith.constant dense<0.000000e+00> : vector<2x256xf32>
    %115 = tpu.matmul %106, %83, %cst_29 {dimension_numbers = #tpu.dot_dimension_numbers<[1], [0], [0], [1], [0, 0, 1, 1], [], []>} : vector<2x64xf32>, vector<64x256xf32>, vector<2x256xf32> -> vector<2x256xf32>
    %116 = arith.addf %114, %115 : vector<2x256xf32>
    %117 = vector.extract_strided_slice %116 {offsets = [0, 0], sizes = [2, 192], strides = [1, 1]} : vector<2x256xf32> to vector<2x192xf32>
    %118 = arith.negf %117 : vector<2x192xf32>
    %119 = math.exp %118 : vector<2x192xf32>
    %cst_30 = arith.constant 1.000000e+00 : f32
    %120 = vector.broadcast %cst_30 : f32 to vector<2x192xf32>
    %121 = arith.addf %120, %119 : vector<2x192xf32>
    %122 = arith.divf %120, %121 : vector<2x192xf32>
    %123 = vector.extract_strided_slice %116 {offsets = [0, 192], sizes = [2, 64], strides = [1, 1]} : vector<2x256xf32> to vector<2x64xf32>
    %124 = math.tanh %123 : vector<2x64xf32>
    %125 = vector.extract_strided_slice %122 {offsets = [0, 64], sizes = [2, 64], strides = [1, 1]} : vector<2x192xf32> to vector<2x64xf32>
    %126 = arith.mulf %125, %107 : vector<2x64xf32>
    %127 = vector.extract_strided_slice %122 {offsets = [0, 0], sizes = [2, 64], strides = [1, 1]} : vector<2x192xf32> to vector<2x64xf32>
    %128 = arith.mulf %127, %124 : vector<2x64xf32>
    %129 = arith.addf %126, %128 : vector<2x64xf32>
    %130 = vector.extract_strided_slice %122 {offsets = [0, 128], sizes = [2, 64], strides = [1, 1]} : vector<2x192xf32> to vector<2x64xf32>
    %131 = math.tanh %129 : vector<2x64xf32>
    %132 = arith.mulf %130, %131 : vector<2x64xf32>
    %133 = arith.select %36, %132, %73 : vector<2x64xi1>, vector<2x64xf32>
    %134 = arith.select %36, %132, %106 : vector<2x64xi1>, vector<2x64xf32>
    %135 = arith.select %36, %129, %107 : vector<2x64xi1>, vector<2x64xf32>
    %136 = vector.extract_strided_slice %133 {offsets = [0, 0], sizes = [2, 32], strides = [1, 1]} : vector<2x64xf32> to vector<2x32xf32>
    %c2 = arith.constant 2 : index
    %c0_31 = arith.constant 0 : index
    %137 = vector.load %arg11[%c2, %c0_31] : memref<16x32xf32, #tpu.memory_space<vmem>>, vector<2x32xf32>
    tpu.vector_store %arg11[%c2, %c0_31], %136 {strides = array<i32>} : memref<16x32xf32, #tpu.memory_space<vmem>>, vector<2x32xf32>,
    %138 = vector.extract_strided_slice %133 {offsets = [0, 32], sizes = [2, 32], strides = [1, 1]} : vector<2x64xf32> to vector<2x32xf32>
    %c12 = arith.constant 12 : index
    %c0_32 = arith.constant 0 : index
    %139 = vector.load %arg12[%c12, %c0_32] : memref<16x32xf32, #tpu.memory_space<vmem>>, vector<2x32xf32>
    tpu.vector_store %arg12[%c12, %c0_32], %138 {strides = array<i32>} : memref<16x32xf32, #tpu.memory_space<vmem>>, vector<2x32xf32>,
    %140 = vector.extract_strided_slice %82 {offsets = [4, 0], sizes = [2, 256], strides = [1, 1]} : vector<16x256xf32> to vector<2x256xf32>
    %141 = vector.extract_strided_slice %82 {offsets = [10, 0], sizes = [2, 256], strides = [1, 1]} : vector<16x256xf32> to vector<2x256xf32>
    %142 = arith.select %21, %140, %141 : vector<2x256xi1>, vector<2x256xf32>
    %cst_33 = arith.constant dense<0.000000e+00> : vector<2x256xf32>
    %143 = tpu.matmul %134, %83, %cst_33 {dimension_numbers = #tpu.dot_dimension_numbers<[1], [0], [0], [1], [0, 0, 1, 1], [], []>} : vector<2x64xf32>, vector<64x256xf32>, vector<2x256xf32> -> vector<2x256xf32>
    %144 = arith.addf %142, %143 : vector<2x256xf32>
    %145 = vector.extract_strided_slice %144 {offsets = [0, 0], sizes = [2, 192], strides = [1, 1]} : vector<2x256xf32> to vector<2x192xf32>
    %146 = arith.negf %145 : vector<2x192xf32>
    %147 = math.exp %146 : vector<2x192xf32>
    %cst_34 = arith.constant 1.000000e+00 : f32
    %148 = vector.broadcast %cst_34 : f32 to vector<2x192xf32>
    %149 = arith.addf %148, %147 : vector<2x192xf32>
    %150 = arith.divf %148, %149 : vector<2x192xf32>
    %151 = vector.extract_strided_slice %144 {offsets = [0, 192], sizes = [2, 64], strides = [1, 1]} : vector<2x256xf32> to vector<2x64xf32>
    %152 = math.tanh %151 : vector<2x64xf32>
    %153 = vector.extract_strided_slice %150 {offsets = [0, 64], sizes = [2, 64], strides = [1, 1]} : vector<2x192xf32> to vector<2x64xf32>
    %154 = arith.mulf %153, %135 : vector<2x64xf32>
    %155 = vector.extract_strided_slice %150 {offsets = [0, 0], sizes = [2, 64], strides = [1, 1]} : vector<2x192xf32> to vector<2x64xf32>
    %156 = arith.mulf %155, %152 : vector<2x64xf32>
    %157 = arith.addf %154, %156 : vector<2x64xf32>
    %158 = vector.extract_strided_slice %150 {offsets = [0, 128], sizes = [2, 64], strides = [1, 1]} : vector<2x192xf32> to vector<2x64xf32>
    %159 = math.tanh %157 : vector<2x64xf32>
    %160 = arith.mulf %158, %159 : vector<2x64xf32>
    %161 = arith.select %42, %160, %73 : vector<2x64xi1>, vector<2x64xf32>
    %162 = arith.select %42, %160, %134 : vector<2x64xi1>, vector<2x64xf32>
    %163 = arith.select %42, %157, %135 : vector<2x64xi1>, vector<2x64xf32>
    %164 = vector.extract_strided_slice %161 {offsets = [0, 0], sizes = [2, 32], strides = [1, 1]} : vector<2x64xf32> to vector<2x32xf32>
    %c4 = arith.constant 4 : index
    %c0_35 = arith.constant 0 : index
    %165 = vector.load %arg11[%c4, %c0_35] : memref<16x32xf32, #tpu.memory_space<vmem>>, vector<2x32xf32>
    tpu.vector_store %arg11[%c4, %c0_35], %164 {strides = array<i32>} : memref<16x32xf32, #tpu.memory_space<vmem>>, vector<2x32xf32>,
    %166 = vector.extract_strided_slice %161 {offsets = [0, 32], sizes = [2, 32], strides = [1, 1]} : vector<2x64xf32> to vector<2x32xf32>
    %c10 = arith.constant 10 : index
    %c0_36 = arith.constant 0 : index
    %167 = vector.load %arg12[%c10, %c0_36] : memref<16x32xf32, #tpu.memory_space<vmem>>, vector<2x32xf32>
    tpu.vector_store %arg12[%c10, %c0_36], %166 {strides = array<i32>} : memref<16x32xf32, #tpu.memory_space<vmem>>, vector<2x32xf32>,
    %168 = vector.extract_strided_slice %82 {offsets = [6, 0], sizes = [2, 256], strides = [1, 1]} : vector<16x256xf32> to vector<2x256xf32>
    %169 = vector.extract_strided_slice %82 {offsets = [8, 0], sizes = [2, 256], strides = [1, 1]} : vector<16x256xf32> to vector<2x256xf32>
    %170 = arith.select %21, %168, %169 : vector<2x256xi1>, vector<2x256xf32>
    %cst_37 = arith.constant dense<0.000000e+00> : vector<2x256xf32>
    %171 = tpu.matmul %162, %83, %cst_37 {dimension_numbers = #tpu.dot_dimension_numbers<[1], [0], [0], [1], [0, 0, 1, 1], [], []>} : vector<2x64xf32>, vector<64x256xf32>, vector<2x256xf32> -> vector<2x256xf32>
    %172 = arith.addf %170, %171 : vector<2x256xf32>
    %173 = vector.extract_strided_slice %172 {offsets = [0, 0], sizes = [2, 192], strides = [1, 1]} : vector<2x256xf32> to vector<2x192xf32>
    %174 = arith.negf %173 : vector<2x192xf32>
    %175 = math.exp %174 : vector<2x192xf32>
    %cst_38 = arith.constant 1.000000e+00 : f32
    %176 = vector.broadcast %cst_38 : f32 to vector<2x192xf32>
    %177 = arith.addf %176, %175 : vector<2x192xf32>
    %178 = arith.divf %176, %177 : vector<2x192xf32>
    %179 = vector.extract_strided_slice %172 {offsets = [0, 192], sizes = [2, 64], strides = [1, 1]} : vector<2x256xf32> to vector<2x64xf32>
    %180 = math.tanh %179 : vector<2x64xf32>
    %181 = vector.extract_strided_slice %178 {offsets = [0, 64], sizes = [2, 64], strides = [1, 1]} : vector<2x192xf32> to vector<2x64xf32>
    %182 = arith.mulf %181, %163 : vector<2x64xf32>
    %183 = vector.extract_strided_slice %178 {offsets = [0, 0], sizes = [2, 64], strides = [1, 1]} : vector<2x192xf32> to vector<2x64xf32>
    %184 = arith.mulf %183, %180 : vector<2x64xf32>
    %185 = arith.addf %182, %184 : vector<2x64xf32>
    %186 = vector.extract_strided_slice %178 {offsets = [0, 128], sizes = [2, 64], strides = [1, 1]} : vector<2x192xf32> to vector<2x64xf32>
    %187 = math.tanh %185 : vector<2x64xf32>
    %188 = arith.mulf %186, %187 : vector<2x64xf32>
    %189 = arith.select %48, %188, %73 : vector<2x64xi1>, vector<2x64xf32>
    %190 = arith.select %48, %188, %162 : vector<2x64xi1>, vector<2x64xf32>
    %191 = arith.select %48, %185, %163 : vector<2x64xi1>, vector<2x64xf32>
    %192 = vector.extract_strided_slice %189 {offsets = [0, 0], sizes = [2, 32], strides = [1, 1]} : vector<2x64xf32> to vector<2x32xf32>
    %c6 = arith.constant 6 : index
    %c0_39 = arith.constant 0 : index
    %193 = vector.load %arg11[%c6, %c0_39] : memref<16x32xf32, #tpu.memory_space<vmem>>, vector<2x32xf32>
    tpu.vector_store %arg11[%c6, %c0_39], %192 {strides = array<i32>} : memref<16x32xf32, #tpu.memory_space<vmem>>, vector<2x32xf32>,
    %194 = vector.extract_strided_slice %189 {offsets = [0, 32], sizes = [2, 32], strides = [1, 1]} : vector<2x64xf32> to vector<2x32xf32>
    %c8 = arith.constant 8 : index
    %c0_40 = arith.constant 0 : index
    %195 = vector.load %arg12[%c8, %c0_40] : memref<16x32xf32, #tpu.memory_space<vmem>>, vector<2x32xf32>
    tpu.vector_store %arg12[%c8, %c0_40], %194 {strides = array<i32>} : memref<16x32xf32, #tpu.memory_space<vmem>>, vector<2x32xf32>,
    %196 = vector.extract_strided_slice %82 {offsets = [8, 0], sizes = [2, 256], strides = [1, 1]} : vector<16x256xf32> to vector<2x256xf32>
    %197 = vector.extract_strided_slice %82 {offsets = [6, 0], sizes = [2, 256], strides = [1, 1]} : vector<16x256xf32> to vector<2x256xf32>
    %198 = arith.select %21, %196, %197 : vector<2x256xi1>, vector<2x256xf32>
    %cst_41 = arith.constant dense<0.000000e+00> : vector<2x256xf32>
    %199 = tpu.matmul %190, %83, %cst_41 {dimension_numbers = #tpu.dot_dimension_numbers<[1], [0], [0], [1], [0, 0, 1, 1], [], []>} : vector<2x64xf32>, vector<64x256xf32>, vector<2x256xf32> -> vector<2x256xf32>
    %200 = arith.addf %198, %199 : vector<2x256xf32>
    %201 = vector.extract_strided_slice %200 {offsets = [0, 0], sizes = [2, 192], strides = [1, 1]} : vector<2x256xf32> to vector<2x192xf32>
    %202 = arith.negf %201 : vector<2x192xf32>
    %203 = math.exp %202 : vector<2x192xf32>
    %cst_42 = arith.constant 1.000000e+00 : f32
    %204 = vector.broadcast %cst_42 : f32 to vector<2x192xf32>
    %205 = arith.addf %204, %203 : vector<2x192xf32>
    %206 = arith.divf %204, %205 : vector<2x192xf32>
    %207 = vector.extract_strided_slice %200 {offsets = [0, 192], sizes = [2, 64], strides = [1, 1]} : vector<2x256xf32> to vector<2x64xf32>
    %208 = math.tanh %207 : vector<2x64xf32>
    %209 = vector.extract_strided_slice %206 {offsets = [0, 64], sizes = [2, 64], strides = [1, 1]} : vector<2x192xf32> to vector<2x64xf32>
    %210 = arith.mulf %209, %191 : vector<2x64xf32>
    %211 = vector.extract_strided_slice %206 {offsets = [0, 0], sizes = [2, 64], strides = [1, 1]} : vector<2x192xf32> to vector<2x64xf32>
    %212 = arith.mulf %211, %208 : vector<2x64xf32>
    %213 = arith.addf %210, %212 : vector<2x64xf32>
    %214 = vector.extract_strided_slice %206 {offsets = [0, 128], sizes = [2, 64], strides = [1, 1]} : vector<2x192xf32> to vector<2x64xf32>
    %215 = math.tanh %213 : vector<2x64xf32>
    %216 = arith.mulf %214, %215 : vector<2x64xf32>
    %217 = arith.select %54, %216, %73 : vector<2x64xi1>, vector<2x64xf32>
    %218 = arith.select %54, %216, %190 : vector<2x64xi1>, vector<2x64xf32>
    %219 = arith.select %54, %213, %191 : vector<2x64xi1>, vector<2x64xf32>
    %220 = vector.extract_strided_slice %217 {offsets = [0, 0], sizes = [2, 32], strides = [1, 1]} : vector<2x64xf32> to vector<2x32xf32>
    %c8_43 = arith.constant 8 : index
    %c0_44 = arith.constant 0 : index
    %221 = vector.load %arg11[%c8_43, %c0_44] : memref<16x32xf32, #tpu.memory_space<vmem>>, vector<2x32xf32>
    tpu.vector_store %arg11[%c8_43, %c0_44], %220 {strides = array<i32>} : memref<16x32xf32, #tpu.memory_space<vmem>>, vector<2x32xf32>,
    %222 = vector.extract_strided_slice %217 {offsets = [0, 32], sizes = [2, 32], strides = [1, 1]} : vector<2x64xf32> to vector<2x32xf32>
    %c6_45 = arith.constant 6 : index
    %c0_46 = arith.constant 0 : index
    %223 = vector.load %arg12[%c6_45, %c0_46] : memref<16x32xf32, #tpu.memory_space<vmem>>, vector<2x32xf32>
    tpu.vector_store %arg12[%c6_45, %c0_46], %222 {strides = array<i32>} : memref<16x32xf32, #tpu.memory_space<vmem>>, vector<2x32xf32>,
    %224 = vector.extract_strided_slice %82 {offsets = [10, 0], sizes = [2, 256], strides = [1, 1]} : vector<16x256xf32> to vector<2x256xf32>
    %225 = vector.extract_strided_slice %82 {offsets = [4, 0], sizes = [2, 256], strides = [1, 1]} : vector<16x256xf32> to vector<2x256xf32>
    %226 = arith.select %21, %224, %225 : vector<2x256xi1>, vector<2x256xf32>
    %cst_47 = arith.constant dense<0.000000e+00> : vector<2x256xf32>
    %227 = tpu.matmul %218, %83, %cst_47 {dimension_numbers = #tpu.dot_dimension_numbers<[1], [0], [0], [1], [0, 0, 1, 1], [], []>} : vector<2x64xf32>, vector<64x256xf32>, vector<2x256xf32> -> vector<2x256xf32>
    %228 = arith.addf %226, %227 : vector<2x256xf32>
    %229 = vector.extract_strided_slice %228 {offsets = [0, 0], sizes = [2, 192], strides = [1, 1]} : vector<2x256xf32> to vector<2x192xf32>
    %230 = arith.negf %229 : vector<2x192xf32>
    %231 = math.exp %230 : vector<2x192xf32>
    %cst_48 = arith.constant 1.000000e+00 : f32
    %232 = vector.broadcast %cst_48 : f32 to vector<2x192xf32>
    %233 = arith.addf %232, %231 : vector<2x192xf32>
    %234 = arith.divf %232, %233 : vector<2x192xf32>
    %235 = vector.extract_strided_slice %228 {offsets = [0, 192], sizes = [2, 64], strides = [1, 1]} : vector<2x256xf32> to vector<2x64xf32>
    %236 = math.tanh %235 : vector<2x64xf32>
    %237 = vector.extract_strided_slice %234 {offsets = [0, 64], sizes = [2, 64], strides = [1, 1]} : vector<2x192xf32> to vector<2x64xf32>
    %238 = arith.mulf %237, %219 : vector<2x64xf32>
    %239 = vector.extract_strided_slice %234 {offsets = [0, 0], sizes = [2, 64], strides = [1, 1]} : vector<2x192xf32> to vector<2x64xf32>
    %240 = arith.mulf %239, %236 : vector<2x64xf32>
    %241 = arith.addf %238, %240 : vector<2x64xf32>
    %242 = vector.extract_strided_slice %234 {offsets = [0, 128], sizes = [2, 64], strides = [1, 1]} : vector<2x192xf32> to vector<2x64xf32>
    %243 = math.tanh %241 : vector<2x64xf32>
    %244 = arith.mulf %242, %243 : vector<2x64xf32>
    %245 = arith.select %60, %244, %73 : vector<2x64xi1>, vector<2x64xf32>
    %246 = arith.select %60, %244, %218 : vector<2x64xi1>, vector<2x64xf32>
    %247 = arith.select %60, %241, %219 : vector<2x64xi1>, vector<2x64xf32>
    %248 = vector.extract_strided_slice %245 {offsets = [0, 0], sizes = [2, 32], strides = [1, 1]} : vector<2x64xf32> to vector<2x32xf32>
    %c10_49 = arith.constant 10 : index
    %c0_50 = arith.constant 0 : index
    %249 = vector.load %arg11[%c10_49, %c0_50] : memref<16x32xf32, #tpu.memory_space<vmem>>, vector<2x32xf32>
    tpu.vector_store %arg11[%c10_49, %c0_50], %248 {strides = array<i32>} : memref<16x32xf32, #tpu.memory_space<vmem>>, vector<2x32xf32>,
    %250 = vector.extract_strided_slice %245 {offsets = [0, 32], sizes = [2, 32], strides = [1, 1]} : vector<2x64xf32> to vector<2x32xf32>
    %c4_51 = arith.constant 4 : index
    %c0_52 = arith.constant 0 : index
    %251 = vector.load %arg12[%c4_51, %c0_52] : memref<16x32xf32, #tpu.memory_space<vmem>>, vector<2x32xf32>
    tpu.vector_store %arg12[%c4_51, %c0_52], %250 {strides = array<i32>} : memref<16x32xf32, #tpu.memory_space<vmem>>, vector<2x32xf32>,
    %252 = vector.extract_strided_slice %82 {offsets = [12, 0], sizes = [2, 256], strides = [1, 1]} : vector<16x256xf32> to vector<2x256xf32>
    %253 = vector.extract_strided_slice %82 {offsets = [2, 0], sizes = [2, 256], strides = [1, 1]} : vector<16x256xf32> to vector<2x256xf32>
    %254 = arith.select %21, %252, %253 : vector<2x256xi1>, vector<2x256xf32>
    %cst_53 = arith.constant dense<0.000000e+00> : vector<2x256xf32>
    %255 = tpu.matmul %246, %83, %cst_53 {dimension_numbers = #tpu.dot_dimension_numbers<[1], [0], [0], [1], [0, 0, 1, 1], [], []>} : vector<2x64xf32>, vector<64x256xf32>, vector<2x256xf32> -> vector<2x256xf32>
    %256 = arith.addf %254, %255 : vector<2x256xf32>
    %257 = vector.extract_strided_slice %256 {offsets = [0, 0], sizes = [2, 192], strides = [1, 1]} : vector<2x256xf32> to vector<2x192xf32>
    %258 = arith.negf %257 : vector<2x192xf32>
    %259 = math.exp %258 : vector<2x192xf32>
    %cst_54 = arith.constant 1.000000e+00 : f32
    %260 = vector.broadcast %cst_54 : f32 to vector<2x192xf32>
    %261 = arith.addf %260, %259 : vector<2x192xf32>
    %262 = arith.divf %260, %261 : vector<2x192xf32>
    %263 = vector.extract_strided_slice %256 {offsets = [0, 192], sizes = [2, 64], strides = [1, 1]} : vector<2x256xf32> to vector<2x64xf32>
    %264 = math.tanh %263 : vector<2x64xf32>
    %265 = vector.extract_strided_slice %262 {offsets = [0, 64], sizes = [2, 64], strides = [1, 1]} : vector<2x192xf32> to vector<2x64xf32>
    %266 = arith.mulf %265, %247 : vector<2x64xf32>
    %267 = vector.extract_strided_slice %262 {offsets = [0, 0], sizes = [2, 64], strides = [1, 1]} : vector<2x192xf32> to vector<2x64xf32>
    %268 = arith.mulf %267, %264 : vector<2x64xf32>
    %269 = arith.addf %266, %268 : vector<2x64xf32>
    %270 = vector.extract_strided_slice %262 {offsets = [0, 128], sizes = [2, 64], strides = [1, 1]} : vector<2x192xf32> to vector<2x64xf32>
    %271 = math.tanh %269 : vector<2x64xf32>
    %272 = arith.mulf %270, %271 : vector<2x64xf32>
    %273 = arith.select %66, %272, %73 : vector<2x64xi1>, vector<2x64xf32>
    %274 = arith.select %66, %272, %246 : vector<2x64xi1>, vector<2x64xf32>
    %275 = arith.select %66, %269, %247 : vector<2x64xi1>, vector<2x64xf32>
    %276 = vector.extract_strided_slice %273 {offsets = [0, 0], sizes = [2, 32], strides = [1, 1]} : vector<2x64xf32> to vector<2x32xf32>
    %c12_55 = arith.constant 12 : index
    %c0_56 = arith.constant 0 : index
    %277 = vector.load %arg11[%c12_55, %c0_56] : memref<16x32xf32, #tpu.memory_space<vmem>>, vector<2x32xf32>
    tpu.vector_store %arg11[%c12_55, %c0_56], %276 {strides = array<i32>} : memref<16x32xf32, #tpu.memory_space<vmem>>, vector<2x32xf32>,
    %278 = vector.extract_strided_slice %273 {offsets = [0, 32], sizes = [2, 32], strides = [1, 1]} : vector<2x64xf32> to vector<2x32xf32>
    %c2_57 = arith.constant 2 : index
    %c0_58 = arith.constant 0 : index
    %279 = vector.load %arg12[%c2_57, %c0_58] : memref<16x32xf32, #tpu.memory_space<vmem>>, vector<2x32xf32>
    tpu.vector_store %arg12[%c2_57, %c0_58], %278 {strides = array<i32>} : memref<16x32xf32, #tpu.memory_space<vmem>>, vector<2x32xf32>,
    %280 = vector.extract_strided_slice %82 {offsets = [14, 0], sizes = [2, 256], strides = [1, 1]} : vector<16x256xf32> to vector<2x256xf32>
    %281 = vector.extract_strided_slice %82 {offsets = [0, 0], sizes = [2, 256], strides = [1, 1]} : vector<16x256xf32> to vector<2x256xf32>
    %282 = arith.select %21, %280, %281 : vector<2x256xi1>, vector<2x256xf32>
    %cst_59 = arith.constant dense<0.000000e+00> : vector<2x256xf32>
    %283 = tpu.matmul %274, %83, %cst_59 {dimension_numbers = #tpu.dot_dimension_numbers<[1], [0], [0], [1], [0, 0, 1, 1], [], []>} : vector<2x64xf32>, vector<64x256xf32>, vector<2x256xf32> -> vector<2x256xf32>
    %284 = arith.addf %282, %283 : vector<2x256xf32>
    %285 = vector.extract_strided_slice %284 {offsets = [0, 0], sizes = [2, 192], strides = [1, 1]} : vector<2x256xf32> to vector<2x192xf32>
    %286 = arith.negf %285 : vector<2x192xf32>
    %287 = math.exp %286 : vector<2x192xf32>
    %cst_60 = arith.constant 1.000000e+00 : f32
    %288 = vector.broadcast %cst_60 : f32 to vector<2x192xf32>
    %289 = arith.addf %288, %287 : vector<2x192xf32>
    %290 = arith.divf %288, %289 : vector<2x192xf32>
    %291 = vector.extract_strided_slice %284 {offsets = [0, 192], sizes = [2, 64], strides = [1, 1]} : vector<2x256xf32> to vector<2x64xf32>
    %292 = math.tanh %291 : vector<2x64xf32>
    %293 = vector.extract_strided_slice %290 {offsets = [0, 64], sizes = [2, 64], strides = [1, 1]} : vector<2x192xf32> to vector<2x64xf32>
    %294 = arith.mulf %293, %275 : vector<2x64xf32>
    %295 = vector.extract_strided_slice %290 {offsets = [0, 0], sizes = [2, 64], strides = [1, 1]} : vector<2x192xf32> to vector<2x64xf32>
    %296 = arith.mulf %295, %292 : vector<2x64xf32>
    %297 = arith.addf %294, %296 : vector<2x64xf32>
    %298 = vector.extract_strided_slice %290 {offsets = [0, 128], sizes = [2, 64], strides = [1, 1]} : vector<2x192xf32> to vector<2x64xf32>
    %299 = math.tanh %297 : vector<2x64xf32>
    %300 = arith.mulf %298, %299 : vector<2x64xf32>
    %301 = arith.select %72, %300, %73 : vector<2x64xi1>, vector<2x64xf32>
    %302 = vector.extract_strided_slice %301 {offsets = [0, 0], sizes = [2, 32], strides = [1, 1]} : vector<2x64xf32> to vector<2x32xf32>
    %c14_61 = arith.constant 14 : index
    %c0_62 = arith.constant 0 : index
    %303 = vector.load %arg11[%c14_61, %c0_62] : memref<16x32xf32, #tpu.memory_space<vmem>>, vector<2x32xf32>
    tpu.vector_store %arg11[%c14_61, %c0_62], %302 {strides = array<i32>} : memref<16x32xf32, #tpu.memory_space<vmem>>, vector<2x32xf32>,
    %304 = vector.extract_strided_slice %301 {offsets = [0, 32], sizes = [2, 32], strides = [1, 1]} : vector<2x64xf32> to vector<2x32xf32>
    %c0_63 = arith.constant 0 : index
    %c0_64 = arith.constant 0 : index
    %305 = vector.load %arg12[%c0_63, %c0_64] : memref<16x32xf32, #tpu.memory_space<vmem>>, vector<2x32xf32>
    tpu.vector_store %arg12[%c0_63, %c0_64], %304 {strides = array<i32>} : memref<16x32xf32, #tpu.memory_space<vmem>>, vector<2x32xf32>,
    %c0_65 = arith.constant 0 : index
    %c0_66 = arith.constant 0 : index
    %306 = vector.load %arg11[%c0_65, %c0_66] : memref<16x32xf32, #tpu.memory_space<vmem>>, vector<16x32xf32>
    %c0_67 = arith.constant 0 : index
    %c0_68 = arith.constant 0 : index
    %307 = vector.load %arg4[%c0_67, %c0_68] : memref<32x256xf32, #tpu.memory_space<vmem>>, vector<32x256xf32>
    %cst_69 = arith.constant dense<0.000000e+00> : vector<16x256xf32>
    %308 = tpu.matmul %306, %307, %cst_69 {dimension_numbers = #tpu.dot_dimension_numbers<[1], [0], [0], [1], [0, 0, 1, 1], [], []>} : vector<16x32xf32>, vector<32x256xf32>, vector<16x256xf32> -> vector<16x256xf32>
    %c0_70 = arith.constant 0 : index
    %c0_71 = arith.constant 0 : index
    %309 = vector.load %arg12[%c0_70, %c0_71] : memref<16x32xf32, #tpu.memory_space<vmem>>, vector<16x32xf32>
    %c0_72 = arith.constant 0 : index
    %c0_73 = arith.constant 0 : index
    %310 = vector.load %arg5[%c0_72, %c0_73] : memref<32x256xf32, #tpu.memory_space<vmem>>, vector<32x256xf32>
    %cst_74 = arith.constant dense<0.000000e+00> : vector<16x256xf32>
    %311 = tpu.matmul %309, %310, %cst_74 {dimension_numbers = #tpu.dot_dimension_numbers<[1], [0], [0], [1], [0, 0, 1, 1], [], []>} : vector<16x32xf32>, vector<32x256xf32>, vector<16x256xf32> -> vector<16x256xf32>
    %312 = arith.addf %308, %311 : vector<16x256xf32>
    %c0_75 = arith.constant 0 : index
    %c0_76 = arith.constant 0 : index
    %313 = vector.load %arg7[%c0_75, %c0_76] : memref<1x256xf32, #tpu.memory_space<vmem>>, vector<1x256xf32>
    %314 = vector.broadcast %313 : vector<1x256xf32> to vector<16x256xf32>
    %315 = arith.addf %312, %314 : vector<16x256xf32>
    %c0_77 = arith.constant 0 : index
    %c0_78 = arith.constant 0 : index
    %316 = vector.load %arg6[%c0_77, %c0_78] : memref<64x256xf32, #tpu.memory_space<vmem>>, vector<64x256xf32>
    %317 = vector.extract_strided_slice %315 {offsets = [0, 0], sizes = [2, 256], strides = [1, 1]} : vector<16x256xf32> to vector<2x256xf32>
    %318 = vector.extract_strided_slice %315 {offsets = [14, 0], sizes = [2, 256], strides = [1, 1]} : vector<16x256xf32> to vector<2x256xf32>
    %319 = arith.select %21, %317, %318 : vector<2x256xi1>, vector<2x256xf32>
    %cst_79 = arith.constant dense<0.000000e+00> : vector<2x256xf32>
    %320 = tpu.matmul %73, %316, %cst_79 {dimension_numbers = #tpu.dot_dimension_numbers<[1], [0], [0], [1], [0, 0, 1, 1], [], []>} : vector<2x64xf32>, vector<64x256xf32>, vector<2x256xf32> -> vector<2x256xf32>
    %321 = arith.addf %319, %320 : vector<2x256xf32>
    %322 = vector.extract_strided_slice %321 {offsets = [0, 0], sizes = [2, 192], strides = [1, 1]} : vector<2x256xf32> to vector<2x192xf32>
    %323 = arith.negf %322 : vector<2x192xf32>
    %324 = math.exp %323 : vector<2x192xf32>
    %cst_80 = arith.constant 1.000000e+00 : f32
    %325 = vector.broadcast %cst_80 : f32 to vector<2x192xf32>
    %326 = arith.addf %325, %324 : vector<2x192xf32>
    %327 = arith.divf %325, %326 : vector<2x192xf32>
    %328 = vector.extract_strided_slice %321 {offsets = [0, 192], sizes = [2, 64], strides = [1, 1]} : vector<2x256xf32> to vector<2x64xf32>
    %329 = math.tanh %328 : vector<2x64xf32>
    %330 = vector.extract_strided_slice %327 {offsets = [0, 64], sizes = [2, 64], strides = [1, 1]} : vector<2x192xf32> to vector<2x64xf32>
    %331 = arith.mulf %330, %73 : vector<2x64xf32>
    %332 = vector.extract_strided_slice %327 {offsets = [0, 0], sizes = [2, 64], strides = [1, 1]} : vector<2x192xf32> to vector<2x64xf32>
    %333 = arith.mulf %332, %329 : vector<2x64xf32>
    %334 = arith.addf %331, %333 : vector<2x64xf32>
    %335 = vector.extract_strided_slice %327 {offsets = [0, 128], sizes = [2, 64], strides = [1, 1]} : vector<2x192xf32> to vector<2x64xf32>
    %336 = math.tanh %334 : vector<2x64xf32>
    %337 = arith.mulf %335, %336 : vector<2x64xf32>
    %338 = arith.select %30, %337, %73 : vector<2x64xi1>, vector<2x64xf32>
    %339 = arith.select %30, %337, %73 : vector<2x64xi1>, vector<2x64xf32>
    %340 = arith.select %30, %334, %73 : vector<2x64xi1>, vector<2x64xf32>
    %341 = arith.addf %73, %338 : vector<2x64xf32>
    %342 = vector.extract_strided_slice %315 {offsets = [2, 0], sizes = [2, 256], strides = [1, 1]} : vector<16x256xf32> to vector<2x256xf32>
    %343 = vector.extract_strided_slice %315 {offsets = [12, 0], sizes = [2, 256], strides = [1, 1]} : vector<16x256xf32> to vector<2x256xf32>
    %344 = arith.select %21, %342, %343 : vector<2x256xi1>, vector<2x256xf32>
    %cst_81 = arith.constant dense<0.000000e+00> : vector<2x256xf32>
    %345 = tpu.matmul %339, %316, %cst_81 {dimension_numbers = #tpu.dot_dimension_numbers<[1], [0], [0], [1], [0, 0, 1, 1], [], []>} : vector<2x64xf32>, vector<64x256xf32>, vector<2x256xf32> -> vector<2x256xf32>
    %346 = arith.addf %344, %345 : vector<2x256xf32>
    %347 = vector.extract_strided_slice %346 {offsets = [0, 0], sizes = [2, 192], strides = [1, 1]} : vector<2x256xf32> to vector<2x192xf32>
    %348 = arith.negf %347 : vector<2x192xf32>
    %349 = math.exp %348 : vector<2x192xf32>
    %cst_82 = arith.constant 1.000000e+00 : f32
    %350 = vector.broadcast %cst_82 : f32 to vector<2x192xf32>
    %351 = arith.addf %350, %349 : vector<2x192xf32>
    %352 = arith.divf %350, %351 : vector<2x192xf32>
    %353 = vector.extract_strided_slice %346 {offsets = [0, 192], sizes = [2, 64], strides = [1, 1]} : vector<2x256xf32> to vector<2x64xf32>
    %354 = math.tanh %353 : vector<2x64xf32>
    %355 = vector.extract_strided_slice %352 {offsets = [0, 64], sizes = [2, 64], strides = [1, 1]} : vector<2x192xf32> to vector<2x64xf32>
    %356 = arith.mulf %355, %340 : vector<2x64xf32>
    %357 = vector.extract_strided_slice %352 {offsets = [0, 0], sizes = [2, 64], strides = [1, 1]} : vector<2x192xf32> to vector<2x64xf32>
    %358 = arith.mulf %357, %354 : vector<2x64xf32>
    %359 = arith.addf %356, %358 : vector<2x64xf32>
    %360 = vector.extract_strided_slice %352 {offsets = [0, 128], sizes = [2, 64], strides = [1, 1]} : vector<2x192xf32> to vector<2x64xf32>
    %361 = math.tanh %359 : vector<2x64xf32>
    %362 = arith.mulf %360, %361 : vector<2x64xf32>
    %363 = arith.select %36, %362, %73 : vector<2x64xi1>, vector<2x64xf32>
    %364 = arith.select %36, %362, %339 : vector<2x64xi1>, vector<2x64xf32>
    %365 = arith.select %36, %359, %340 : vector<2x64xi1>, vector<2x64xf32>
    %366 = arith.addf %341, %363 : vector<2x64xf32>
    %367 = vector.extract_strided_slice %315 {offsets = [4, 0], sizes = [2, 256], strides = [1, 1]} : vector<16x256xf32> to vector<2x256xf32>
    %368 = vector.extract_strided_slice %315 {offsets = [10, 0], sizes = [2, 256], strides = [1, 1]} : vector<16x256xf32> to vector<2x256xf32>
    %369 = arith.select %21, %367, %368 : vector<2x256xi1>, vector<2x256xf32>
    %cst_83 = arith.constant dense<0.000000e+00> : vector<2x256xf32>
    %370 = tpu.matmul %364, %316, %cst_83 {dimension_numbers = #tpu.dot_dimension_numbers<[1], [0], [0], [1], [0, 0, 1, 1], [], []>} : vector<2x64xf32>, vector<64x256xf32>, vector<2x256xf32> -> vector<2x256xf32>
    %371 = arith.addf %369, %370 : vector<2x256xf32>
    %372 = vector.extract_strided_slice %371 {offsets = [0, 0], sizes = [2, 192], strides = [1, 1]} : vector<2x256xf32> to vector<2x192xf32>
    %373 = arith.negf %372 : vector<2x192xf32>
    %374 = math.exp %373 : vector<2x192xf32>
    %cst_84 = arith.constant 1.000000e+00 : f32
    %375 = vector.broadcast %cst_84 : f32 to vector<2x192xf32>
    %376 = arith.addf %375, %374 : vector<2x192xf32>
    %377 = arith.divf %375, %376 : vector<2x192xf32>
    %378 = vector.extract_strided_slice %371 {offsets = [0, 192], sizes = [2, 64], strides = [1, 1]} : vector<2x256xf32> to vector<2x64xf32>
    %379 = math.tanh %378 : vector<2x64xf32>
    %380 = vector.extract_strided_slice %377 {offsets = [0, 64], sizes = [2, 64], strides = [1, 1]} : vector<2x192xf32> to vector<2x64xf32>
    %381 = arith.mulf %380, %365 : vector<2x64xf32>
    %382 = vector.extract_strided_slice %377 {offsets = [0, 0], sizes = [2, 64], strides = [1, 1]} : vector<2x192xf32> to vector<2x64xf32>
    %383 = arith.mulf %382, %379 : vector<2x64xf32>
    %384 = arith.addf %381, %383 : vector<2x64xf32>
    %385 = vector.extract_strided_slice %377 {offsets = [0, 128], sizes = [2, 64], strides = [1, 1]} : vector<2x192xf32> to vector<2x64xf32>
    %386 = math.tanh %384 : vector<2x64xf32>
    %387 = arith.mulf %385, %386 : vector<2x64xf32>
    %388 = arith.select %42, %387, %73 : vector<2x64xi1>, vector<2x64xf32>
    %389 = arith.select %42, %387, %364 : vector<2x64xi1>, vector<2x64xf32>
    %390 = arith.select %42, %384, %365 : vector<2x64xi1>, vector<2x64xf32>
    %391 = arith.addf %366, %388 : vector<2x64xf32>
    %392 = vector.extract_strided_slice %315 {offsets = [6, 0], sizes = [2, 256], strides = [1, 1]} : vector<16x256xf32> to vector<2x256xf32>
    %393 = vector.extract_strided_slice %315 {offsets = [8, 0], sizes = [2, 256], strides = [1, 1]} : vector<16x256xf32> to vector<2x256xf32>
    %394 = arith.select %21, %392, %393 : vector<2x256xi1>, vector<2x256xf32>
    %cst_85 = arith.constant dense<0.000000e+00> : vector<2x256xf32>
    %395 = tpu.matmul %389, %316, %cst_85 {dimension_numbers = #tpu.dot_dimension_numbers<[1], [0], [0], [1], [0, 0, 1, 1], [], []>} : vector<2x64xf32>, vector<64x256xf32>, vector<2x256xf32> -> vector<2x256xf32>
    %396 = arith.addf %394, %395 : vector<2x256xf32>
    %397 = vector.extract_strided_slice %396 {offsets = [0, 0], sizes = [2, 192], strides = [1, 1]} : vector<2x256xf32> to vector<2x192xf32>
    %398 = arith.negf %397 : vector<2x192xf32>
    %399 = math.exp %398 : vector<2x192xf32>
    %cst_86 = arith.constant 1.000000e+00 : f32
    %400 = vector.broadcast %cst_86 : f32 to vector<2x192xf32>
    %401 = arith.addf %400, %399 : vector<2x192xf32>
    %402 = arith.divf %400, %401 : vector<2x192xf32>
    %403 = vector.extract_strided_slice %396 {offsets = [0, 192], sizes = [2, 64], strides = [1, 1]} : vector<2x256xf32> to vector<2x64xf32>
    %404 = math.tanh %403 : vector<2x64xf32>
    %405 = vector.extract_strided_slice %402 {offsets = [0, 64], sizes = [2, 64], strides = [1, 1]} : vector<2x192xf32> to vector<2x64xf32>
    %406 = arith.mulf %405, %390 : vector<2x64xf32>
    %407 = vector.extract_strided_slice %402 {offsets = [0, 0], sizes = [2, 64], strides = [1, 1]} : vector<2x192xf32> to vector<2x64xf32>
    %408 = arith.mulf %407, %404 : vector<2x64xf32>
    %409 = arith.addf %406, %408 : vector<2x64xf32>
    %410 = vector.extract_strided_slice %402 {offsets = [0, 128], sizes = [2, 64], strides = [1, 1]} : vector<2x192xf32> to vector<2x64xf32>
    %411 = math.tanh %409 : vector<2x64xf32>
    %412 = arith.mulf %410, %411 : vector<2x64xf32>
    %413 = arith.select %48, %412, %73 : vector<2x64xi1>, vector<2x64xf32>
    %414 = arith.select %48, %412, %389 : vector<2x64xi1>, vector<2x64xf32>
    %415 = arith.select %48, %409, %390 : vector<2x64xi1>, vector<2x64xf32>
    %416 = arith.addf %391, %413 : vector<2x64xf32>
    %417 = vector.extract_strided_slice %315 {offsets = [8, 0], sizes = [2, 256], strides = [1, 1]} : vector<16x256xf32> to vector<2x256xf32>
    %418 = vector.extract_strided_slice %315 {offsets = [6, 0], sizes = [2, 256], strides = [1, 1]} : vector<16x256xf32> to vector<2x256xf32>
    %419 = arith.select %21, %417, %418 : vector<2x256xi1>, vector<2x256xf32>
    %cst_87 = arith.constant dense<0.000000e+00> : vector<2x256xf32>
    %420 = tpu.matmul %414, %316, %cst_87 {dimension_numbers = #tpu.dot_dimension_numbers<[1], [0], [0], [1], [0, 0, 1, 1], [], []>} : vector<2x64xf32>, vector<64x256xf32>, vector<2x256xf32> -> vector<2x256xf32>
    %421 = arith.addf %419, %420 : vector<2x256xf32>
    %422 = vector.extract_strided_slice %421 {offsets = [0, 0], sizes = [2, 192], strides = [1, 1]} : vector<2x256xf32> to vector<2x192xf32>
    %423 = arith.negf %422 : vector<2x192xf32>
    %424 = math.exp %423 : vector<2x192xf32>
    %cst_88 = arith.constant 1.000000e+00 : f32
    %425 = vector.broadcast %cst_88 : f32 to vector<2x192xf32>
    %426 = arith.addf %425, %424 : vector<2x192xf32>
    %427 = arith.divf %425, %426 : vector<2x192xf32>
    %428 = vector.extract_strided_slice %421 {offsets = [0, 192], sizes = [2, 64], strides = [1, 1]} : vector<2x256xf32> to vector<2x64xf32>
    %429 = math.tanh %428 : vector<2x64xf32>
    %430 = vector.extract_strided_slice %427 {offsets = [0, 64], sizes = [2, 64], strides = [1, 1]} : vector<2x192xf32> to vector<2x64xf32>
    %431 = arith.mulf %430, %415 : vector<2x64xf32>
    %432 = vector.extract_strided_slice %427 {offsets = [0, 0], sizes = [2, 64], strides = [1, 1]} : vector<2x192xf32> to vector<2x64xf32>
    %433 = arith.mulf %432, %429 : vector<2x64xf32>
    %434 = arith.addf %431, %433 : vector<2x64xf32>
    %435 = vector.extract_strided_slice %427 {offsets = [0, 128], sizes = [2, 64], strides = [1, 1]} : vector<2x192xf32> to vector<2x64xf32>
    %436 = math.tanh %434 : vector<2x64xf32>
    %437 = arith.mulf %435, %436 : vector<2x64xf32>
    %438 = arith.select %54, %437, %73 : vector<2x64xi1>, vector<2x64xf32>
    %439 = arith.select %54, %437, %414 : vector<2x64xi1>, vector<2x64xf32>
    %440 = arith.select %54, %434, %415 : vector<2x64xi1>, vector<2x64xf32>
    %441 = arith.addf %416, %438 : vector<2x64xf32>
    %442 = vector.extract_strided_slice %315 {offsets = [10, 0], sizes = [2, 256], strides = [1, 1]} : vector<16x256xf32> to vector<2x256xf32>
    %443 = vector.extract_strided_slice %315 {offsets = [4, 0], sizes = [2, 256], strides = [1, 1]} : vector<16x256xf32> to vector<2x256xf32>
    %444 = arith.select %21, %442, %443 : vector<2x256xi1>, vector<2x256xf32>
    %cst_89 = arith.constant dense<0.000000e+00> : vector<2x256xf32>
    %445 = tpu.matmul %439, %316, %cst_89 {dimension_numbers = #tpu.dot_dimension_numbers<[1], [0], [0], [1], [0, 0, 1, 1], [], []>} : vector<2x64xf32>, vector<64x256xf32>, vector<2x256xf32> -> vector<2x256xf32>
    %446 = arith.addf %444, %445 : vector<2x256xf32>
    %447 = vector.extract_strided_slice %446 {offsets = [0, 0], sizes = [2, 192], strides = [1, 1]} : vector<2x256xf32> to vector<2x192xf32>
    %448 = arith.negf %447 : vector<2x192xf32>
    %449 = math.exp %448 : vector<2x192xf32>
    %cst_90 = arith.constant 1.000000e+00 : f32
    %450 = vector.broadcast %cst_90 : f32 to vector<2x192xf32>
    %451 = arith.addf %450, %449 : vector<2x192xf32>
    %452 = arith.divf %450, %451 : vector<2x192xf32>
    %453 = vector.extract_strided_slice %446 {offsets = [0, 192], sizes = [2, 64], strides = [1, 1]} : vector<2x256xf32> to vector<2x64xf32>
    %454 = math.tanh %453 : vector<2x64xf32>
    %455 = vector.extract_strided_slice %452 {offsets = [0, 64], sizes = [2, 64], strides = [1, 1]} : vector<2x192xf32> to vector<2x64xf32>
    %456 = arith.mulf %455, %440 : vector<2x64xf32>
    %457 = vector.extract_strided_slice %452 {offsets = [0, 0], sizes = [2, 64], strides = [1, 1]} : vector<2x192xf32> to vector<2x64xf32>
    %458 = arith.mulf %457, %454 : vector<2x64xf32>
    %459 = arith.addf %456, %458 : vector<2x64xf32>
    %460 = vector.extract_strided_slice %452 {offsets = [0, 128], sizes = [2, 64], strides = [1, 1]} : vector<2x192xf32> to vector<2x64xf32>
    %461 = math.tanh %459 : vector<2x64xf32>
    %462 = arith.mulf %460, %461 : vector<2x64xf32>
    %463 = arith.select %60, %462, %73 : vector<2x64xi1>, vector<2x64xf32>
    %464 = arith.select %60, %462, %439 : vector<2x64xi1>, vector<2x64xf32>
    %465 = arith.select %60, %459, %440 : vector<2x64xi1>, vector<2x64xf32>
    %466 = arith.addf %441, %463 : vector<2x64xf32>
    %467 = vector.extract_strided_slice %315 {offsets = [12, 0], sizes = [2, 256], strides = [1, 1]} : vector<16x256xf32> to vector<2x256xf32>
    %468 = vector.extract_strided_slice %315 {offsets = [2, 0], sizes = [2, 256], strides = [1, 1]} : vector<16x256xf32> to vector<2x256xf32>
    %469 = arith.select %21, %467, %468 : vector<2x256xi1>, vector<2x256xf32>
    %cst_91 = arith.constant dense<0.000000e+00> : vector<2x256xf32>
    %470 = tpu.matmul %464, %316, %cst_91 {dimension_numbers = #tpu.dot_dimension_numbers<[1], [0], [0], [1], [0, 0, 1, 1], [], []>} : vector<2x64xf32>, vector<64x256xf32>, vector<2x256xf32> -> vector<2x256xf32>
    %471 = arith.addf %469, %470 : vector<2x256xf32>
    %472 = vector.extract_strided_slice %471 {offsets = [0, 0], sizes = [2, 192], strides = [1, 1]} : vector<2x256xf32> to vector<2x192xf32>
    %473 = arith.negf %472 : vector<2x192xf32>
    %474 = math.exp %473 : vector<2x192xf32>
    %cst_92 = arith.constant 1.000000e+00 : f32
    %475 = vector.broadcast %cst_92 : f32 to vector<2x192xf32>
    %476 = arith.addf %475, %474 : vector<2x192xf32>
    %477 = arith.divf %475, %476 : vector<2x192xf32>
    %478 = vector.extract_strided_slice %471 {offsets = [0, 192], sizes = [2, 64], strides = [1, 1]} : vector<2x256xf32> to vector<2x64xf32>
    %479 = math.tanh %478 : vector<2x64xf32>
    %480 = vector.extract_strided_slice %477 {offsets = [0, 64], sizes = [2, 64], strides = [1, 1]} : vector<2x192xf32> to vector<2x64xf32>
    %481 = arith.mulf %480, %465 : vector<2x64xf32>
    %482 = vector.extract_strided_slice %477 {offsets = [0, 0], sizes = [2, 64], strides = [1, 1]} : vector<2x192xf32> to vector<2x64xf32>
    %483 = arith.mulf %482, %479 : vector<2x64xf32>
    %484 = arith.addf %481, %483 : vector<2x64xf32>
    %485 = vector.extract_strided_slice %477 {offsets = [0, 128], sizes = [2, 64], strides = [1, 1]} : vector<2x192xf32> to vector<2x64xf32>
    %486 = math.tanh %484 : vector<2x64xf32>
    %487 = arith.mulf %485, %486 : vector<2x64xf32>
    %488 = arith.select %66, %487, %73 : vector<2x64xi1>, vector<2x64xf32>
    %489 = arith.select %66, %487, %464 : vector<2x64xi1>, vector<2x64xf32>
    %490 = arith.select %66, %484, %465 : vector<2x64xi1>, vector<2x64xf32>
    %491 = arith.addf %466, %488 : vector<2x64xf32>
    %492 = vector.extract_strided_slice %315 {offsets = [14, 0], sizes = [2, 256], strides = [1, 1]} : vector<16x256xf32> to vector<2x256xf32>
    %493 = vector.extract_strided_slice %315 {offsets = [0, 0], sizes = [2, 256], strides = [1, 1]} : vector<16x256xf32> to vector<2x256xf32>
    %494 = arith.select %21, %492, %493 : vector<2x256xi1>, vector<2x256xf32>
    %cst_93 = arith.constant dense<0.000000e+00> : vector<2x256xf32>
    %495 = tpu.matmul %489, %316, %cst_93 {dimension_numbers = #tpu.dot_dimension_numbers<[1], [0], [0], [1], [0, 0, 1, 1], [], []>} : vector<2x64xf32>, vector<64x256xf32>, vector<2x256xf32> -> vector<2x256xf32>
    %496 = arith.addf %494, %495 : vector<2x256xf32>
    %497 = vector.extract_strided_slice %496 {offsets = [0, 0], sizes = [2, 192], strides = [1, 1]} : vector<2x256xf32> to vector<2x192xf32>
    %498 = arith.negf %497 : vector<2x192xf32>
    %499 = math.exp %498 : vector<2x192xf32>
    %cst_94 = arith.constant 1.000000e+00 : f32
    %500 = vector.broadcast %cst_94 : f32 to vector<2x192xf32>
    %501 = arith.addf %500, %499 : vector<2x192xf32>
    %502 = arith.divf %500, %501 : vector<2x192xf32>
    %503 = vector.extract_strided_slice %496 {offsets = [0, 192], sizes = [2, 64], strides = [1, 1]} : vector<2x256xf32> to vector<2x64xf32>
    %504 = math.tanh %503 : vector<2x64xf32>
    %505 = vector.extract_strided_slice %502 {offsets = [0, 64], sizes = [2, 64], strides = [1, 1]} : vector<2x192xf32> to vector<2x64xf32>
    %506 = arith.mulf %505, %490 : vector<2x64xf32>
    %507 = vector.extract_strided_slice %502 {offsets = [0, 0], sizes = [2, 64], strides = [1, 1]} : vector<2x192xf32> to vector<2x64xf32>
    %508 = arith.mulf %507, %504 : vector<2x64xf32>
    %509 = arith.addf %506, %508 : vector<2x64xf32>
    %510 = vector.extract_strided_slice %502 {offsets = [0, 128], sizes = [2, 64], strides = [1, 1]} : vector<2x192xf32> to vector<2x64xf32>
    %511 = math.tanh %509 : vector<2x64xf32>
    %512 = arith.mulf %510, %511 : vector<2x64xf32>
    %513 = arith.select %72, %512, %73 : vector<2x64xi1>, vector<2x64xf32>
    %514 = arith.addf %491, %513 : vector<2x64xf32>
    %c0_95 = arith.constant 0 : index
    %c0_96 = arith.constant 0 : index
    %515 = vector.load %arg8[%c0_95, %c0_96] : memref<64x4xf32, #tpu.memory_space<vmem>>, vector<64x4xf32>
    %cst_97 = arith.constant dense<0.000000e+00> : vector<2x4xf32>
    %516 = tpu.matmul %514, %515, %cst_97 {dimension_numbers = #tpu.dot_dimension_numbers<[1], [0], [0], [1], [0, 0, 1, 1], [], []>} : vector<2x64xf32>, vector<64x4xf32>, vector<2x4xf32> -> vector<2x4xf32>
    %cst_98 = arith.constant 1.250000e-01 : f32
    %517 = vector.broadcast %cst_98 : f32 to vector<2x4xf32>
    %518 = arith.mulf %516, %517 : vector<2x4xf32>
    %c0_99 = arith.constant 0 : index
    %c0_100 = arith.constant 0 : index
    %519 = vector.load %arg9[%c0_99, %c0_100] : memref<1x4xf32, #tpu.memory_space<vmem>>, vector<1x4xf32>
    %520 = vector.broadcast %519 : vector<1x4xf32> to vector<2x4xf32>
    %521 = arith.addf %518, %520 : vector<2x4xf32>
    %c0_101 = arith.constant 0 : index
    %c0_102 = arith.constant 0 : index
    %522 = vector.load %arg10[%c0_101, %c0_102] : memref<2x4xf32, #tpu.memory_space<vmem>>, vector<2x4xf32>
    tpu.vector_store %arg10[%c0_101, %c0_102], %521 {strides = array<i32>} : memref<2x4xf32, #tpu.memory_space<vmem>>, vector<2x4xf32>,
    return
  }
}

</mosaic_0001>

<bundles_post_ra>
// kernel: text_bilstm_forward.1
= control target key start
LH: loop header
LB: loop body
LE: loop exit
PB: predicated region body
PF: predicated region fallthrough
CT: control target
= control target key end

     0   :  { %15 = vsyncpa [#allocation5], 0  ;;  %s4078_s0 = inlined_call_operand.vmem [shape: s32[16,1], index: 0, kind: input, shape index: {}]   ;;  %s4079_s1 = inlined_call_operand.vmem [shape: s32[2,1], index: 1, kind: input, shape index: {}]   ;;  %s4080_s2 = inlined_call_operand.hbm [shape: f32[128,256], index: 2, kind: input, shape index: {}]   ;;  %s4081_s3 = inlined_call_operand.hbm [shape: f32[64,256], index: 3, kind: input, shape index: {}]   ;;  %s4082_s4 = inlined_call_operand.vmem [shape: f32[32,256], index: 4, kind: input, shape index: {}]   ;;  %s4083_s5 = inlined_call_operand.hbm [shape: f32[32,256], index: 5, kind: input, shape index: {}]   ;;  %s4084_s6 = inlined_call_operand.hbm [shape: f32[64,256], index: 6, kind: input, shape index: {}]   ;;  %s4085_s7 = inlined_call_operand.vmem [shape: f32[1,256], index: 7, kind: input, shape index: {}]   ;;  %s4086_s8 = inlined_call_operand.vmem [shape: f32[64,4], index: 8, kind: input, shape index: {}]   ;;  %s4087_s9 = inlined_call_operand.vmem [shape: f32[1,4], index: 9, kind: input, shape index: {}]   ;;  %s4088_s10 = inlined_call_operand.hbm [shape: f32[2,4], index: 10, kind: output, shape index: {}]  }
   0x1   :  { %16 = vsyncpa [#allocation8], 0 }
   0x2   :  { %17 = vsyncpa [#allocation11], 0 }
   0x3   :  { %18 = vsyncpa [#allocation6], 0  ;;  %s3103_s13 = smov [#allocation7]   ;;  %s3104_s15 = smov [#allocation4]  }
   0x4   :  { %s40_s14 = sshll.u32 %s3103_s13, 4  ;;  %s28_s16 = sshll.u32 %s3104_s15, 4  ;;  %s41_s14 = int_to_ptr.vmem [resolvable:$true] %s40_s14  ;;  %s29_s16 = int_to_ptr.vmem [resolvable:$true] %s28_s16 }
   0x5   :  { %s3003_s17 = scalar_lea.vmem %s41_s14, 2048  ;;  %p3008_p1 = scmp.lt.s32.totalorder %s41_s14, %s41_s14 }
   0x6   :  { %p3004_p0 = scmp.ne.s32.totalorder %s41_s14, %s3003_s17  ;;  %p3009_p2 = scmp.lt.s32.totalorder %s3003_s17, %s3003_s17 }
   0x8   :  { %p3010_p3 = por %p3009_p2, %p3008_p1 }
   0xa   :  { %p3011_p4 = pnand %p3010_p3, %p3004_p0 }
   0xc   :  { %3014 = shalt.err (!%p3011_p4)
}
   0xd   :  { %s3105_s18 = smov 256   ;;  %s3106_s19 = smov 16  }
   0xe   :  { %46 = dma.hbm_to_vmem [thread:$0]  %s4081_s3, 2048, %s41_s14, [#allocation8], %s3105_s18, %s3105_s18, %s3106_s19  }
   0xf   :  { %s3023_s22 = scalar_lea.vmem %s29_s16, 4096  ;;  %p3028_p6 = scmp.lt.s32.totalorder %s29_s16, %s29_s16 }
  0x10   :  { %p3024_p5 = scmp.ne.s32.totalorder %s29_s16, %s3023_s22  ;;  %p3029_p7 = scmp.lt.s32.totalorder %s3023_s22, %s3023_s22 }
  0x12   :  { %p3030_p8 = por %p3029_p7, %p3028_p6 }
  0x14   :  { %p3031_p9 = pnand %p3030_p8, %p3024_p5 }
  0x16   :  { %3034 = shalt.err (!%p3031_p9)
}
  0x17   :  { %34 = dma.hbm_to_vmem [thread:$0]  %s4080_s2, 4096, %s29_s16, [#allocation5], %s3105_s18, %s3105_s18, %s3106_s19  }
  0x18   :  { %s3107_s25 = smov [#allocation9]   ;;  %s3108_s27 = smov [#allocation10]  }
  0x19   :  { %s54_s26 = sshll.u32 %s3107_s25, 4  ;;  %s66_s28 = sshll.u32 %s3108_s27, 4  ;;  %s55_s26 = int_to_ptr.vmem [resolvable:$true] %s54_s26  ;;  %s67_s28 = int_to_ptr.vmem [resolvable:$true] %s66_s28 }
  0x1a   :  { %s3043_s3 = scalar_lea.vmem %s55_s26, 1024  ;;  %p3048_p11 = scmp.lt.s32.totalorder %s55_s26, %s55_s26 }
  0x1b   :  { %p3044_p10 = scmp.ne.s32.totalorder %s55_s26, %s3043_s3  ;;  %p3049_p12 = scmp.lt.s32.totalorder %s3043_s3, %s3043_s3 }
  0x1d   :  { %p3050_p13 = por %p3049_p12, %p3048_p11 }
  0x1f   :  { %p3051_p0 = pnand %p3050_p13, %p3044_p10 }
  0x21   :  { %3054 = shalt.err (!%p3051_p0)
}
  0x22   :  { %60 = dma.hbm_to_vmem [thread:$0]  %s4083_s5, 1024, %s55_s26, [#allocation8], %s3105_s18, %s3105_s18, %s3106_s19  }
  0x23   :  { %s3063_s2 = scalar_lea.vmem %s67_s28, 2048  ;;  %p3068_p2 = scmp.lt.s32.totalorder %s67_s28, %s67_s28 }
  0x24   :  { %p3064_p1 = scmp.ne.s32.totalorder %s67_s28, %s3063_s2  ;;  %p3069_p3 = scmp.lt.s32.totalorder %s3063_s2, %s3063_s2 }
  0x26   :  { %p3070_p4 = por %p3069_p3, %p3068_p2 }
  0x28   :  { %p3071_p5 = pnand %p3070_p4, %p3064_p1 }
  0x2a   :  { %3074 = shalt.err (!%p3071_p5)
}
  0x2b   :  { %72 = dma.hbm_to_vmem [thread:$0]  %s4084_s6, 2048, %s67_s28, [#allocation11], %s3105_s18, %s3105_s18, %s3106_s19  }
  0x2c   :  { %3095 = dma.done.wait [#allocation5], 4096  }
  0x2d   :  { %3096 = vsyncadd [#allocation5], 4294963200 }
  0x2e   :  { %3097 = dma.done.wait [#allocation8], 3072  }
  0x2f   :  { %3098 = vsyncadd [#allocation8], 4294964224 }
  0x30   :  { %3099 = dma.done.wait [#allocation11], 2048  }
  0x31   :  { %3100 = vsyncadd [#allocation11], 4294965248  ;;  %v92_v0 = vlaneseq  ;;  %v3109_v1 = vmov 0   ;;  %v3110_v3 = vmov 0.0   ;;  %v145_v5 = vld [vmem:[%s4078_s0] sm:$0xff]  ;;  %v188_v6 = vld [vmem:[#allocation4 + $0xf8] sm:$0xff] }
  0x32   :  { %2802 = vset.pattern.permute.xlu0 %v3109_v1  ;;  %253 = vmatprep.mubr.f32.mxu0 %v3110_v3  ;;  %v187_v7 = vld [vmem:[#allocation4 + $0xf0] sm:$0xff]  ;;  %v186_v8 = vld [vmem:[#allocation4 + $0xe8] sm:$0xff]  ;;  %v185_v10 = vld [vmem:[#allocation4 + $0xe0] sm:$0xff]  ;;  %v3111_v57 = vmov 1.0   ;;  %vm403_vm6 = vcmask 254976   ;;  %vm290_vm7 = vcmask 523264  }
  0x33   :  { %v3203_v2 = vand.u32 127, %v92_v0  ;;  %358 = vmatprep.mubr.f32.mxu1 %v3110_v3  ;;  %148 = vperm.xlu0 %2802, %v145_v5   ;;  %v146_v9 = vld [vmem:[%s4078_s0 + $0x8] sm:$0xff]  ;;  %v184_v11 = vld [vmem:[#allocation4 + $0xd8] sm:$0xff]  ;;  %v183_v12 = vld [vmem:[#allocation4 + $0xd0] sm:$0xff]  ;;  %s3112_s0 = smov 64   ;;  %vm1369_vm15 = vcmask 261120  }
  0x34   :  { %189 = vmatprep.subr.mxu0 %v188_v6  ;;  %v182_v13 = vld [vmem:[#allocation4 + $0xc8] sm:$0xff]  ;;  %v91_v14 = vld [vmem:[%s4079_s1] sm:$0x3]  ;;  %v180_v16 = vld [vmem:[#allocation4 + $0xb8] sm:$0xff]  ;;  %s3120_s1 = smov 96  }
  0x35   :  { %vm125_vm0 = vcmp.lt.s32.totalorder %v3203_v2, 32  ;;  %190 = vmatpush1.msra.mxu0 %v187_v7  ;;  %v181_v15 = vld [vmem:[#allocation4 + $0xc0] sm:$0xff]  ;;  %v179_v17 = vld [vmem:[#allocation4 + $0xb0] sm:$0xff]  ;;  %v3221_v18 = vld [vmem:[#allocation7 + $0x78] sm:$0xff]  ;;  %v99_v59 = vand.u32 63, %v3203_v2  ;;  %v94_v61 = vadd.s32 128, %v3203_v2 }
  0x36   :  { %v3210_v4 = vsel %vm125_vm0, 7, %v3109_v1  ;;  %191 = vmatprep.subr.mxu0 %v186_v8  ;;  %v178_v19 = vld [vmem:[#allocation4 + $0xa8] sm:$0xff]  ;;  %v3223_v20 = vld [vmem:[#allocation7 + $0x70] sm:$0xff]  ;;  %v177_v22 = vld [vmem:[#allocation4 + $0xa0] sm:$0xff]  ;;  %310 = vmatprep.subr.mxu1 %v3221_v18 }
  0x37   :  { %151 = vperm.xlu0 %2802, %v146_v9   ;;  %192 = vmatpush1.msra.mxu0 %v185_v10  ;;  %v3225_v21 = vld [vmem:[#allocation7 + $0x68] sm:$0xff]  ;;  %v3228_v23 = vld [vmem:[#allocation7 + $0x60] sm:$0xff]  ;;  %v176_v24 = vld [vmem:[#allocation4 + $0x98] sm:$0xff]  ;;  %vm3313_vm3 = vcmp.lt.s32.totalorder %v99_v59, 32  ;;  %v106_v7 = vand.u32 63, %v94_v61 }
  0x38   :  { %193 = vmatprep.subr.mxu0 %v184_v11  ;;  %311 = vmatpush1.msra.mxu1 %v3223_v20  ;;  %v3231_v25 = vld [vmem:[#allocation7 + $0x58] sm:$0xff]  ;;  %v175_v26 = vld [vmem:[#allocation4 + $0x90] sm:$0xff]  ;;  %v174_v28 = vld [vmem:[#allocation4 + $0x88] sm:$0xff] }
  0x39   :  { %194 = vmatpush1.msra.mxu0 %v183_v12  ;;  %312 = vmatprep.subr.mxu1 %v3225_v21  ;;  %v3234_v27 = vld [vmem:[#allocation7 + $0x50] sm:$0xff]  ;;  %v3237_v29 = vld [vmem:[#allocation7 + $0x48] sm:$0xff]  ;;  %v173_v30 = vld [vmem:[#allocation4 + $0x80] sm:$0xff]  ;;  %vm3336_vm4 = vcmp.lt.s32.totalorder %v106_v7, 32 }
  0x3a   :  { %195 = vmatprep.subr.mxu0 %v182_v13  ;;  %313 = vmatpush1.msra.mxu1 %v3228_v23  ;;  %v3240_v31 = vld [vmem:[#allocation7 + $0x40] sm:$0xff]  ;;  %v172_v32 = vld [vmem:[#allocation4 + $0x78] sm:$0xff]  ;;  %v171_v34 = vld [vmem:[#allocation4 + $0x70] sm:$0xff] }
  0x3b   :  { %128 = vperm.xlu0 %2802, %v91_v14   ;;  %196 = vmatpush1.msra.mxu0 %v181_v15  ;;  %v3243_v33 = vld [vmem:[#allocation7 + $0x38] sm:$0xff]  ;;  %v3246_v35 = vld [vmem:[#allocation7 + $0x30] sm:$0xff]  ;;  %v170_v36 = vld [vmem:[#allocation4 + $0x68] sm:$0xff] }
  0x3c   :  { %197 = vmatprep.subr.mxu0 %v180_v16  ;;  %314 = vmatprep.subr.mxu1 %v3231_v25  ;;  %v3249_v37 = vld [vmem:[#allocation7 + $0x28] sm:$0xff]  ;;  %v169_v38 = vld [vmem:[#allocation4 + $0x60] sm:$0xff]  ;;  %v168_v40 = vld [vmem:[#allocation4 + $0x58] sm:$0xff] }
  0x3d   :  { %198 = vmatpush1.msra.mxu0 %v179_v17  ;;  %315 = vmatpush1.msra.mxu1 %v3234_v27  ;;  %v3252_v39 = vld [vmem:[#allocation7 + $0x20] sm:$0xff]  ;;  %v3255_v41 = vld [vmem:[#allocation7 + $0x18] sm:$0xff]  ;;  %v167_v42 = vld [vmem:[#allocation4 + $0x50] sm:$0xff] }
  0x3e   :  { %199 = vmatprep.subr.mxu0 %v178_v19  ;;  %316 = vmatprep.subr.mxu1 %v3237_v29  ;;  %v3258_v43 = vld [vmem:[#allocation7 + $0x10] sm:$0xff]  ;;  %v166_v44 = vld [vmem:[#allocation4 + $0x48] sm:$0xff]  ;;  %v165_v46 = vld [vmem:[#allocation4 + $0x40] sm:$0xff] }
  0x3f   :  { %200 = vmatpush1.msra.mxu0 %v177_v22  ;;  %317 = vmatpush1.msra.mxu1 %v3240_v31  ;;  %v3261_v45 = vld [vmem:[#allocation7 + $0x8] sm:$0xff]  ;;  %v3264_v47 = vld [vmem:[#allocation7] sm:$0xff]  ;;  %v164_v48 = vld [vmem:[#allocation4 + $0x38] sm:$0xff] }
  0x40   :  { %201 = vmatprep.subr.mxu0 %v176_v24  ;;  %318 = vmatprep.subr.mxu1 %v3243_v33  ;;  %v163_v49 = vld [vmem:[#allocation4 + $0x30] sm:$0xff]  ;;  %v162_v50 = vld [vmem:[#allocation4 + $0x28] sm:$0xff]  ;;  %v161_v51 = vld [vmem:[#allocation4 + $0x20] sm:$0xff] }
  0x41   :  { %202 = vmatpush1.msra.mxu0 %v175_v26  ;;  %319 = vmatpush1.msra.mxu1 %v3246_v35  ;;  %v160_v52 = vld [vmem:[#allocation4 + $0x18] sm:$0xff]  ;;  %v159_v53 = vld [vmem:[#allocation4 + $0x10] sm:$0xff]  ;;  %v158_v54 = vld [vmem:[#allocation4 + $0x8] sm:$0xff] }
  0x42   :  { %203 = vmatprep.subr.mxu0 %v174_v28  ;;  %320 = vmatprep.subr.mxu1 %v3249_v37  ;;  %v157_v55 = vld [vmem:[#allocation4] sm:$0xff] }
  0x43   :  { %204 = vmatpush1.msra.mxu0 %v173_v30  ;;  %321 = vmatpush1.msra.mxu1 %v3252_v39 }
  0x44   :  { %205 = vmatprep.subr.mxu0 %v172_v32  ;;  %322 = vmatprep.subr.mxu1 %v3255_v41 }
  0x45   :  { %206 = vmatpush1.msra.mxu0 %v171_v34  ;;  %323 = vmatpush1.msra.mxu1 %v3258_v43 }
  0x46   :  { %207 = vmatprep.subr.mxu0 %v170_v36  ;;  %324 = vmatprep.subr.mxu1 %v3261_v45 }
  0x47   :  { %208 = vmatpush1.msra.mxu0 %v169_v38  ;;  %325 = vmatpush1.msra.mxu1 %v3264_v47 }
  0x48   :  { %209 = vmatprep.subr.mxu0 %v168_v40  ;;  %359 = vmatmul.mubr.f32.vlgmr.msra.gmra.mxu1 %v3110_v3 }
  0x49   :  { %210 = vmatpush1.msra.mxu0 %v167_v42  ;;  %434 = vmatprep.subr.mxu1 %v3221_v18 }
  0x4a   :  { %211 = vmatprep.subr.mxu0 %v166_v44  ;;  %435 = vmatpush1.msra.mxu1 %v3223_v20 }
  0x4b   :  { %212 = vmatpush1.msra.mxu0 %v165_v46  ;;  %436 = vmatprep.subr.mxu1 %v3225_v21 }
  0x4c   :  { %213 = vmatprep.subr.mxu0 %v164_v48  ;;  %437 = vmatpush1.msra.mxu1 %v3228_v23 }
  0x4d   :  { %214 = vmatpush1.msra.mxu0 %v163_v49  ;;  %438 = vmatprep.subr.mxu1 %v3231_v25 }
  0x4e   :  { %215 = vmatprep.subr.mxu0 %v162_v50  ;;  %439 = vmatpush1.msra.mxu1 %v3234_v27 }
  0x4f   :  { %216 = vmatpush1.msra.mxu0 %v161_v51  ;;  %440 = vmatprep.subr.mxu1 %v3237_v29 }
  0x50   :  { %217 = vmatprep.subr.mxu0 %v160_v52  ;;  %441 = vmatpush1.msra.mxu1 %v3240_v31 }
  0x51   :  { %218 = vmatpush1.msra.mxu0 %v159_v53  ;;  %482 = vmatprep.mubr.f32.mxu1 %v3110_v3  ;;  %v3113_v53 = vmov 7  }
  0x52   :  { %219 = vmatprep.subr.mxu0 %v158_v54  ;;  %442 = vmatprep.subr.mxu1 %v3243_v33  ;;  %v3355_v54 = vsel %vm125_vm0, 0, %v3113_v53 }
  0x53   :  { %220 = vmatpush1.msra.mxu0 %v157_v55  ;;  %443 = vmatpush1.msra.mxu1 %v3246_v35 }
  0x54   :  { %568 = vmatprep.subr.mxu0 %v3221_v18  ;;  %444 = vmatprep.subr.mxu1 %v3249_v37 }
  0x55   :  { %445 = vmatpush1.msra.mxu1 %v3252_v39 }
  0x56   :  { %446 = vmatprep.subr.mxu1 %v3255_v41 }
  0x57   :  { %447 = vmatpush1.msra.mxu1 %v3258_v43 }
  0x58   :  { %448 = vmatprep.subr.mxu1 %v3261_v45 }
  0x59   :  { %449 = vmatpush1.msra.mxu1 %v3264_v47 }
  0x5a   :  { %702 = vmatprep.subr.mxu1 %v3221_v18 }
  0xae   :  { %v149_v56 = vpop.permute.xlu0 %148 }
  0xaf   :  { %vm153_vm1 = vcmp.eq.s32.totalorder %v149_v56, %v3203_v2 }
  0xb0   :  { %2700 = vmatmul.mubr.msk.f32.vlgmr.msra.gmra.mxu0 %vm153_vm1, %v3111_v57  ;;  %vm2681_vm1 = vcmask 25600  }
  0xb1   :  { %259 = vmatprep.mubr.f32.mxu0 %v3110_v3  ;;  %569 = vmatpush1.msra.mxu0 %v3223_v20 }
  0xb2   :  { %v152_v58 = vpop.permute.xlu0 %151  ;;  %570 = vmatprep.subr.mxu0 %v3225_v21 }
  0xb3   :  { %vm154_vm2 = vcmp.eq.s32.totalorder %v152_v58, %v3203_v2  ;;  %571 = vmatpush1.msra.mxu0 %v3228_v23 }
  0xb4   :  { %2701 = vmatmul.mubr.msk.f32.gmra.mxu0 %vm154_vm2, %v3111_v57  ;;  %572 = vmatprep.subr.mxu0 %v3231_v25 }
  0xb5   :  { %573 = vmatpush1.msra.mxu0 %v3234_v27  ;;  %616 = vmatprep.mubr.f32.mxu0 %v3110_v3 }
  0xb6   :  { %574 = vmatprep.subr.mxu0 %v3237_v29  ;;  %v3351_v51 = vpop.permute.xlu0 %128 }
  0xb7   :  { %575 = vmatpush1.msra.mxu0 %v3240_v31  ;;  %vm130_vm5 = vcmp.gt.s32.totalorder %v3351_v51, %v3355_v54  ;;  %vm144_vm14 = vcmp.gt.s32.totalorder %v3351_v51, %v3210_v4 }
  0xb8   :  { %576 = vmatprep.subr.mxu0 %v3243_v33 }
  0xb9   :  { %577 = vmatpush1.msra.mxu0 %v3246_v35 }
  0xba   :  { %578 = vmatprep.subr.mxu0 %v3249_v37 }
  0xbb   :  { %579 = vmatpush1.msra.mxu0 %v3252_v39 }
  0xbc   :  { %580 = vmatprep.subr.mxu0 %v3255_v41 }
  0xbd   :  { %581 = vmatpush1.msra.mxu0 %v3258_v43 }
  0xbe   :  { %582 = vmatprep.subr.mxu0 %v3261_v45 }
  0xbf   :  { %583 = vmatpush1.msra.mxu0 %v3264_v47 }
  0xc0   :  { %844 = vmatprep.subr.mxu0 %v3221_v18 }
 0x108   :  { %v360_v10 = vpop.f32.mrf.mxu1 }
 0x10a   :  { %v362_v22 = vpop.f32.mrf.mxu1 }
 0x170   :  { %v255_v60 = vpop.f32.mrf.mxu0 }
 0x171   :  { %v819_v1 = vrot.slane %v255_v60, 6  ;;  %v948_v5 = vrot.slane %v255_v60, 2 }
 0x172   :  { %v3311_v62 = vpop.f32.mrf.mxu0 }
 0x174   :  { %v261_v6 = vpop.f32.mrf.mxu0 }
 0x175   :  { %v284_v8 = vrot.slane %v261_v6, 6  ;;  %v410_v9 = vrot.slane %v261_v6, 2  ;;  %v3319_v11 = vsel %vm3313_vm3, %v261_v6, %v819_v1  ;;  %v3323_v12 = vsel %vm3313_vm3, %v261_v6, %v948_v5 }
 0x176   :  { %v3325_v13 = vpop.f32.mrf.mxu0 }
 0x177   :  { %v3329_v14 = vsel %vm3313_vm3, %v255_v60, %v284_v8  ;;  %v285_v15 = vrot.slane %v3325_v13, 6  ;;  %v3334_v16 = vsel %vm3313_vm3, %v255_v60, %v410_v9  ;;  %v411_v1 = vrot.slane %v3325_v13, 2 }
 0x178   :  { %v365_v28 = vadd.f32 %v360_v10, %v3329_v14 }
 0x179   :  { %v3343_v19 = vsel %vm3336_vm4, %v3311_v62, %v285_v15  ;;  %v3396_v8 = vsel %vm3336_vm4, %v3311_v62, %v411_v1 }
 0x17a   :  { %v366_v24 = vadd.f32 %v362_v22, %v3343_v19  ;;  %v2702_v30 = vmul.f32 -1.442695, %v365_v28 }
 0x17c   :  { %2803 = vtanh.f32 %v366_v24  ;;  %v2703_v49 = vmul.f32 -1.442695, %v366_v24 }
 0x17d   :  { %2805 = vpow2.f32 %v2702_v30 }
 0x189   :  { %v2804_v26 = vpop.eup %2803 }
 0x18a   :  { %382 = vrot.lane.b32.xlu1 %v2804_v26, %s3112_s0  ;;  %v2806_v32 = vpop.eup %2805 }
 0x18b   :  { %v373_v34 = vadd.f32 1.0, %v2806_v32 }
 0x18d   :  { %2807 = vrcp.f32 %v373_v34 }
 0x19a   :  { %v2808_v36 = vpop.eup %2807 }
 0x19b   :  { %v380_v42 = vmul.f32 0.0, %v2808_v36 }
 0x1fc   :  { %v383_v38 = vpop.permute.xlu1 %382 }
 0x1fd   :  { %v385_v40 = vmul.f32 %v2808_v36, %v383_v38 }
 0x1ff   :  { %387 = vrot.lane.b32.xlu1 %v385_v40, %s3112_s0 }
 0x271   :  { %v388_v44 = vpop.permute.xlu1 %387 }
 0x272   :  { %v390_v46 = vadd.f32 %v388_v44, %v380_v42 }
 0x274   :  { %2809 = vtanh.f32 %v390_v46  ;;  %399 = vrot.lane.b32.xlu0 %v390_v46, %s3112_s0 }
 0x275   :  { %2811 = vpow2.f32 %v2703_v49 }
 0x281   :  { %v2810_v48 = vpop.eup %2809 }
 0x282   :  { %393 = vrot.lane.b32.xlu1 %v2810_v48, %s3112_s0  ;;  %v2812_v50 = vpop.eup %2811 }
 0x283   :  { %v374_v52 = vadd.f32 1.0, %v2812_v50 }
 0x285   :  { %2813 = vrcp.f32 %v374_v52  ;;  %v3114_v52 = vmov 6  }
 0x286   :  { %v131_v53 = vsel %vm125_vm0, 1, %v3114_v52 }
 0x287   :  { %vm3407_vm8 = vcmp.gt.s32.totalorder %v3351_v51, %v131_v53  ;;  %v3115_v53 = vmov 5  }
 0x292   :  { %v2814_v58 = vpop.eup %2813 }
 0x2e6   :  { %v400_v55 = vpop.permute.xlu0 %399 }
 0x2e7   :  { %v3362_v56 = vsel %vm130_vm5, %v400_v55, 0.0 }
 0x2e8   :  { %v511_v57 = vrot.slane %v3362_v56, 6 }
 0x2ea   :  { %512 = vrot.lane.b32.xlu0 %v511_v57, %s3112_s0 }
 0x2f4   :  { %v394_v59 = vpop.permute.xlu1 %393 }
 0x2f5   :  { %v396_v60 = vmul.f32 %v2814_v58, %v394_v59 }
 0x2f7   :  { %v3369_v61 = vsel %vm130_vm5, %v396_v60, 0.0 }
 0x2f8   :  { %404 = vst.msk [vmem:[#allocation2] sm:$0x3] %vm403_vm6, %v3369_v61  ;;  %2704 = vmatmul.mubr.msk.f32.vlgmr.msra.gmra.mxu1 %vm290_vm7, %v3369_v61 }
 0x2f9   :  { %703 = vmatpush1.msra.mxu1 %v3223_v20  ;;  %750 = vmatprep.mubr.f32.mxu1 %v3110_v3 }
 0x2fa   :  { %704 = vmatprep.subr.mxu1 %v3225_v21 }
 0x2fb   :  { %705 = vmatpush1.msra.mxu1 %v3228_v23 }
 0x2fc   :  { %706 = vmatprep.subr.mxu1 %v3231_v25 }
 0x2fd   :  { %707 = vmatpush1.msra.mxu1 %v3234_v27 }
 0x2fe   :  { %708 = vmatprep.subr.mxu1 %v3237_v29 }
 0x2ff   :  { %709 = vmatpush1.msra.mxu1 %v3240_v31 }
 0x300   :  { %710 = vmatprep.subr.mxu1 %v3243_v33 }
 0x301   :  { %711 = vmatpush1.msra.mxu1 %v3246_v35 }
 0x302   :  { %712 = vmatprep.subr.mxu1 %v3249_v37 }
 0x303   :  { %713 = vmatpush1.msra.mxu1 %v3252_v39 }
 0x304   :  { %714 = vmatprep.subr.mxu1 %v3255_v41 }
 0x305   :  { %715 = vmatpush1.msra.mxu1 %v3258_v43 }
 0x306   :  { %716 = vmatprep.subr.mxu1 %v3261_v45 }
 0x307   :  { %717 = vmatpush1.msra.mxu1 %v3264_v47 }
 0x308   :  { %973 = vmatprep.subr.mxu1 %v3221_v18 }
 0x35c   :  { %v513_v36 = vpop.permute.xlu0 %512 }
 0x3b8   :  { %v484_v5 = vpop.f32.mrf.mxu1 }
 0x3b9   :  { %v491_v15 = vrot.slane %v484_v5, 6 }
 0x3ba   :  { %v486_v6 = vpop.f32.mrf.mxu1 }
 0x3bb   :  { %v492_v7 = vrot.slane %v486_v6, 6  ;;  %v495_v22 = vadd.f32 %v491_v15, %v3334_v16 }
 0x3bd   :  { %v496_v9 = vadd.f32 %v492_v7, %v3396_v8  ;;  %v2705_v24 = vmul.f32 -1.442695, %v495_v22 }
 0x3bf   :  { %2815 = vtanh.f32 %v496_v9  ;;  %v2706_v48 = vmul.f32 -1.442695, %v496_v9 }
 0x3c0   :  { %2817 = vpow2.f32 %v2705_v24 }
 0x3cc   :  { %v2816_v10 = vpop.eup %2815 }
 0x3cd   :  { %517 = vrot.lane.b32.xlu1 %v2816_v10, %s3112_s0  ;;  %v2818_v26 = vpop.eup %2817 }
 0x3ce   :  { %v503_v28 = vadd.f32 1.0, %v2818_v26 }
 0x3d0   :  { %2819 = vrcp.f32 %v503_v28 }
 0x3dd   :  { %v2820_v30 = vpop.eup %2819 }
 0x3de   :  { %v515_v38 = vmul.f32 %v2820_v30, %v513_v36 }
 0x43f   :  { %v518_v32 = vpop.permute.xlu1 %517 }
 0x440   :  { %v520_v34 = vmul.f32 %v2820_v30, %v518_v32 }
 0x442   :  { %522 = vrot.lane.b32.xlu1 %v520_v34, %s3112_s0 }
 0x4b4   :  { %v523_v40 = vpop.permute.xlu1 %522 }
 0x4b5   :  { %v525_v42 = vadd.f32 %v523_v40, %v515_v38 }
 0x4b7   :  { %2821 = vtanh.f32 %v525_v42  ;;  %v538_v44 = vrot.slane %v525_v42, 2 }
 0x4b8   :  { %2823 = vpow2.f32 %v2706_v48 }
 0x4b9   :  { %539 = vrot.lane.b32.xlu1 %v538_v44, %s3112_s0 }
 0x4c4   :  { %v2822_v46 = vpop.eup %2821 }
 0x4c5   :  { %528 = vrot.lane.b32.xlu0 %v2822_v46, %s3112_s0  ;;  %v2824_v49 = vpop.eup %2823 }
 0x4c6   :  { %v504_v50 = vadd.f32 1.0, %v2824_v49 }
 0x4c8   :  { %2825 = vrcp.f32 %v504_v50 }
 0x4d5   :  { %v2826_v60 = vpop.eup %2825 }
 0x52b   :  { %v540_v57 = vpop.permute.xlu1 %539 }
 0x52c   :  { %v3414_v58 = vsel %vm3407_vm8, %v540_v57, %v3362_v56  ;;  %v133_v57 = vsel %vm125_vm0, 2, %v3115_v53  ;;  %v3116_v53 = vmov 4  }
 0x52d   :  { %v645_v59 = vrot.slane %v3414_v58, 4  ;;  %vm3457_vm9 = vcmp.gt.s32.totalorder %v3351_v51, %v133_v57  ;;  %v135_v57 = vsel %vm125_vm0, 3, %v3116_v53  ;;  %v3117_v53 = vmov 3  }
 0x52e   :  { %vm3507_vm10 = vcmp.gt.s32.totalorder %v3351_v51, %v135_v57  ;;  %v137_v57 = vsel %vm125_vm0, 4, %v3117_v53 }
 0x52f   :  { %646 = vrot.lane.b32.xlu1 %v645_v59, %s3112_s0  ;;  %vm3556_vm11 = vcmp.gt.s32.totalorder %v3351_v51, %v137_v57 }
 0x537   :  { %v529_v1 = vpop.permute.xlu0 %528 }
 0x538   :  { %v531_v5 = vmul.f32 %v2826_v60, %v529_v1 }
 0x53a   :  { %v533_v6 = vrot.slane %v531_v5, 2 }
 0x53c   :  { %v3421_v7 = vsel %vm3407_vm8, %v533_v6, %v3369_v61  ;;  %v3425_v9 = vsel %vm3407_vm8, %v533_v6, 0.0 }
 0x53d   :  { %2707 = vmatmul.mubr.msk.f32.vlgmr.msra.gmra.mxu0 %vm290_vm7, %v3421_v7  ;;  %543 = vst.msk [vmem:[#allocation2 + $0x2] sm:$0x3] %vm403_vm6, %v3425_v9 }
 0x53e   :  { %845 = vmatpush1.msra.mxu0 %v3223_v20  ;;  %892 = vmatprep.mubr.f32.mxu0 %v3110_v3 }
 0x53f   :  { %846 = vmatprep.subr.mxu0 %v3225_v21 }
 0x540   :  { %847 = vmatpush1.msra.mxu0 %v3228_v23 }
 0x541   :  { %848 = vmatprep.subr.mxu0 %v3231_v25 }
 0x542   :  { %849 = vmatpush1.msra.mxu0 %v3234_v27 }
 0x543   :  { %850 = vmatprep.subr.mxu0 %v3237_v29 }
 0x544   :  { %851 = vmatpush1.msra.mxu0 %v3240_v31 }
 0x545   :  { %852 = vmatprep.subr.mxu0 %v3243_v33 }
 0x546   :  { %853 = vmatpush1.msra.mxu0 %v3246_v35 }
 0x547   :  { %854 = vmatprep.subr.mxu0 %v3249_v37 }
 0x548   :  { %855 = vmatpush1.msra.mxu0 %v3252_v39 }
 0x549   :  { %856 = vmatprep.subr.mxu0 %v3255_v41 }
 0x54a   :  { %857 = vmatpush1.msra.mxu0 %v3258_v43 }
 0x54b   :  { %858 = vmatprep.subr.mxu0 %v3261_v45 }
 0x54c   :  { %859 = vmatpush1.msra.mxu0 %v3264_v47 }
 0x54d   :  { %1107 = vmatprep.subr.mxu0 %v3221_v18 }
 0x5a1   :  { %v647_v42 = vpop.permute.xlu1 %646 }
 0x5fd   :  { %v618_v56 = vpop.f32.mrf.mxu0 }
 0x5fe   :  { %v625_v26 = vrot.slane %v618_v56, 4 }
 0x5ff   :  { %v620_v10 = vpop.f32.mrf.mxu0 }
 0x600   :  { %v626_v15 = vrot.slane %v620_v10, 4  ;;  %v629_v28 = vadd.f32 %v625_v26, %v3329_v14 }
 0x602   :  { %v630_v22 = vadd.f32 %v626_v15, %v3343_v19  ;;  %v2708_v30 = vmul.f32 -1.442695, %v629_v28 }
 0x604   :  { %2827 = vtanh.f32 %v630_v22  ;;  %v2709_v14 = vmul.f32 -1.442695, %v630_v22 }
 0x605   :  { %2829 = vpow2.f32 %v2708_v30 }
 0x611   :  { %v2828_v24 = vpop.eup %2827 }
 0x612   :  { %651 = vrot.lane.b32.xlu0 %v2828_v24, %s3112_s0  ;;  %v2830_v32 = vpop.eup %2829 }
 0x613   :  { %v637_v34 = vadd.f32 1.0, %v2830_v32 }
 0x615   :  { %2831 = vrcp.f32 %v637_v34 }
 0x622   :  { %v2832_v36 = vpop.eup %2831 }
 0x623   :  { %v649_v44 = vmul.f32 %v2832_v36, %v647_v42 }
 0x684   :  { %v652_v38 = vpop.permute.xlu0 %651 }
 0x685   :  { %v654_v40 = vmul.f32 %v2832_v36, %v652_v38 }
 0x687   :  { %656 = vrot.lane.b32.xlu0 %v654_v40, %s3112_s0 }
 0x6f9   :  { %v657_v19 = vpop.permute.xlu0 %656 }
 0x6fa   :  { %v659_v46 = vadd.f32 %v657_v19, %v649_v44 }
 0x6fc   :  { %2833 = vtanh.f32 %v659_v46  ;;  %v672_v48 = vrot.slane %v659_v46, 4 }
 0x6fd   :  { %2835 = vpow2.f32 %v2709_v14 }
 0x6fe   :  { %673 = vrot.lane.b32.xlu0 %v672_v48, %s3112_s0 }
 0x709   :  { %v2834_v49 = vpop.eup %2833 }
 0x70a   :  { %662 = vrot.lane.b32.xlu1 %v2834_v49, %s3112_s0  ;;  %v2836_v50 = vpop.eup %2835 }
 0x70b   :  { %v638_v52 = vadd.f32 1.0, %v2836_v50 }
 0x70d   :  { %2837 = vrcp.f32 %v638_v52 }
 0x71a   :  { %v2838_v6 = vpop.eup %2837 }
 0x770   :  { %v674_v60 = vpop.permute.xlu0 %673 }
 0x771   :  { %v3464_v1 = vsel %vm3457_vm9, %v674_v60, %v3414_v58 }
 0x772   :  { %v779_v5 = vrot.slane %v3464_v1, 2 }
 0x774   :  { %780 = vrot.lane.b32.xlu0 %v779_v5, %s3112_s0 }
 0x77c   :  { %v663_v56 = vpop.permute.xlu1 %662 }
 0x77d   :  { %v665_v10 = vmul.f32 %v2838_v6, %v663_v56 }
 0x77f   :  { %v667_v15 = vrot.slane %v665_v10, 4 }
 0x781   :  { %v3471_v22 = vsel %vm3457_vm9, %v667_v15, %v3421_v7  ;;  %v3475_v24 = vsel %vm3457_vm9, %v667_v15, 0.0 }
 0x782   :  { %2710 = vmatmul.mubr.msk.f32.vlgmr.msra.gmra.mxu1 %vm290_vm7, %v3471_v22  ;;  %677 = vst.msk [vmem:[#allocation2 + $0x4] sm:$0x3] %vm403_vm6, %v3475_v24 }
 0x783   :  { %974 = vmatpush1.msra.mxu1 %v3223_v20  ;;  %1021 = vmatprep.mubr.f32.mxu1 %v3110_v3 }
 0x784   :  { %975 = vmatprep.subr.mxu1 %v3225_v21 }
 0x785   :  { %976 = vmatpush1.msra.mxu1 %v3228_v23 }
 0x786   :  { %977 = vmatprep.subr.mxu1 %v3231_v25 }
 0x787   :  { %978 = vmatpush1.msra.mxu1 %v3234_v27 }
 0x788   :  { %979 = vmatprep.subr.mxu1 %v3237_v29 }
 0x789   :  { %980 = vmatpush1.msra.mxu1 %v3240_v31 }
 0x78a   :  { %981 = vmatprep.subr.mxu1 %v3243_v33 }
 0x78b   :  { %982 = vmatpush1.msra.mxu1 %v3246_v35 }
 0x78c   :  { %983 = vmatprep.subr.mxu1 %v3249_v37 }
 0x78d   :  { %984 = vmatpush1.msra.mxu1 %v3252_v39 }
 0x78e   :  { %985 = vmatprep.subr.mxu1 %v3255_v41 }
 0x78f   :  { %986 = vmatpush1.msra.mxu1 %v3258_v43 }
 0x790   :  { %987 = vmatprep.subr.mxu1 %v3261_v45 }
 0x791   :  { %988 = vmatpush1.msra.mxu1 %v3264_v47 }
 0x792   :  { %1241 = vmatprep.subr.mxu1 %v3221_v18 }
 0x7e6   :  { %v781_v19 = vpop.permute.xlu0 %780 }
 0x842   :  { %v752_v58 = vpop.f32.mrf.mxu1 }
 0x843   :  { %v759_v32 = vrot.slane %v752_v58, 2 }
 0x844   :  { %v754_v7 = vpop.f32.mrf.mxu1 }
 0x845   :  { %v760_v26 = vrot.slane %v754_v7, 2  ;;  %v763_v34 = vadd.f32 %v759_v32, %v3334_v16 }
 0x847   :  { %v764_v28 = vadd.f32 %v760_v26, %v3396_v8  ;;  %v2711_v36 = vmul.f32 -1.442695, %v763_v34 }
 0x849   :  { %2839 = vtanh.f32 %v764_v28  ;;  %v2712_v16 = vmul.f32 -1.442695, %v764_v28 }
 0x84a   :  { %2841 = vpow2.f32 %v2711_v36 }
 0x856   :  { %v2840_v30 = vpop.eup %2839 }
 0x857   :  { %785 = vrot.lane.b32.xlu1 %v2840_v30, %s3112_s0  ;;  %v2842_v38 = vpop.eup %2841 }
 0x858   :  { %v771_v40 = vadd.f32 1.0, %v2842_v38 }
 0x85a   :  { %2843 = vrcp.f32 %v771_v40 }
 0x867   :  { %v2844_v42 = vpop.eup %2843 }
 0x868   :  { %v783_v46 = vmul.f32 %v2844_v42, %v781_v19 }
 0x8c9   :  { %v786_v44 = vpop.permute.xlu1 %785 }
 0x8ca   :  { %v788_v18 = vmul.f32 %v2844_v42, %v786_v44 }
 0x8cc   :  { %790 = vrot.lane.b32.xlu1 %v788_v18, %s3112_s0 }
 0x93e   :  { %v791_v8 = vpop.permute.xlu1 %790 }
 0x93f   :  { %v793_v48 = vadd.f32 %v791_v8, %v783_v46 }
 0x941   :  { %2845 = vtanh.f32 %v793_v48  ;;  %v806_v49 = vrot.slane %v793_v48, 6 }
 0x942   :  { %2847 = vpow2.f32 %v2712_v16 }
 0x943   :  { %807 = vrot.lane.b32.xlu1 %v806_v49, %s3112_s0 }
 0x94e   :  { %v2846_v14 = vpop.eup %2845 }
 0x94f   :  { %796 = vrot.lane.b32.xlu0 %v2846_v14, %s3112_s0  ;;  %v2848_v50 = vpop.eup %2847 }
 0x950   :  { %v772_v52 = vadd.f32 1.0, %v2848_v50 }
 0x952   :  { %2849 = vrcp.f32 %v772_v52 }
 0x95f   :  { %v2850_v56 = vpop.eup %2849 }
 0x9b5   :  { %v808_v60 = vpop.permute.xlu1 %807 }
 0x9b6   :  { %v810_v6 = vsel %vm3507_vm10, %v808_v60, %v3464_v1  ;;  %v820_v1 = vrot.slane %v3311_v62, 6 }
 0x9b7   :  { %915 = vrot.lane.b32.xlu1 %v810_v6, %s3112_s0 }
 0x9b8   :  { %v3545_v28 = vsel %vm3336_vm4, %v3325_v13, %v820_v1 }
 0x9c1   :  { %v797_v10 = vpop.permute.xlu0 %796 }
 0x9c2   :  { %v799_v15 = vmul.f32 %v2850_v56, %v797_v10 }
 0x9c4   :  { %v801_v58 = vrot.slane %v799_v15, 6 }
 0x9c6   :  { %v804_v7 = vsel %vm3507_vm10, %v801_v58, %v3471_v22  ;;  %v3520_v26 = vsel %vm3507_vm10, %v801_v58, 0.0 }
 0x9c7   :  { %2713 = vmatmul.mubr.msk.f32.vlgmr.msra.gmra.mxu0 %vm290_vm7, %v804_v7  ;;  %811 = vst.msk [vmem:[#allocation2 + $0x6] sm:$0x3] %vm403_vm6, %v3520_v26 }
 0x9c8   :  { %1108 = vmatpush1.msra.mxu0 %v3223_v20  ;;  %1155 = vmatprep.mubr.f32.mxu0 %v3110_v3 }
 0x9c9   :  { %1109 = vmatprep.subr.mxu0 %v3225_v21 }
 0x9ca   :  { %1110 = vmatpush1.msra.mxu0 %v3228_v23 }
 0x9cb   :  { %1111 = vmatprep.subr.mxu0 %v3231_v25 }
 0x9cc   :  { %1112 = vmatpush1.msra.mxu0 %v3234_v27 }
 0x9cd   :  { %1113 = vmatprep.subr.mxu0 %v3237_v29 }
 0x9ce   :  { %1114 = vmatpush1.msra.mxu0 %v3240_v31 }
 0x9cf   :  { %1115 = vmatprep.subr.mxu0 %v3243_v33 }
 0x9d0   :  { %1116 = vmatpush1.msra.mxu0 %v3246_v35 }
 0x9d1   :  { %1117 = vmatprep.subr.mxu0 %v3249_v37 }
 0x9d2   :  { %1118 = vmatpush1.msra.mxu0 %v3252_v39 }
 0x9d3   :  { %1119 = vmatprep.subr.mxu0 %v3255_v41 }
 0x9d4   :  { %1120 = vmatpush1.msra.mxu0 %v3258_v43 }
 0x9d5   :  { %1121 = vmatprep.subr.mxu0 %v3261_v45 }
 0x9d6   :  { %1122 = vmatpush1.msra.mxu0 %v3264_v47 }
 0xa29   :  { %v916_v46 = vpop.permute.xlu1 %915 }
 0xa87   :  { %v894_v22 = vpop.f32.mrf.mxu0 }
 0xa88   :  { %v899_v36 = vadd.f32 %v894_v22, %v3319_v11 }
 0xa89   :  { %v896_v30 = vpop.f32.mrf.mxu0 }
 0xa8a   :  { %v900_v32 = vadd.f32 %v896_v30, %v3545_v28  ;;  %v2714_v38 = vmul.f32 -1.442695, %v899_v36 }
 0xa8c   :  { %2851 = vtanh.f32 %v900_v32  ;;  %v2715_v16 = vmul.f32 -1.442695, %v900_v32 }
 0xa8d   :  { %2853 = vpow2.f32 %v2714_v38 }
 0xa99   :  { %v2852_v34 = vpop.eup %2851 }
 0xa9a   :  { %920 = vrot.lane.b32.xlu0 %v2852_v34, %s3112_s0  ;;  %v2854_v40 = vpop.eup %2853 }
 0xa9b   :  { %v907_v42 = vadd.f32 1.0, %v2854_v40 }
 0xa9d   :  { %2855 = vrcp.f32 %v907_v42 }
 0xaaa   :  { %v2856_v44 = vpop.eup %2855 }
 0xaab   :  { %v918_v8 = vmul.f32 %v2856_v44, %v916_v46 }
 0xb0c   :  { %v921_v18 = vpop.permute.xlu0 %920 }
 0xb0d   :  { %v923_v19 = vmul.f32 %v2856_v44, %v921_v18  ;;  %v3118_v44 = vmov 2  }
 0xb0e   :  { %v139_v18 = vsel %vm125_vm0, 5, %v3118_v44 }
 0xb0f   :  { %925 = vrot.lane.b32.xlu0 %v923_v19, %s3112_s0  ;;  %vm3609_vm12 = vcmp.gt.s32.totalorder %v3351_v51, %v139_v18 }
 0xb81   :  { %v926_v48 = vpop.permute.xlu0 %925 }
 0xb82   :  { %v928_v49 = vadd.f32 %v926_v48, %v918_v8 }
 0xb84   :  { %2857 = vtanh.f32 %v928_v49  ;;  %938 = vrot.lane.b32.xlu0 %v928_v49, %s3112_s0 }
 0xb85   :  { %2859 = vpow2.f32 %v2715_v16 }
 0xb91   :  { %v2858_v14 = vpop.eup %2857 }
 0xb92   :  { %931 = vrot.lane.b32.xlu1 %v2858_v14, %s3112_s0  ;;  %v2860_v50 = vpop.eup %2859 }
 0xb93   :  { %v908_v52 = vadd.f32 1.0, %v2860_v50 }
 0xb95   :  { %2861 = vrcp.f32 %v908_v52 }
 0xba2   :  { %v2862_v58 = vpop.eup %2861 }
 0xbf6   :  { %v939_v56 = vpop.permute.xlu0 %938 }
 0xbf7   :  { %v3562_v10 = vsel %vm3556_vm11, %v939_v56, %v810_v6 }
 0xbf8   :  { %v1050_v15 = vrot.slane %v3562_v10, 6 }
 0xbfa   :  { %1051 = vrot.lane.b32.xlu0 %v1050_v15, %s3112_s0 }
 0xc04   :  { %v932_v1 = vpop.permute.xlu1 %931 }
 0xc05   :  { %v934_v22 = vmul.f32 %v2862_v58, %v932_v1 }
 0xc07   :  { %v3568_v30 = vsel %vm3556_vm11, %v934_v22, %v804_v7  ;;  %v3572_v32 = vsel %vm3556_vm11, %v934_v22, 0.0 }
 0xc08   :  { %2716 = vmatmul.mubr.msk.f32.vlgmr.msra.gmra.mxu1 %vm290_vm7, %v3568_v30  ;;  %942 = vst.msk [vmem:[#allocation2 + $0x8] sm:$0x3] %vm403_vm6, %v3572_v32 }
 0xc09   :  { %1242 = vmatpush1.msra.mxu1 %v3223_v20  ;;  %1289 = vmatprep.mubr.f32.mxu1 %v3110_v3 }
 0xc0a   :  { %1243 = vmatprep.subr.mxu1 %v3225_v21  ;;  %v949_v21 = vrot.slane %v3311_v62, 2 }
 0xc0b   :  { %1244 = vmatpush1.msra.mxu1 %v3228_v23 }
 0xc0c   :  { %1245 = vmatprep.subr.mxu1 %v3231_v25 }
 0xc0d   :  { %1246 = vmatpush1.msra.mxu1 %v3234_v27  ;;  %v3598_v27 = vsel %vm3336_vm4, %v3325_v13, %v949_v21 }
 0xc0e   :  { %1247 = vmatprep.subr.mxu1 %v3237_v29 }
 0xc0f   :  { %1248 = vmatpush1.msra.mxu1 %v3240_v31 }
 0xc10   :  { %1249 = vmatprep.subr.mxu1 %v3243_v33 }
 0xc11   :  { %1250 = vmatpush1.msra.mxu1 %v3246_v35 }
 0xc12   :  { %1251 = vmatprep.subr.mxu1 %v3249_v37 }
 0xc13   :  { %1252 = vmatpush1.msra.mxu1 %v3252_v39 }
 0xc14   :  { %1253 = vmatprep.subr.mxu1 %v3255_v41 }
 0xc15   :  { %1254 = vmatpush1.msra.mxu1 %v3258_v43 }
 0xc16   :  { %1255 = vmatprep.subr.mxu1 %v3261_v45 }
 0xc17   :  { %1256 = vmatpush1.msra.mxu1 %v3264_v47 }
 0xc6c   :  { %v1052_v62 = vpop.permute.xlu0 %1051 }
 0xcc8   :  { %v1023_v20 = vpop.f32.mrf.mxu1 }
 0xcc9   :  { %v1030_v33 = vrot.slane %v1023_v20, 6 }
 0xcca   :  { %v1025_v23 = vpop.f32.mrf.mxu1 }
 0xccb   :  { %v1031_v25 = vrot.slane %v1025_v23, 6  ;;  %v1034_v35 = vadd.f32 %v1030_v33, %v3323_v12 }
 0xccd   :  { %v1035_v29 = vadd.f32 %v1031_v25, %v3598_v27  ;;  %v2717_v37 = vmul.f32 -1.442695, %v1034_v35 }
 0xccf   :  { %2863 = vtanh.f32 %v1035_v29  ;;  %v2718_v38 = vmul.f32 -1.442695, %v1035_v29 }
 0xcd0   :  { %2865 = vpow2.f32 %v2717_v37 }
 0xcdc   :  { %v2864_v31 = vpop.eup %2863 }
 0xcdd   :  { %1056 = vrot.lane.b32.xlu1 %v2864_v31, %s3112_s0  ;;  %v2866_v39 = vpop.eup %2865 }
 0xcde   :  { %v1042_v41 = vadd.f32 1.0, %v2866_v39 }
 0xce0   :  { %2867 = vrcp.f32 %v1042_v41 }
 0xced   :  { %v2868_v43 = vpop.eup %2867 }
 0xcee   :  { %v1054_v13 = vmul.f32 %v2868_v43, %v1052_v62 }
 0xd4f   :  { %v1057_v45 = vpop.permute.xlu1 %1056 }
 0xd50   :  { %v1059_v47 = vmul.f32 %v2868_v43, %v1057_v45  ;;  %v3119_v45 = vmov 1  }
 0xd52   :  { %1061 = vrot.lane.b32.xlu1 %v1059_v47, %s3112_s0  ;;  %v141_v47 = vsel %vm125_vm0, 6, %v3119_v45  ;;  %vm3121_vm0 = vmmov 0  }
 0xd53   :  { %vm3637_vm13 = vcmp.gt.s32.totalorder %v3351_v51, %v141_v47  ;;  %v3680_v47 = vld [vmem:[#allocation10 + $0x68] sm:$0xff] }
 0xdc4   :  { %v1062_v6 = vpop.permute.xlu1 %1061 }
 0xdc5   :  { %v1064_v7 = vadd.f32 %v1062_v6, %v1054_v13 }
 0xdc7   :  { %2869 = vtanh.f32 %v1064_v7  ;;  %v1077_v34 = vrot.slane %v1064_v7, 2 }
 0xdc8   :  { %2871 = vpow2.f32 %v2718_v38 }
 0xdc9   :  { %1078 = vrot.lane.b32.xlu1 %v1077_v34, %s3112_s0 }
 0xdd4   :  { %v2870_v36 = vpop.eup %2869 }
 0xdd5   :  { %1067 = vrot.lane.b32.xlu0 %v2870_v36, %s3112_s0  ;;  %v2872_v40 = vpop.eup %2871 }
 0xdd6   :  { %v1043_v42 = vadd.f32 1.0, %v2872_v40 }
 0xdd8   :  { %2873 = vrcp.f32 %v1043_v42 }
 0xde5   :  { %v2874_v49 = vpop.eup %2873 }
 0xe3b   :  { %v1079_v46 = vpop.permute.xlu1 %1078 }
 0xe3c   :  { %v1081_v8 = vsel %vm3609_vm12, %v1079_v46, %v3562_v10 }
 0xe3d   :  { %v1184_v48 = vrot.slane %v1081_v8, 4 }
 0xe3f   :  { %1185 = vrot.lane.b32.xlu1 %v1184_v48, %s3112_s0 }
 0xe47   :  { %v1068_v14 = vpop.permute.xlu0 %1067 }
 0xe48   :  { %v1070_v16 = vmul.f32 %v2874_v49, %v1068_v14 }
 0xe4a   :  { %v1072_v50 = vrot.slane %v1070_v16, 2 }
 0xe4c   :  { %v1075_v52 = vsel %vm3609_vm12, %v1072_v50, %v3568_v30  ;;  %v3622_v53 = vsel %vm3609_vm12, %v1072_v50, 0.0 }
 0xe4d   :  { %2719 = vmatmul.mubr.msk.f32.vlgmr.msra.gmra.mxu0 %vm290_vm7, %v1075_v52  ;;  %1082 = vst.msk [vmem:[#allocation2 + $0xa] sm:$0x3] %vm403_vm6, %v3622_v53 }
 0xe4e   :  { %1640 = vmatprep.mubr.f32.mxu0 %v3110_v3 }
 0xeb1   :  { %v1186_v31 = vpop.permute.xlu1 %1185 }
 0xf0d   :  { %v1157_v57 = vpop.f32.mrf.mxu0 }
 0xf0e   :  { %v1164_v1 = vrot.slane %v1157_v57, 4 }
 0xf0f   :  { %v1159_v56 = vpop.f32.mrf.mxu0 }
 0xf10   :  { %v1165_v10 = vrot.slane %v1159_v56, 4  ;;  %v1168_v22 = vadd.f32 %v1164_v1, %v3319_v11 }
 0xf12   :  { %v1169_v15 = vadd.f32 %v1165_v10, %v3545_v28  ;;  %v2720_v30 = vmul.f32 -1.442695, %v1168_v22 }
 0xf14   :  { %2875 = vtanh.f32 %v1169_v15  ;;  %v2721_v11 = vmul.f32 -1.442695, %v1169_v15 }
 0xf15   :  { %2877 = vpow2.f32 %v2720_v30  ;;  %v1368_v30 = vld [vmem:[#allocation9 + $0x38] sm:$0xff] }
 0xf16   :  { %1400 = vmatprep.subr.mxu1 %v1368_v30 }
 0xf21   :  { %v2876_v58 = vpop.eup %2875 }
 0xf22   :  { %1190 = vrot.lane.b32.xlu0 %v2876_v58, %s3112_s0  ;;  %v2878_v20 = vpop.eup %2877 }
 0xf23   :  { %v1176_v21 = vadd.f32 1.0, %v2878_v20 }
 0xf25   :  { %2879 = vrcp.f32 %v1176_v21 }
 0xf32   :  { %v2880_v23 = vpop.eup %2879 }
 0xf33   :  { %v1188_v33 = vmul.f32 %v2880_v23, %v1186_v31  ;;  %v1365_v31 = vld [vmem:[#allocation9 + $0x20] sm:$0xff] }
 0xf94   :  { %v1191_v25 = vpop.permute.xlu0 %1190 }
 0xf95   :  { %v1193_v29 = vmul.f32 %v2880_v23, %v1191_v25  ;;  %v1367_v25 = vld [vmem:[#allocation9 + $0x30] sm:$0xff] }
 0xf97   :  { %1195 = vrot.lane.b32.xlu0 %v1193_v29, %s3112_s0  ;;  %v1366_v29 = vld [vmem:[#allocation9 + $0x28] sm:$0xff] }
0x1009   :  { %v1196_v28 = vpop.permute.xlu0 %1195 }
0x100a   :  { %v1198_v35 = vadd.f32 %v1196_v28, %v1188_v33  ;;  %v1364_v33 = vld [vmem:[#allocation9 + $0x18] sm:$0xff]  ;;  %v1363_v28 = vld [vmem:[#allocation9 + $0x10] sm:$0xff] }
0x100c   :  { %2881 = vtanh.f32 %v1198_v35  ;;  %v1211_v37 = vrot.slane %v1198_v35, 4  ;;  %v1362_v35 = vld [vmem:[#allocation9 + $0x8] sm:$0xff] }
0x100d   :  { %2883 = vpow2.f32 %v2721_v11 }
0x100e   :  { %1212 = vrot.lane.b32.xlu0 %v1211_v37, %s3112_s0  ;;  %v1361_v37 = vld [vmem:[#allocation9] sm:$0xff] }
0x1019   :  { %v2882_v39 = vpop.eup %2881 }
0x101a   :  { %1201 = vrot.lane.b32.xlu1 %v2882_v39, %s3112_s0  ;;  %v2884_v41 = vpop.eup %2883 }
0x101b   :  { %v1177_v43 = vadd.f32 1.0, %v2884_v41  ;;  %v3674_v41 = vld [vmem:[#allocation10 + $0x78] sm:$0xff] }
0x101c   :  { %1592 = vmatprep.subr.mxu0 %v3674_v41 }
0x101d   :  { %2885 = vrcp.f32 %v1177_v43  ;;  %v3677_v43 = vld [vmem:[#allocation10 + $0x70] sm:$0xff] }
0x101e   :  { %1593 = vmatpush1.msra.mxu0 %v3677_v43 }
0x101f   :  { %1594 = vmatprep.subr.mxu0 %v3680_v47 }
0x102a   :  { %v2886_v34 = vpop.eup %2885 }
0x1080   :  { %v1213_v13 = vpop.permute.xlu0 %1212 }
0x1081   :  { %v1215_v6 = vsel %vm3637_vm13, %v1213_v13, %v1081_v8 }
0x1082   :  { %v1318_v7 = vrot.slane %v1215_v6, 2  ;;  %v3685_v6 = vld [vmem:[#allocation10 + $0x60] sm:$0xff] }
0x1083   :  { %1595 = vmatpush1.msra.mxu0 %v3685_v6 }
0x1084   :  { %1319 = vrot.lane.b32.xlu0 %v1318_v7, %s3112_s0 }
0x108c   :  { %v1202_v36 = vpop.permute.xlu1 %1201 }
0x108d   :  { %v1204_v38 = vmul.f32 %v2886_v34, %v1202_v36  ;;  %v3692_v34 = vld [vmem:[#allocation10 + $0x58] sm:$0xff]  ;;  %v3697_v36 = vld [vmem:[#allocation10 + $0x50] sm:$0xff] }
0x108e   :  { %1596 = vmatprep.subr.mxu0 %v3692_v34 }
0x108f   :  { %v1206_v40 = vrot.slane %v1204_v38, 4  ;;  %1597 = vmatpush1.msra.mxu0 %v3697_v36  ;;  %v3700_v38 = vld [vmem:[#allocation10 + $0x48] sm:$0xff] }
0x1090   :  { %1598 = vmatprep.subr.mxu0 %v3700_v38 }
0x1091   :  { %v1209_v2 = vsel %vm3637_vm13, %v1206_v40, %v1075_v52  ;;  %v1208_v42 = vsel %vm3637_vm13, %v1206_v40, 0.0 }
0x1092   :  { %2722 = vmatmul.mubr.msk.f32.vlgmr.msra.gmra.mxu1 %vm290_vm7, %v1209_v2  ;;  %1216 = vst.msk [vmem:[#allocation2 + $0xc] sm:$0x3] %vm403_vm6, %v1208_v42  ;;  %v3703_v2 = vld [vmem:[#allocation10 + $0x40] sm:$0xff] }
0x1093   :  { %1440 = vmatprep.mubr.f32.mxu1 %v3110_v3  ;;  %1401 = vmatpush1.msra.mxu1 %v1367_v25 }
0x1094   :  { %1402 = vmatprep.subr.mxu1 %v1366_v29  ;;  %1599 = vmatpush1.msra.mxu0 %v3703_v2 }
0x1095   :  { %1403 = vmatpush1.msra.mxu1 %v1365_v31 }
0x1096   :  { %1404 = vmatprep.subr.mxu1 %v1364_v33 }
0x1097   :  { %1405 = vmatpush1.msra.mxu1 %v1363_v28 }
0x1098   :  { %1406 = vmatprep.subr.mxu1 %v1362_v35 }
0x1099   :  { %1407 = vmatpush1.msra.mxu1 %v1361_v37 }
0x1152   :  { %v1291_v44 = vpop.f32.mrf.mxu1 }
0x1153   :  { %v1298_v49 = vrot.slane %v1291_v44, 2  ;;  %v3709_v44 = vld [vmem:[#allocation10 + $0x30] sm:$0xff] }
0x1154   :  { %v1293_v18 = vpop.f32.mrf.mxu1 }
0x1155   :  { %v1299_v46 = vrot.slane %v1293_v18, 2  ;;  %v1302_v14 = vadd.f32 %v1298_v49, %v3323_v12  ;;  %v1320_v12 = vpop.permute.xlu0 %1319  ;;  %v3714_v18 = vld [vmem:[#allocation10 + $0x28] sm:$0xff] }
0x1156   :  { %v3726_v49 = vld [vmem:[#allocation10 + $0x8] sm:$0xff] }
0x1157   :  { %v1303_v8 = vadd.f32 %v1299_v46, %v3598_v27  ;;  %v2723_v16 = vmul.f32 -1.442695, %v1302_v14  ;;  %v3718_v46 = vld [vmem:[#allocation10 + $0x20] sm:$0xff] }
0x1159   :  { %2887 = vtanh.f32 %v1303_v8 }
0x115a   :  { %2889 = vpow2.f32 %v2723_v16 }
0x1166   :  { %v2888_v48 = vpop.eup %2887 }
0x1167   :  { %1324 = vrot.lane.b32.xlu1 %v2888_v48, %s3112_s0  ;;  %v2890_v50 = vpop.eup %2889  ;;  %v3723_v48 = vld [vmem:[#allocation10 + $0x10] sm:$0xff] }
0x1168   :  { %v1310_v52 = vadd.f32 1.0, %v2890_v50  ;;  %v1357_v50 = vld [vmem:[%s4082_s4 + $0x30] sm:$0xff] }
0x116a   :  { %2891 = vrcp.f32 %v1310_v52 }
0x1177   :  { %v2892_v57 = vpop.eup %2891 }
0x1178   :  { %v1322_v27 = vmul.f32 %v2892_v57, %v1320_v12  ;;  %v1353_v12 = vld [vmem:[%s4082_s4 + $0x10] sm:$0xff] }
0x11d9   :  { %v1325_v56 = vpop.permute.xlu1 %1324 }
0x11da   :  { %v1327_v10 = vmul.f32 %v2892_v57, %v1325_v56  ;;  %v1356_v57 = vld [vmem:[%s4082_s4 + $0x28] sm:$0xff]  ;;  %v1355_v56 = vld [vmem:[%s4082_s4 + $0x20] sm:$0xff] }
0x11dc   :  { %1329 = vrot.lane.b32.xlu1 %v1327_v10, %s3112_s0  ;;  %v1354_v10 = vld [vmem:[%s4082_s4 + $0x18] sm:$0xff] }
0x11e0   :  { %944 = vrot.lane.b32.xlu1 %v3572_v32, %s3120_s1 }
0x11e4   :  { %1218 = vrot.lane.b32.xlu1 %v1208_v42, %s3120_s1  ;;  %v3707_v42 = vld [vmem:[#allocation10 + $0x38] sm:$0xff] }
0x11e5   :  { %1600 = vmatprep.subr.mxu0 %v3707_v42 }
0x11e6   :  { %1601 = vmatpush1.msra.mxu0 %v3709_v44 }
0x11e7   :  { %1602 = vmatprep.subr.mxu0 %v3714_v18 }
0x11e8   :  { %406 = vrot.lane.b32.xlu1 %v3369_v61, %s3120_s1  ;;  %1603 = vmatpush1.msra.mxu0 %v3718_v46 }
0x11ec   :  { %679 = vrot.lane.b32.xlu1 %v3475_v24, %s3120_s1  ;;  %v2724_v24 = vmul.f32 -1.442695, %v1303_v8  ;;  %v3721_v8 = vld [vmem:[#allocation10 + $0x18] sm:$0xff] }
0x11ed   :  { %1604 = vmatprep.subr.mxu0 %v3721_v8 }
0x11ee   :  { %1605 = vmatpush1.msra.mxu0 %v3723_v48 }
0x11ef   :  { %1606 = vmatprep.subr.mxu0 %v3726_v49 }
0x124e   :  { %v1330_v15 = vpop.permute.xlu1 %1329 }
0x124f   :  { %v1332_v58 = vadd.f32 %v1330_v15, %v1322_v27  ;;  %v1352_v15 = vld [vmem:[%s4082_s4 + $0x8] sm:$0xff] }
0x1251   :  { %2893 = vtanh.f32 %v1332_v58  ;;  %v1351_v58 = vld [vmem:[%s4082_s4] sm:$0xff] }
0x1252   :  { %v945_v1 = vpop.permute.xlu1 %944  ;;  %2895 = vpow2.f32 %v2724_v24 }
0x1253   :  { %947 = vst.msk [vmem:[#allocation3 + $0x6] sm:$0x3] %vm403_vm6, %v945_v1  ;;  %v1349_v1 = vld [vmem:[#allocation2] sm:$0xff] }
0x1256   :  { %v1219_v22 = vpop.permute.xlu1 %1218 }
0x1257   :  { %1221 = vst.msk [vmem:[#allocation3 + $0x2] sm:$0x3] %vm403_vm6, %v1219_v22 }
0x125a   :  { %v407_v32 = vpop.permute.xlu1 %406 }
0x125b   :  { %409 = vst.msk [vmem:[#allocation3 + $0xe] sm:$0x3] %vm403_vm6, %v407_v32  ;;  %v1539_v32 = vshrl.u32 %v92_v0, 7 }
0x125d   :  { %v1540_v30 = vsub.s32 0, %v1539_v32  ;;  %v1544_v29 = vsub.s32 1, %v1539_v32 }
0x125e   :  { %v2894_v61 = vpop.eup %2893  ;;  %v680_v20 = vpop.permute.xlu1 %679 }
0x125f   :  { %682 = vst.msk [vmem:[#allocation3 + $0xa] sm:$0x3] %vm403_vm6, %v680_v20  ;;  %1335 = vrot.lane.b32.xlu0 %v2894_v61, %s3112_s0  ;;  %v2896_v21 = vpop.eup %2895  ;;  %v1536_v61 = vld [vmem:[%s4085_s7] sm:$0x3] }
0x1260   :  { %v1311_v23 = vadd.f32 1.0, %v2896_v21  ;;  %v1541_v20 = vrot.slane %v1536_v61, %v1540_v30  ;;  %v1545_v35 = vrot.slane %v1536_v61, %v1544_v29 }
0x1262   :  { %2897 = vrcp.f32 %v1311_v23 }
0x1263   :  { %1084 = vrot.lane.b32.xlu0 %v3622_v53, %s3120_s1 }
0x1267   :  { %545 = vrot.lane.b32.xlu0 %v3425_v9, %s3120_s1  ;;  %v1358_v9 = vld [vmem:[%s4082_s4 + $0x38] sm:$0xff] }
0x1268   :  { %1483 = vmatprep.subr.mxu1 %v1358_v9 }
0x126f   :  { %v2898_v53 = vpop.eup %2897 }
0x12d1   :  { %v1336_v39 = vpop.permute.xlu0 %1335 }
0x12d2   :  { %v1338_v11 = vmul.f32 %v2898_v53, %v1336_v39 }
0x12d4   :  { %v1340_v45 = vrot.slane %v1338_v11, 6 }
0x12d5   :  { %v1085_v13 = vpop.permute.xlu0 %1084 }
0x12d6   :  { %1087 = vst.msk [vmem:[#allocation3 + $0x4] sm:$0x3] %vm403_vm6, %v1085_v13  ;;  %v1342_v7 = vsel %vm144_vm14, %v1340_v45, 0.0 }
0x12d7   :  { %1343 = vst.msk [vmem:[#allocation2 + $0xe] sm:$0x3] %vm403_vm6, %v1342_v7  ;;  %1345 = vrot.lane.b32.xlu0 %v1342_v7, %s3120_s1 }
0x12d9   :  { %v546_v40 = vpop.permute.xlu0 %545 }
0x12da   :  { %548 = vst.msk [vmem:[#allocation3 + $0xc] sm:$0x3] %vm403_vm6, %v546_v40 }
0x12db   :  { %813 = vrot.lane.b32.xlu0 %v3520_v26, %s3120_s1  ;;  %v3728_v26 = vld [vmem:[#allocation10] sm:$0xff] }
0x12dc   :  { %1607 = vmatpush1.msra.mxu0 %v3728_v26 }
0x12dd   :  { %1641 = vmatmul.mubr.f32.vlgmr.msra.gmra.mxu0 %v3110_v3  ;;  %1840 = vmatprep.subr.mxu0 %v3674_v41 }
0x12de   :  { %1841 = vmatpush1.msra.mxu0 %v3677_v43  ;;  %1888 = vmatprep.mubr.f32.mxu0 %v3110_v3  ;;  %v1350_v22 = vld [vmem:[#allocation2 + $0x8] sm:$0xff] }
0x12df   :  { %1842 = vmatprep.subr.mxu0 %v3680_v47 }
0x12e0   :  { %1843 = vmatpush1.msra.mxu0 %v3685_v6 }
0x12e1   :  { %1844 = vmatprep.subr.mxu0 %v3692_v34 }
0x12e2   :  { %1845 = vmatpush1.msra.mxu0 %v3697_v36 }
0x12e3   :  { %1846 = vmatprep.subr.mxu0 %v3700_v38 }
0x12e4   :  { %1847 = vmatpush1.msra.mxu0 %v3703_v2 }
0x12e5   :  { %1848 = vmatprep.subr.mxu0 %v3707_v42 }
0x12e6   :  { %1849 = vmatpush1.msra.mxu0 %v3709_v44 }
0x12e7   :  { %1850 = vmatprep.subr.mxu0 %v3714_v18 }
0x12e8   :  { %1851 = vmatpush1.msra.mxu0 %v3718_v46 }
0x12e9   :  { %1852 = vmatprep.subr.mxu0 %v3721_v8 }
0x12ea   :  { %1853 = vmatpush1.msra.mxu0 %v3723_v48 }
0x12eb   :  { %1854 = vmatprep.subr.mxu0 %v3726_v49 }
0x12ec   :  { %1855 = vmatpush1.msra.mxu0 %v3728_v26 }
0x12ed   :  { %2106 = vmatprep.subr.mxu0 %v3674_v41 }
0x1349   :  { %v1346_v14 = vpop.permute.xlu0 %1345 }
0x134a   :  { %1348 = vst.msk [vmem:[#allocation3] sm:$0x3] %vm403_vm6, %v1346_v14 }
0x134d   :  { %v814_v16 = vpop.permute.xlu0 %813 }
0x134e   :  { %816 = vst.msk [vmem:[#allocation3 + $0x8] sm:$0x3] %vm403_vm6, %v814_v16 }
0x1351   :  { %v1359_v52 = vld [vmem:[#allocation3] sm:$0xff] }
0x1352   :  { %2725 = vmatmul.mubr.msk.f32.vlgmr.msra.gmra.mxu1 %vm1369_vm15, %v1359_v52 }
0x1353   :  { %1484 = vmatpush1.msra.mxu1 %v1357_v50  ;;  %1446 = vmatprep.mubr.f32.mxu1 %v3110_v3 }
0x1354   :  { %1485 = vmatprep.subr.mxu1 %v1356_v57 }
0x1355   :  { %1486 = vmatpush1.msra.mxu1 %v1355_v56  ;;  %v1360_v27 = vld [vmem:[#allocation3 + $0x8] sm:$0xff] }
0x1356   :  { %1487 = vmatprep.subr.mxu1 %v1354_v10  ;;  %2726 = vmatmul.mubr.msk.f32.gmra.mxu1 %vm1369_vm15, %v1360_v27 }
0x1357   :  { %1488 = vmatpush1.msra.mxu1 %v1353_v12  ;;  %1523 = vmatprep.mubr.f32.mxu1 %v3110_v3 }
0x1358   :  { %1489 = vmatprep.subr.mxu1 %v1352_v15 }
0x1359   :  { %1490 = vmatpush1.msra.mxu1 %v1351_v58 }
0x135a   :  { %2727 = vmatmul.mubr.msk.f32.vlgmr.msra.gmra.mxu1 %vm1369_vm15, %v1349_v1  ;;  %1711 = vmatprep.subr.mxu1 %v3674_v41 }
0x135b   :  { %1529 = vmatprep.mubr.f32.mxu1 %v3110_v3  ;;  %1712 = vmatpush1.msra.mxu1 %v3677_v43 }
0x135c   :  { %1713 = vmatprep.subr.mxu1 %v3680_v47 }
0x135d   :  { %1714 = vmatpush1.msra.mxu1 %v3685_v6 }
0x135e   :  { %2728 = vmatmul.mubr.msk.f32.gmra.mxu1 %vm1369_vm15, %v1350_v22  ;;  %1715 = vmatprep.subr.mxu1 %v3692_v34 }
0x135f   :  { %1716 = vmatpush1.msra.mxu1 %v3697_v36  ;;  %1759 = vmatprep.mubr.f32.mxu1 %v3110_v3 }
0x1360   :  { %1717 = vmatprep.subr.mxu1 %v3700_v38 }
0x1361   :  { %1718 = vmatpush1.msra.mxu1 %v3703_v2 }
0x1362   :  { %1719 = vmatprep.subr.mxu1 %v3707_v42 }
0x1363   :  { %1720 = vmatpush1.msra.mxu1 %v3709_v44 }
0x1364   :  { %1721 = vmatprep.subr.mxu1 %v3714_v18 }
0x1365   :  { %1722 = vmatpush1.msra.mxu1 %v3718_v46 }
0x1366   :  { %1723 = vmatprep.subr.mxu1 %v3721_v8 }
0x1367   :  { %1724 = vmatpush1.msra.mxu1 %v3723_v48 }
0x1368   :  { %1725 = vmatprep.subr.mxu1 %v3726_v49 }
0x1369   :  { %1726 = vmatpush1.msra.mxu1 %v3728_v26 }
0x136a   :  { %1969 = vmatprep.subr.mxu1 %v3674_v41 }
0x139d   :  { %v1642_v50 = vpop.f32.mrf.mxu0 }
0x139f   :  { %v1644_v61 = vpop.f32.mrf.mxu0 }
0x1412   :  { %v1442_v24 = vpop.f32.mrf.mxu1 }
0x1414   :  { %v1444_v21 = vpop.f32.mrf.mxu1 }
0x1416   :  { %v1448_v23 = vpop.f32.mrf.mxu1 }
0x1418   :  { %v1450_v25 = vpop.f32.mrf.mxu1 }
0x141a   :  { %v1525_v31 = vpop.f32.mrf.mxu1 }
0x141b   :  { %v1526_v33 = vadd.f32 %v1525_v31, %v1442_v24 }
0x141c   :  { %v1527_v28 = vpop.f32.mrf.mxu1 }
0x141d   :  { %v1548_v37 = vadd.f32 %v1541_v20, %v1526_v33  ;;  %v1528_v9 = vadd.f32 %v1527_v28, %v1444_v21 }
0x141e   :  { %v1531_v53 = vpop.f32.mrf.mxu1 }
0x141f   :  { %v1532_v39 = vadd.f32 %v1531_v53, %v1448_v23  ;;  %v1549_v0 = vadd.f32 %v1545_v35, %v1528_v9  ;;  %v2081_v7 = vrot.slane %v1548_v37, 6  ;;  %v2205_v40 = vrot.slane %v1548_v37, 2 }
0x1420   :  { %v1533_v11 = vpop.f32.mrf.mxu1 }
0x1421   :  { %v1550_v45 = vadd.f32 %v1541_v20, %v1532_v39  ;;  %v1534_v13 = vadd.f32 %v1533_v11, %v1450_v25  ;;  %v2082_v56 = vrot.slane %v1549_v0, 6  ;;  %v2206_v12 = vrot.slane %v1549_v0, 2 }
0x1423   :  { %v1551_v14 = vadd.f32 %v1545_v35, %v1534_v13  ;;  %v1570_v16 = vrot.slane %v1550_v45, 6  ;;  %v1686_v52 = vrot.slane %v1550_v45, 2  ;;  %v3806_v57 = vsel %vm3313_vm3, %v1550_v45, %v2081_v7 }
0x1424   :  { %v3810_v10 = vsel %vm3313_vm3, %v1550_v45, %v2205_v40 }
0x1425   :  { %v3814_v27 = vsel %vm3313_vm3, %v1548_v37, %v1570_v16  ;;  %v1571_v15 = vrot.slane %v1551_v14, 6  ;;  %v3818_v58 = vsel %vm3313_vm3, %v1548_v37, %v1686_v52  ;;  %v1687_v1 = vrot.slane %v1551_v14, 2 }
0x1426   :  { %v3822_v22 = vsel %vm3336_vm4, %v1551_v14, %v2082_v56  ;;  %v3826_v32 = vsel %vm3336_vm4, %v1551_v14, %v2206_v12  ;;  %v1647_v21 = vadd.f32 %v1642_v50, %v3814_v27 }
0x1427   :  { %v3830_v30 = vsel %vm3336_vm4, %v1549_v0, %v1571_v15  ;;  %v3834_v20 = vsel %vm3336_vm4, %v1549_v0, %v1687_v1 }
0x1428   :  { %v1648_v63 = vadd.f32 %v1644_v61, %v3830_v30  ;;  %v2729_v23 = vmul.f32 -1.442695, %v1647_v21 }
0x142a   :  { %2899 = vtanh.f32 %v1648_v63  ;;  %v2730_v53 = vmul.f32 -1.442695, %v1648_v63 }
0x142b   :  { %2901 = vpow2.f32 %v2729_v23 }
0x1437   :  { %v2900_v24 = vpop.eup %2899 }
0x1438   :  { %1664 = vrot.lane.b32.xlu1 %v2900_v24, %s3112_s0  ;;  %v2902_v25 = vpop.eup %2901 }
0x1439   :  { %v1655_v29 = vadd.f32 1.0, %v2902_v25 }
0x143b   :  { %2903 = vrcp.f32 %v1655_v29 }
0x1448   :  { %v2904_v31 = vpop.eup %2903 }
0x1449   :  { %v1662_v17 = vmul.f32 0.0, %v2904_v31 }
0x14aa   :  { %v1665_v33 = vpop.permute.xlu1 %1664 }
0x14ab   :  { %v1667_v28 = vmul.f32 %v2904_v31, %v1665_v33 }
0x14ad   :  { %1669 = vrot.lane.b32.xlu0 %v1667_v28, %s3112_s0 }
0x151f   :  { %v1670_v35 = vpop.permute.xlu0 %1669 }
0x1520   :  { %v1672_v37 = vadd.f32 %v1670_v35, %v1662_v17 }
0x1522   :  { %2905 = vtanh.f32 %v1672_v37  ;;  %1681 = vrot.lane.b32.xlu0 %v1672_v37, %s3112_s0 }
0x1523   :  { %2907 = vpow2.f32 %v2730_v53 }
0x152f   :  { %v2906_v9 = vpop.eup %2905 }
0x1530   :  { %1675 = vrot.lane.b32.xlu1 %v2906_v9, %s3112_s0  ;;  %v2908_v39 = vpop.eup %2907 }
0x1531   :  { %v1656_v0 = vadd.f32 1.0, %v2908_v39 }
0x1533   :  { %2909 = vrcp.f32 %v1656_v0 }
0x1540   :  { %v2910_v7 = vpop.eup %2909 }
0x1594   :  { %v1682_v11 = vpop.permute.xlu0 %1681 }
0x1595   :  { %v1684_v45 = vsel %vm130_vm5, %v1682_v11, 0.0 }
0x1596   :  { %v1788_v13 = vrot.slane %v1684_v45, 6 }
0x1598   :  { %1789 = vrot.lane.b32.xlu0 %v1788_v13, %s3112_s0 }
0x15a2   :  { %v1676_v40 = vpop.permute.xlu1 %1675 }
0x15a3   :  { %v1678_v14 = vmul.f32 %v2910_v7, %v1676_v40 }
0x15a5   :  { %v3849_v16 = vsel %vm130_vm5, %v1678_v14, 0.0 }
0x15a6   :  { %2731 = vmatmul.mubr.msk.f32.vlgmr.msra.gmra.mxu1 %vm290_vm7, %v3849_v16 }
0x15a7   :  { %1970 = vmatpush1.msra.mxu1 %v3677_v43  ;;  %2017 = vmatprep.mubr.f32.mxu1 %v3110_v3 }
0x15a8   :  { %1971 = vmatprep.subr.mxu1 %v3680_v47 }
0x15a9   :  { %1972 = vmatpush1.msra.mxu1 %v3685_v6 }
0x15aa   :  { %1973 = vmatprep.subr.mxu1 %v3692_v34 }
0x15ab   :  { %1974 = vmatpush1.msra.mxu1 %v3697_v36 }
0x15ac   :  { %1975 = vmatprep.subr.mxu1 %v3700_v38 }
0x15ad   :  { %1976 = vmatpush1.msra.mxu1 %v3703_v2 }
0x15ae   :  { %1977 = vmatprep.subr.mxu1 %v3707_v42 }
0x15af   :  { %1978 = vmatpush1.msra.mxu1 %v3709_v44 }
0x15b0   :  { %1979 = vmatprep.subr.mxu1 %v3714_v18 }
0x15b1   :  { %1980 = vmatpush1.msra.mxu1 %v3718_v46 }
0x15b2   :  { %1981 = vmatprep.subr.mxu1 %v3721_v8 }
0x15b3   :  { %1982 = vmatpush1.msra.mxu1 %v3723_v48 }
0x15b4   :  { %1983 = vmatprep.subr.mxu1 %v3726_v49 }
0x15b5   :  { %1984 = vmatpush1.msra.mxu1 %v3728_v26 }
0x15b6   :  { %2230 = vmatprep.subr.mxu1 %v3674_v41 }
0x160a   :  { %v1790_v29 = vpop.permute.xlu0 %1789 }
0x1666   :  { %v1761_v54 = vpop.f32.mrf.mxu1 }
0x1667   :  { %v1768_v15 = vrot.slane %v1761_v54, 6 }
0x1668   :  { %v1763_v50 = vpop.f32.mrf.mxu1 }
0x1669   :  { %v1769_v52 = vrot.slane %v1763_v50, 6  ;;  %v1772_v1 = vadd.f32 %v1768_v15, %v3818_v58 }
0x166b   :  { %v1773_v56 = vadd.f32 %v1769_v52, %v3834_v20  ;;  %v2732_v61 = vmul.f32 -1.442695, %v1772_v1 }
0x166d   :  { %2911 = vtanh.f32 %v1773_v56  ;;  %v2733_v37 = vmul.f32 -1.442695, %v1773_v56 }
0x166e   :  { %2913 = vpow2.f32 %v2732_v61 }
0x167a   :  { %v2912_v12 = vpop.eup %2911 }
0x167b   :  { %1794 = vrot.lane.b32.xlu1 %v2912_v12, %s3112_s0  ;;  %v2914_v63 = vpop.eup %2913 }
0x167c   :  { %v1780_v24 = vadd.f32 1.0, %v2914_v63 }
0x167e   :  { %2915 = vrcp.f32 %v1780_v24 }
0x168b   :  { %v2916_v21 = vpop.eup %2915 }
0x168c   :  { %v1792_v31 = vmul.f32 %v2916_v21, %v1790_v29 }
0x16ed   :  { %v1795_v23 = vpop.permute.xlu1 %1794 }
0x16ee   :  { %v1797_v25 = vmul.f32 %v2916_v21, %v1795_v23 }
0x16f0   :  { %1799 = vrot.lane.b32.xlu1 %v1797_v25, %s3112_s0 }
0x1762   :  { %v1800_v33 = vpop.permute.xlu1 %1799 }
0x1763   :  { %v1802_v28 = vadd.f32 %v1800_v33, %v1792_v31 }
0x1765   :  { %2917 = vtanh.f32 %v1802_v28  ;;  %v1815_v17 = vrot.slane %v1802_v28, 2 }
0x1766   :  { %2919 = vpow2.f32 %v2733_v37 }
0x1767   :  { %1816 = vrot.lane.b32.xlu1 %v1815_v17, %s3112_s0 }
0x1772   :  { %v2918_v35 = vpop.eup %2917 }
0x1773   :  { %1805 = vrot.lane.b32.xlu0 %v2918_v35, %s3112_s0  ;;  %v2920_v9 = vpop.eup %2919 }
0x1774   :  { %v1781_v53 = vadd.f32 1.0, %v2920_v9 }
0x1776   :  { %2921 = vrcp.f32 %v1781_v53 }
0x1783   :  { %v2922_v13 = vpop.eup %2921 }
0x17d9   :  { %v1817_v39 = vpop.permute.xlu1 %1816 }
0x17da   :  { %v1819_v0 = vsel %vm3407_vm8, %v1817_v39, %v1684_v45 }
0x17db   :  { %v1917_v11 = vrot.slane %v1819_v0, 4 }
0x17dd   :  { %1918 = vrot.lane.b32.xlu1 %v1917_v11, %s3112_s0 }
0x17e5   :  { %v1806_v7 = vpop.permute.xlu0 %1805 }
0x17e6   :  { %v1808_v40 = vmul.f32 %v2922_v13, %v1806_v7 }
0x17e8   :  { %v1810_v14 = vrot.slane %v1808_v40, 2 }
0x17ea   :  { %v3882_v54 = vsel %vm3407_vm8, %v1810_v14, %v3849_v16  ;;  %v1812_v7 = vsel %vm3407_vm8, %v1810_v14, 0.0 }
0x17eb   :  { %2734 = vmatmul.mubr.msk.f32.vlgmr.msra.gmra.mxu0 %vm290_vm7, %v3882_v54 }
0x17ec   :  { %2107 = vmatpush1.msra.mxu0 %v3677_v43  ;;  %2154 = vmatprep.mubr.f32.mxu0 %v3110_v3 }
0x17ed   :  { %2108 = vmatprep.subr.mxu0 %v3680_v47 }
0x17ee   :  { %2109 = vmatpush1.msra.mxu0 %v3685_v6 }
0x17ef   :  { %2110 = vmatprep.subr.mxu0 %v3692_v34 }
0x17f0   :  { %2111 = vmatpush1.msra.mxu0 %v3697_v36 }
0x17f1   :  { %2112 = vmatprep.subr.mxu0 %v3700_v38 }
0x17f2   :  { %2113 = vmatpush1.msra.mxu0 %v3703_v2 }
0x17f3   :  { %2114 = vmatprep.subr.mxu0 %v3707_v42 }
0x17f4   :  { %2115 = vmatpush1.msra.mxu0 %v3709_v44 }
0x17f5   :  { %2116 = vmatprep.subr.mxu0 %v3714_v18 }
0x17f6   :  { %2117 = vmatpush1.msra.mxu0 %v3718_v46 }
0x17f7   :  { %2118 = vmatprep.subr.mxu0 %v3721_v8 }
0x17f8   :  { %2119 = vmatpush1.msra.mxu0 %v3723_v48 }
0x17f9   :  { %2120 = vmatprep.subr.mxu0 %v3726_v49 }
0x17fa   :  { %2121 = vmatpush1.msra.mxu0 %v3728_v26 }
0x17fb   :  { %2359 = vmatprep.subr.mxu0 %v3674_v41 }
0x184f   :  { %v1919_v29 = vpop.permute.xlu1 %1918 }
0x18ab   :  { %v1890_v45 = vpop.f32.mrf.mxu0 }
0x18ac   :  { %v1897_v15 = vrot.slane %v1890_v45, 4 }
0x18ad   :  { %v1892_v50 = vpop.f32.mrf.mxu0 }
0x18ae   :  { %v1898_v52 = vrot.slane %v1892_v50, 4  ;;  %v1901_v1 = vadd.f32 %v1897_v15, %v3814_v27  ;;  %v1820_v50 = vadd.f32 %v1812_v7, %v3849_v16 }
0x18b0   :  { %v1902_v56 = vadd.f32 %v1898_v52, %v3830_v30  ;;  %v2735_v61 = vmul.f32 -1.442695, %v1901_v1 }
0x18b2   :  { %2923 = vtanh.f32 %v1902_v56  ;;  %v2736_v27 = vmul.f32 -1.442695, %v1902_v56 }
0x18b3   :  { %2925 = vpow2.f32 %v2735_v61 }
0x18bf   :  { %v2924_v12 = vpop.eup %2923 }
0x18c0   :  { %1923 = vrot.lane.b32.xlu0 %v2924_v12, %s3112_s0  ;;  %v2926_v63 = vpop.eup %2925 }
0x18c1   :  { %v1909_v24 = vadd.f32 1.0, %v2926_v63 }
0x18c3   :  { %2927 = vrcp.f32 %v1909_v24 }
0x18d0   :  { %v2928_v21 = vpop.eup %2927 }
0x18d1   :  { %v1921_v31 = vmul.f32 %v2928_v21, %v1919_v29 }
0x1932   :  { %v1924_v23 = vpop.permute.xlu0 %1923 }
0x1933   :  { %v1926_v25 = vmul.f32 %v2928_v21, %v1924_v23 }
0x1935   :  { %1928 = vrot.lane.b32.xlu0 %v1926_v25, %s3112_s0 }
0x19a7   :  { %v1929_v30 = vpop.permute.xlu0 %1928 }
0x19a8   :  { %v1931_v33 = vadd.f32 %v1929_v30, %v1921_v31 }
0x19aa   :  { %2929 = vtanh.f32 %v1931_v33  ;;  %v1944_v28 = vrot.slane %v1931_v33, 4 }
0x19ab   :  { %2931 = vpow2.f32 %v2736_v27 }
0x19ac   :  { %1945 = vrot.lane.b32.xlu0 %v1944_v28, %s3112_s0 }
0x19b7   :  { %v2930_v17 = vpop.eup %2929 }
0x19b8   :  { %1934 = vrot.lane.b32.xlu1 %v2930_v17, %s3112_s0  ;;  %v2932_v35 = vpop.eup %2931 }
0x19b9   :  { %v1910_v37 = vadd.f32 1.0, %v2932_v35 }
0x19bb   :  { %2933 = vrcp.f32 %v1910_v37 }
0x19c8   :  { %v2934_v11 = vpop.eup %2933 }
0x1a1e   :  { %v1946_v9 = vpop.permute.xlu0 %1945 }
0x1a1f   :  { %v3911_v53 = vsel %vm3457_vm9, %v1946_v9, %v1819_v0 }
0x1a20   :  { %v2046_v39 = vrot.slane %v3911_v53, 2 }
0x1a22   :  { %2047 = vrot.lane.b32.xlu0 %v2046_v39, %s3112_s0 }
0x1a2a   :  { %v1935_v13 = vpop.permute.xlu1 %1934 }
0x1a2b   :  { %v1937_v40 = vmul.f32 %v2934_v11, %v1935_v13 }
0x1a2d   :  { %v1939_v45 = vrot.slane %v1937_v40, 4 }
0x1a2f   :  { %v1941_v52 = vsel %vm3457_vm9, %v1939_v45, 0.0  ;;  %v1942_v0 = vsel %vm3457_vm9, %v1939_v45, %v3882_v54 }
0x1a30   :  { %v1949_v56 = vadd.f32 %v1941_v52, %v1820_v50  ;;  %2737 = vmatmul.mubr.msk.f32.vlgmr.msra.gmra.mxu1 %vm290_vm7, %v1942_v0 }
0x1a31   :  { %2231 = vmatpush1.msra.mxu1 %v3677_v43  ;;  %2278 = vmatprep.mubr.f32.mxu1 %v3110_v3 }
0x1a32   :  { %2232 = vmatprep.subr.mxu1 %v3680_v47 }
0x1a33   :  { %2233 = vmatpush1.msra.mxu1 %v3685_v6 }
0x1a34   :  { %2234 = vmatprep.subr.mxu1 %v3692_v34 }
0x1a35   :  { %2235 = vmatpush1.msra.mxu1 %v3697_v36 }
0x1a36   :  { %2236 = vmatprep.subr.mxu1 %v3700_v38 }
0x1a37   :  { %2237 = vmatpush1.msra.mxu1 %v3703_v2 }
0x1a38   :  { %2238 = vmatprep.subr.mxu1 %v3707_v42 }
0x1a39   :  { %2239 = vmatpush1.msra.mxu1 %v3709_v44 }
0x1a3a   :  { %2240 = vmatprep.subr.mxu1 %v3714_v18 }
0x1a3b   :  { %2241 = vmatpush1.msra.mxu1 %v3718_v46 }
0x1a3c   :  { %2242 = vmatprep.subr.mxu1 %v3721_v8 }
0x1a3d   :  { %2243 = vmatpush1.msra.mxu1 %v3723_v48 }
0x1a3e   :  { %2244 = vmatprep.subr.mxu1 %v3726_v49 }
0x1a3f   :  { %2245 = vmatpush1.msra.mxu1 %v3728_v26 }
0x1a40   :  { %2488 = vmatprep.subr.mxu1 %v3674_v41 }
0x1a94   :  { %v2048_v23 = vpop.permute.xlu0 %2047 }
0x1af0   :  { %v2019_v55 = vpop.f32.mrf.mxu1 }
0x1af1   :  { %v2026_v12 = vrot.slane %v2019_v55, 2 }
0x1af2   :  { %v2021_v59 = vpop.f32.mrf.mxu1 }
0x1af3   :  { %v2027_v16 = vrot.slane %v2021_v59, 2  ;;  %v2030_v15 = vadd.f32 %v2026_v12, %v3818_v58 }
0x1af5   :  { %v2031_v14 = vadd.f32 %v2027_v16, %v3834_v20  ;;  %v2738_v1 = vmul.f32 -1.442695, %v2030_v15 }
0x1af7   :  { %2935 = vtanh.f32 %v2031_v14  ;;  %v2739_v58 = vmul.f32 -1.442695, %v2031_v14 }
0x1af8   :  { %2937 = vpow2.f32 %v2738_v1 }
0x1b04   :  { %v2936_v54 = vpop.eup %2935 }
0x1b05   :  { %2052 = vrot.lane.b32.xlu1 %v2936_v54, %s3112_s0  ;;  %v2938_v61 = vpop.eup %2937 }
0x1b06   :  { %v2038_v63 = vadd.f32 1.0, %v2938_v61 }
0x1b08   :  { %2939 = vrcp.f32 %v2038_v63 }
0x1b15   :  { %v2940_v24 = vpop.eup %2939 }
0x1b16   :  { %v2050_v25 = vmul.f32 %v2940_v24, %v2048_v23 }
0x1b77   :  { %v2053_v21 = vpop.permute.xlu1 %2052 }
0x1b78   :  { %v2055_v41 = vmul.f32 %v2940_v24, %v2053_v21 }
0x1b7a   :  { %2057 = vrot.lane.b32.xlu1 %v2055_v41, %s3112_s0 }
0x1bec   :  { %v2058_v20 = vpop.permute.xlu1 %2057 }
0x1bed   :  { %v2060_v29 = vadd.f32 %v2058_v20, %v2050_v25 }
0x1bef   :  { %2941 = vtanh.f32 %v2060_v29  ;;  %v2073_v31 = vrot.slane %v2060_v29, 6 }
0x1bf0   :  { %2943 = vpow2.f32 %v2739_v58 }
0x1bf1   :  { %2074 = vrot.lane.b32.xlu1 %v2073_v31, %s3112_s0 }
0x1bfc   :  { %v2942_v30 = vpop.eup %2941 }
0x1bfd   :  { %2063 = vrot.lane.b32.xlu0 %v2942_v30, %s3112_s0  ;;  %v2944_v33 = vpop.eup %2943 }
0x1bfe   :  { %v2039_v28 = vadd.f32 1.0, %v2944_v33 }
0x1c00   :  { %2945 = vrcp.f32 %v2039_v28 }
0x1c0d   :  { %v2946_v35 = vpop.eup %2945 }
0x1c63   :  { %v2075_v17 = vpop.permute.xlu1 %2074 }
0x1c64   :  { %v2077_v27 = vsel %vm3507_vm10, %v2075_v17, %v3911_v53 }
0x1c65   :  { %2177 = vrot.lane.b32.xlu1 %v2077_v27, %s3112_s0 }
0x1c6f   :  { %v2064_v37 = vpop.permute.xlu0 %2063 }
0x1c70   :  { %v2066_v9 = vmul.f32 %v2946_v35, %v2064_v37 }
0x1c72   :  { %v2068_v39 = vrot.slane %v2066_v9, 6 }
0x1c74   :  { %v2070_v11 = vsel %vm3507_vm10, %v2068_v39, 0.0  ;;  %v2071_v13 = vsel %vm3507_vm10, %v2068_v39, %v1942_v0 }
0x1c75   :  { %v2078_v7 = vadd.f32 %v2070_v11, %v1949_v56  ;;  %2740 = vmatmul.mubr.msk.f32.vlgmr.msra.gmra.mxu0 %vm290_vm7, %v2071_v13 }
0x1c76   :  { %2360 = vmatpush1.msra.mxu0 %v3677_v43  ;;  %2407 = vmatprep.mubr.f32.mxu0 %v3110_v3 }
0x1c77   :  { %2361 = vmatprep.subr.mxu0 %v3680_v47 }
0x1c78   :  { %2362 = vmatpush1.msra.mxu0 %v3685_v6 }
0x1c79   :  { %2363 = vmatprep.subr.mxu0 %v3692_v34 }
0x1c7a   :  { %2364 = vmatpush1.msra.mxu0 %v3697_v36 }
0x1c7b   :  { %2365 = vmatprep.subr.mxu0 %v3700_v38 }
0x1c7c   :  { %2366 = vmatpush1.msra.mxu0 %v3703_v2 }
0x1c7d   :  { %2367 = vmatprep.subr.mxu0 %v3707_v42 }
0x1c7e   :  { %2368 = vmatpush1.msra.mxu0 %v3709_v44 }
0x1c7f   :  { %2369 = vmatprep.subr.mxu0 %v3714_v18 }
0x1c80   :  { %2370 = vmatpush1.msra.mxu0 %v3718_v46 }
0x1c81   :  { %2371 = vmatprep.subr.mxu0 %v3721_v8 }
0x1c82   :  { %2372 = vmatpush1.msra.mxu0 %v3723_v48 }
0x1c83   :  { %2373 = vmatprep.subr.mxu0 %v3726_v49 }
0x1c84   :  { %2374 = vmatpush1.msra.mxu0 %v3728_v26 }
0x1c85   :  { %2763 = vmatprep.subr.mxu0 %v3110_v3 }
0x1cd7   :  { %v2178_v14 = vpop.permute.xlu1 %2177 }
0x1d35   :  { %v2156_v5 = vpop.f32.mrf.mxu0 }
0x1d36   :  { %v2161_v50 = vadd.f32 %v2156_v5, %v3806_v57 }
0x1d37   :  { %v2158_v53 = vpop.f32.mrf.mxu0 }
0x1d38   :  { %v2162_v40 = vadd.f32 %v2158_v53, %v3822_v22  ;;  %v2741_v52 = vmul.f32 -1.442695, %v2161_v50 }
0x1d3a   :  { %2947 = vtanh.f32 %v2162_v40  ;;  %v2742_v61 = vmul.f32 -1.442695, %v2162_v40 }
0x1d3b   :  { %2949 = vpow2.f32 %v2741_v52 }
0x1d47   :  { %v2948_v45 = vpop.eup %2947 }
0x1d48   :  { %2182 = vrot.lane.b32.xlu0 %v2948_v45, %s3112_s0  ;;  %v2950_v0 = vpop.eup %2949 }
0x1d49   :  { %v2169_v56 = vadd.f32 1.0, %v2950_v0 }
0x1d4b   :  { %2951 = vrcp.f32 %v2169_v56 }
0x1d58   :  { %v2952_v55 = vpop.eup %2951 }
0x1d59   :  { %v2180_v54 = vmul.f32 %v2952_v55, %v2178_v14 }
0x1dba   :  { %v2183_v59 = vpop.permute.xlu0 %2182 }
0x1dbb   :  { %v2185_v16 = vmul.f32 %v2952_v55, %v2183_v59 }
0x1dbd   :  { %2187 = vrot.lane.b32.xlu0 %v2185_v16, %s3112_s0 }
0x1e2f   :  { %v2188_v12 = vpop.permute.xlu0 %2187 }
0x1e30   :  { %v2190_v15 = vadd.f32 %v2188_v12, %v2180_v54 }
0x1e32   :  { %2953 = vtanh.f32 %v2190_v15  ;;  %2200 = vrot.lane.b32.xlu0 %v2190_v15, %s3112_s0 }
0x1e33   :  { %2955 = vpow2.f32 %v2742_v61 }
0x1e3f   :  { %v2954_v1 = vpop.eup %2953 }
0x1e40   :  { %2193 = vrot.lane.b32.xlu1 %v2954_v1, %s3112_s0  ;;  %v2956_v63 = vpop.eup %2955 }
0x1e41   :  { %v2170_v24 = vadd.f32 1.0, %v2956_v63 }
0x1e43   :  { %2957 = vrcp.f32 %v2170_v24 }
0x1e50   :  { %v2958_v25 = vpop.eup %2957 }
0x1ea4   :  { %v2201_v21 = vpop.permute.xlu0 %2200 }
0x1ea5   :  { %v2203_v41 = vsel %vm3556_vm11, %v2201_v21, %v2077_v27 }
0x1ea6   :  { %v2307_v23 = vrot.slane %v2203_v41, 6 }
0x1ea8   :  { %2308 = vrot.lane.b32.xlu0 %v2307_v23, %s3112_s0 }
0x1eb2   :  { %v2194_v20 = vpop.permute.xlu1 %2193 }
0x1eb3   :  { %v2196_v29 = vmul.f32 %v2958_v25, %v2194_v20 }
0x1eb5   :  { %v2197_v31 = vsel %vm3556_vm11, %v2196_v29, 0.0  ;;  %v2198_v30 = vsel %vm3556_vm11, %v2196_v29, %v2071_v13 }
0x1eb6   :  { %v2204_v58 = vadd.f32 %v2197_v31, %v2078_v7  ;;  %2743 = vmatmul.mubr.msk.f32.vlgmr.msra.gmra.mxu1 %vm290_vm7, %v2198_v30 }
0x1eb7   :  { %2489 = vmatpush1.msra.mxu1 %v3677_v43  ;;  %2536 = vmatprep.mubr.f32.mxu1 %v3110_v3 }
0x1eb8   :  { %2490 = vmatprep.subr.mxu1 %v3680_v47 }
0x1eb9   :  { %2491 = vmatpush1.msra.mxu1 %v3685_v6 }
0x1eba   :  { %2492 = vmatprep.subr.mxu1 %v3692_v34 }
0x1ebb   :  { %2493 = vmatpush1.msra.mxu1 %v3697_v36 }
0x1ebc   :  { %2494 = vmatprep.subr.mxu1 %v3700_v38 }
0x1ebd   :  { %2495 = vmatpush1.msra.mxu1 %v3703_v2 }
0x1ebe   :  { %2496 = vmatprep.subr.mxu1 %v3707_v42 }
0x1ebf   :  { %2497 = vmatpush1.msra.mxu1 %v3709_v44 }
0x1ec0   :  { %2498 = vmatprep.subr.mxu1 %v3714_v18 }
0x1ec1   :  { %2499 = vmatpush1.msra.mxu1 %v3718_v46 }
0x1ec2   :  { %2500 = vmatprep.subr.mxu1 %v3721_v8 }
0x1ec3   :  { %2501 = vmatpush1.msra.mxu1 %v3723_v48 }
0x1ec4   :  { %2502 = vmatprep.subr.mxu1 %v3726_v49 }
0x1ec5   :  { %2503 = vmatpush1.msra.mxu1 %v3728_v26 }
0x1f1a   :  { %v2309_v48 = vpop.permute.xlu0 %2308 }
0x1f76   :  { %v2280_v60 = vpop.f32.mrf.mxu1 }
0x1f77   :  { %v2287_v36 = vrot.slane %v2280_v60, 6 }
0x1f78   :  { %v2282_v43 = vpop.f32.mrf.mxu1 }
0x1f79   :  { %v2288_v47 = vrot.slane %v2282_v43, 6  ;;  %v2291_v38 = vadd.f32 %v2287_v36, %v3810_v10 }
0x1f7b   :  { %v2292_v6 = vadd.f32 %v2288_v47, %v3826_v32  ;;  %v2744_v2 = vmul.f32 -1.442695, %v2291_v38 }
0x1f7d   :  { %2959 = vtanh.f32 %v2292_v6  ;;  %v2745_v27 = vmul.f32 -1.442695, %v2292_v6 }
0x1f7e   :  { %2961 = vpow2.f32 %v2744_v2 }
0x1f8a   :  { %v2960_v34 = vpop.eup %2959 }
0x1f8b   :  { %2313 = vrot.lane.b32.xlu1 %v2960_v34, %s3112_s0  ;;  %v2962_v42 = vpop.eup %2961 }
0x1f8c   :  { %v2299_v44 = vadd.f32 1.0, %v2962_v42 }
0x1f8e   :  { %2963 = vrcp.f32 %v2299_v44 }
0x1f9b   :  { %v2964_v18 = vpop.eup %2963 }
0x1f9c   :  { %v2311_v49 = vmul.f32 %v2964_v18, %v2309_v48 }
0x1ffd   :  { %v2314_v46 = vpop.permute.xlu1 %2313 }
0x1ffe   :  { %v2316_v8 = vmul.f32 %v2964_v18, %v2314_v46 }
0x2000   :  { %2318 = vrot.lane.b32.xlu1 %v2316_v8, %s3112_s0 }
0x2072   :  { %v2319_v26 = vpop.permute.xlu1 %2318 }
0x2073   :  { %v2321_v33 = vadd.f32 %v2319_v26, %v2311_v49 }
0x2075   :  { %2965 = vtanh.f32 %v2321_v33  ;;  %v2334_v28 = vrot.slane %v2321_v33, 2 }
0x2076   :  { %2967 = vpow2.f32 %v2745_v27  ;;  %v2595_v27 = vld [vmem:[%s4086_s8 + $0x20] sm:$0xff] }
0x2077   :  { %2335 = vrot.lane.b32.xlu1 %v2334_v28, %s3112_s0 }
0x2082   :  { %v2966_v17 = vpop.eup %2965 }
0x2083   :  { %2324 = vrot.lane.b32.xlu0 %v2966_v17, %s3112_s0  ;;  %v2968_v35 = vpop.eup %2967  ;;  %v2597_v17 = vld [vmem:[%s4086_s8 + $0x30] sm:$0xff] }
0x2084   :  { %v2300_v37 = vadd.f32 1.0, %v2968_v35 }
0x2086   :  { %2969 = vrcp.f32 %v2300_v37 }
0x2093   :  { %v2970_v13 = vpop.eup %2969 }
0x20e9   :  { %v2336_v9 = vpop.permute.xlu1 %2335 }
0x20ea   :  { %v2338_v39 = vsel %vm3609_vm12, %v2336_v9, %v2203_v41 }
0x20eb   :  { %v2436_v11 = vrot.slane %v2338_v39, 4 }
0x20ed   :  { %2437 = vrot.lane.b32.xlu1 %v2436_v11, %s3112_s0  ;;  %v2594_v11 = vld [vmem:[%s4086_s8 + $0x18] sm:$0xff] }
0x20f5   :  { %v2325_v7 = vpop.permute.xlu0 %2324 }
0x20f6   :  { %v2327_v5 = vmul.f32 %v2970_v13, %v2325_v7  ;;  %v2593_v13 = vld [vmem:[%s4086_s8 + $0x10] sm:$0xff]  ;;  %v2592_v7 = vld [vmem:[%s4086_s8 + $0x8] sm:$0xff] }
0x20f8   :  { %v2329_v53 = vrot.slane %v2327_v5, 2  ;;  %v2591_v5 = vld [vmem:[%s4086_s8] sm:$0xff] }
0x20fa   :  { %v2331_v40 = vsel %vm3609_vm12, %v2329_v53, 0.0  ;;  %v2332_v45 = vsel %vm3609_vm12, %v2329_v53, %v2198_v30 }
0x20fb   :  { %v2339_v50 = vadd.f32 %v2331_v40, %v2204_v58  ;;  %2746 = vmatmul.mubr.msk.f32.vlgmr.msra.gmra.mxu0 %vm290_vm7, %v2332_v45 }
0x20fc   :  { %2779 = vmatprep.mubr.msk.f32.mxu0 %vm3121_vm0, %v3110_v3 }
0x215f   :  { %v2438_v63 = vpop.permute.xlu1 %2437 }
0x21bb   :  { %v2409_v52 = vpop.f32.mrf.mxu0 }
0x21bc   :  { %v2416_v16 = vrot.slane %v2409_v52, 4 }
0x21bd   :  { %v2411_v0 = vpop.f32.mrf.mxu0 }
0x21be   :  { %v2417_v56 = vrot.slane %v2411_v0, 4  ;;  %v2420_v14 = vadd.f32 %v2416_v16, %v3806_v57 }
0x21c0   :  { %v2421_v55 = vadd.f32 %v2417_v56, %v3822_v22  ;;  %v2747_v54 = vmul.f32 -1.442695, %v2420_v14  ;;  %v2753_v14 = vld [vmem:[%s4087_s9] ss:$0 sm:$0xff] }
0x21c2   :  { %2971 = vtanh.f32 %v2421_v55  ;;  %v2748_v57 = vmul.f32 -1.442695, %v2421_v55 }
0x21c3   :  { %2973 = vpow2.f32 %v2747_v54 }
0x21cf   :  { %v2972_v59 = vpop.eup %2971 }
0x21d0   :  { %2442 = vrot.lane.b32.xlu0 %v2972_v59, %s3112_s0  ;;  %v2974_v12 = vpop.eup %2973 }
0x21d1   :  { %v2428_v19 = vadd.f32 1.0, %v2974_v12 }
0x21d3   :  { %2975 = vrcp.f32 %v2428_v19 }
0x21e0   :  { %v2976_v15 = vpop.eup %2975 }
0x21e1   :  { %v2440_v24 = vmul.f32 %v2976_v15, %v2438_v63 }
0x2242   :  { %v2443_v1 = vpop.permute.xlu0 %2442 }
0x2243   :  { %v2445_v61 = vmul.f32 %v2976_v15, %v2443_v1 }
0x2245   :  { %2447 = vrot.lane.b32.xlu0 %v2445_v61, %s3112_s0 }
0x22b7   :  { %v2448_v22 = vpop.permute.xlu0 %2447 }
0x22b8   :  { %v2450_v21 = vadd.f32 %v2448_v22, %v2440_v24 }
0x22ba   :  { %2977 = vtanh.f32 %v2450_v21  ;;  %v2463_v41 = vrot.slane %v2450_v21, 4 }
0x22bb   :  { %2979 = vpow2.f32 %v2748_v57 }
0x22bc   :  { %2464 = vrot.lane.b32.xlu0 %v2463_v41, %s3112_s0 }
0x22c7   :  { %v2978_v23 = vpop.eup %2977 }
0x22c8   :  { %2453 = vrot.lane.b32.xlu1 %v2978_v23, %s3112_s0  ;;  %v2980_v25 = vpop.eup %2979 }
0x22c9   :  { %v2429_v20 = vadd.f32 1.0, %v2980_v25 }
0x22cb   :  { %2981 = vrcp.f32 %v2429_v20 }
0x22d8   :  { %v2982_v58 = vpop.eup %2981 }
0x232e   :  { %v2465_v29 = vpop.permute.xlu0 %2464 }
0x232f   :  { %v2467_v31 = vsel %vm3637_vm13, %v2465_v29, %v2338_v39 }
0x2330   :  { %v2565_v30 = vrot.slane %v2467_v31, 2 }
0x2332   :  { %2566 = vrot.lane.b32.xlu0 %v2565_v30, %s3112_s0 }
0x233a   :  { %v2454_v60 = vpop.permute.xlu1 %2453 }
0x233b   :  { %v2456_v43 = vmul.f32 %v2982_v58, %v2454_v60 }
0x233d   :  { %v2458_v47 = vrot.slane %v2456_v43, 4 }
0x233f   :  { %v2460_v6 = vsel %vm3637_vm13, %v2458_v47, 0.0  ;;  %v2461_v34 = vsel %vm3637_vm13, %v2458_v47, %v2332_v45 }
0x2340   :  { %v2468_v36 = vadd.f32 %v2460_v6, %v2339_v50  ;;  %2749 = vmatmul.mubr.msk.f32.vlgmr.msra.gmra.mxu1 %vm290_vm7, %v2461_v34 }
0x23a4   :  { %v2567_v35 = vpop.permute.xlu0 %2566 }
0x2400   :  { %v2538_v38 = vpop.f32.mrf.mxu1 }
0x2401   :  { %v2545_v46 = vrot.slane %v2538_v38, 2 }
0x2402   :  { %v2540_v2 = vpop.f32.mrf.mxu1 }
0x2403   :  { %v2546_v42 = vrot.slane %v2540_v2, 2  ;;  %v2549_v8 = vadd.f32 %v2545_v46, %v3810_v10  ;;  %v2596_v10 = vld [vmem:[%s4086_s8 + $0x28] sm:$0xff] }
0x2405   :  { %v2550_v44 = vadd.f32 %v2546_v42, %v3826_v32  ;;  %v2750_v48 = vmul.f32 -1.442695, %v2549_v8  ;;  %v2598_v32 = vld [vmem:[%s4086_s8 + $0x38] sm:$0xff] }
0x2406   :  { %2764 = vmatpush3.msra.mxu0 %v2598_v32 }
0x2407   :  { %2983 = vtanh.f32 %v2550_v44  ;;  %2765 = vmatprep.subr.mxu0 %v3110_v3  ;;  %v2751_v40 = vmul.f32 -1.442695, %v2550_v44 }
0x2408   :  { %2985 = vpow2.f32 %v2750_v48  ;;  %2766 = vmatpush3.msra.mxu0 %v2597_v17 }
0x2409   :  { %2767 = vmatprep.subr.mxu0 %v3110_v3 }
0x240a   :  { %2768 = vmatpush3.msra.mxu0 %v2596_v10 }
0x240b   :  { %2769 = vmatprep.subr.mxu0 %v3110_v3 }
0x240c   :  { %2770 = vmatpush3.msra.mxu0 %v2595_v27 }
0x240d   :  { %2771 = vmatprep.subr.mxu0 %v3110_v3 }
0x240e   :  { %2772 = vmatpush3.msra.mxu0 %v2594_v11 }
0x240f   :  { %2773 = vmatprep.subr.mxu0 %v3110_v3 }
0x2410   :  { %2774 = vmatpush3.msra.mxu0 %v2593_v13 }
0x2411   :  { %2775 = vmatprep.subr.mxu0 %v3110_v3 }
0x2412   :  { %2776 = vmatpush3.msra.mxu0 %v2592_v7 }
0x2413   :  { %2777 = vmatprep.subr.mxu0 %v3110_v3 }
0x2414   :  { %v2984_v18 = vpop.eup %2983  ;;  %2778 = vmatpush3.msra.mxu0 %v2591_v5 }
0x2415   :  { %2571 = vrot.lane.b32.xlu1 %v2984_v18, %s3112_s0  ;;  %v2986_v49 = vpop.eup %2985 }
0x2416   :  { %v2557_v62 = vadd.f32 1.0, %v2986_v49 }
0x2418   :  { %2987 = vrcp.f32 %v2557_v62 }
0x2425   :  { %v2988_v26 = vpop.eup %2987 }
0x2426   :  { %v2569_v37 = vmul.f32 %v2988_v26, %v2567_v35 }
0x2487   :  { %v2572_v33 = vpop.permute.xlu1 %2571 }
0x2488   :  { %v2574_v28 = vmul.f32 %v2988_v26, %v2572_v33 }
0x248a   :  { %2576 = vrot.lane.b32.xlu1 %v2574_v28, %s3112_s0 }
0x24fc   :  { %v2577_v9 = vpop.permute.xlu1 %2576 }
0x24fd   :  { %v2579_v39 = vadd.f32 %v2577_v9, %v2569_v37 }
0x24ff   :  { %2989 = vtanh.f32 %v2579_v39 }
0x2500   :  { %2991 = vpow2.f32 %v2751_v40 }
0x250c   :  { %v2990_v53 = vpop.eup %2989 }
0x250d   :  { %2582 = vrot.lane.b32.xlu0 %v2990_v53, %s3112_s0  ;;  %v2992_v45 = vpop.eup %2991  ;;  %s3122_s0 = smov [#allocation12]  }
0x250e   :  { %v2558_v50 = vadd.f32 1.0, %v2992_v45  ;;  %s2689_s25 = sshll.u32 %s3122_s0, 4  ;;  %s2690_s25 = int_to_ptr.vmem [resolvable:$true] %s2689_s25 }
0x250f   :  { %s3075_s26 = scalar_lea.vmem %s2690_s25, 32  ;;  %p3080_p7 = scmp.lt.s32.totalorder %s2690_s25, %s2690_s25 }
0x2510   :  { %2993 = vrcp.f32 %v2558_v50  ;;  %p3076_p6 = scmp.ne.s32.totalorder %s2690_s25, %s3075_s26  ;;  %p3081_p8 = scmp.lt.s32.totalorder %s3075_s26, %s3075_s26 }
0x2512   :  { %p3082_p9 = por %p3081_p8, %p3080_p7 }
0x2514   :  { %p3083_p10 = pnand %p3082_p9, %p3076_p6 }
0x251d   :  { %v2994_v52 = vpop.eup %2993 }
0x257f   :  { %v2583_v0 = vpop.permute.xlu0 %2582 }
0x2580   :  { %v2585_v56 = vmul.f32 %v2994_v52, %v2583_v0 }
0x2582   :  { %v2587_v55 = vrot.slane %v2585_v56, 6 }
0x2584   :  { %v2589_v59 = vsel %vm144_vm14, %v2587_v55, 0.0 }
0x2585   :  { %v2590_v16 = vadd.f32 %v2589_v59, %v2468_v36 }
0x2587   :  { %2780 = vmatmul.mubr.msk.f32.vlgmr.msra.gmra.mxu0 %vm290_vm7, %v2590_v16 }
0x2647   :  { %v2668_v3 = vpop.f32.mrf.mxu0 }
0x2648   :  { %v2672_v54 = vmul.f32 0.125, %v2668_v3 }
0x2649   :  { %v2781_v12 = vpop.f32.mrf.mxu0 }
0x264a   :  { %v2680_v19 = vadd.f32 %v2753_v14, %v2672_v54 }
0x264c   :  { %2682 = vst.msk [vmem:[#allocation12] sm:$0x3] %vm2681_vm1, %v2680_v19 }
0x264d   :  { %3086 = shalt.err (!%p3083_p10)
}
0x264e   :  { %2692 = dma.vmem_to_hbm [thread:$0]  %s2690_s25, 32, %s4088_s10, [#allocation6]  }
0x264f   :  { %3101 = dma.done.wait [#allocation6], 32  }
0x2650   :  { %3102 = vsyncadd [#allocation6], 4294967264 }
0x2651   :  { %2696 = vsyncpa [#allocation5], 1 }
0x2652   :  { %2697 = vsyncpa [#allocation8], 1 }
0x2653   :  { %2698 = vsyncpa [#allocation11], 1 }
0x2654   :  { %2699 = vsyncpa [#allocation6], 1 }

</bundles_post_ra>
